<compile_context>
chip_gen: v7x
topology: tpu7x:2x2x1
jax: 0.10.0
libtpu: 0.0.40
codegen_flags: <defaults>
</compile_context>

<pallas_src>
import jax
import jax.numpy as jnp
from jax.experimental import pallas as pl
from jax.experimental.pallas import tpu as pltpu

# Small, d_model-divisible-by-heads configuration (module defaults scaled down).
B, T, D = 2, 8, 32       # nb_texts, nb_tokens, d_model
H = 4                    # nb_heads
DK = D // H              # per-head dim
F = 64                   # nb_neurons (FFN hidden)
L = 2                    # nb_layers
EPS = 1e-5               # nn.LayerNorm default eps
VW = 128                 # packed bias/LN row width (lane-dense)
SCALE = 1.0 / float(DK) ** 0.5

# Row indices in the packed (L, 16, 128) bias/LN tensor.
SA_BQ, SA_BK, SA_BV, SA_BO, SA_G, SA_B = 0, 1, 2, 3, 4, 5
ED_BQ, ED_BK, ED_BV, ED_BO, ED_G, ED_B = 6, 7, 8, 9, 10, 11
FF_B1, FF_B2, FF_G, FF_B = 12, 13, 14, 15
# Matrix indices in the packed (L, 8, D, D) attention-weight tensor.
SA_WQ, SA_WK, SA_WV, SA_WO = 0, 1, 2, 3
ED_WQ, ED_WK, ED_WV, ED_WO = 4, 5, 6, 7


# ---------------------------------------------------------------------------
# Pallas kernel: the entire decoder stack in one invocation.
# ---------------------------------------------------------------------------
def decoder_kernel(x_enc_ref, x_ref, att_w_ref, ff_w_ref, vec_ref, out_ref):
    bb, tt, dd = x_ref.shape          # bb = B (no grid) or 1 (batch-parallel grid)
    n = bb * tt

    # Leading-dim flatten only (lane dim unchanged -> free).
    x_enc2 = x_enc_ref[...].reshape(n, dd)
    h2 = x_ref[...].reshape(n, dd)

    # Per-head lane masks, built once and hoisted out of the layer loop.
    d_idx = jax.lax.broadcasted_iota(jnp.int32, (H, 1, 1, dd), 3)
    h_idx = jax.lax.broadcasted_iota(jnp.int32, (H, 1, 1, dd), 0)
    hmask = ((d_idx >= h_idx * DK) & (d_idx < (h_idx + 1) * DK)).astype(jnp.float32)
    hmask_q = hmask * SCALE           # fold the 1/sqrt(dk) scale into the q mask

    def layer_norm(x, g, b):
        mu = jnp.mean(x, axis=-1, keepdims=True)
        var = jnp.mean(jnp.square(x - mu), axis=-1, keepdims=True)
        return (x - mu) * jax.lax.rsqrt(var + EPS) * g + b

    def mha(q_in, kv_in, wq, wk, wv, wo, bq, bk, bv, bo, g, b):
        # Projections: 2-D bf16 MXU matmuls with f32 accumulation.
        q = jnp.dot(q_in.astype(jnp.bfloat16), wq,
                    preferred_element_type=jnp.float32) + bq
        k = jnp.dot(kv_in.astype(jnp.bfloat16), wk,
                    preferred_element_type=jnp.float32) + bk
        v = jnp.dot(kv_in.astype(jnp.bfloat16), wv,
                    preferred_element_type=jnp.float32) + bv

        q3 = q.reshape(bb, tt, dd)
        k3 = k.reshape(bb, tt, dd)
        v3 = v.reshape(bb, tt, dd)

        # All heads in one batched contraction over a merged (H*bb) leading axis.
        # Head selection is a lane mask on q (and v), never a lane-axis slice or
        # a minor-dim reshape.
        qm = (q3[None] * hmask_q).reshape(H * bb, tt, dd).astype(jnp.bfloat16)
        kr = jnp.broadcast_to(k3[None], (H, bb, tt, dd)
                              ).reshape(H * bb, tt, dd).astype(jnp.bfloat16)
        vm = (v3[None] * hmask).reshape(H * bb, tt, dd).astype(jnp.bfloat16)

        s = jnp.einsum("ntd,nsd->nts", qm, kr,
                       preferred_element_type=jnp.float32)
        # TODO(synk): mask1/mask2 default to empty torch.Tensor() -> no masking.
        s = s - jnp.max(s, axis=-1, keepdims=True)
        p = jnp.exp(s)
        p = p * pl.reciprocal(jnp.sum(p, axis=-1, keepdims=True), approx=True)
        a = jnp.einsum("nts,nsd->ntd", p.astype(jnp.bfloat16), vm,
                       preferred_element_type=jnp.float32)

        # v was masked per head, so summing over the head axis == concat(heads);
        # then a single (N,D)x(D,D) output projection.
        attn = jnp.sum(a.reshape(H, bb, tt, dd), axis=0).reshape(n, dd)
        out = jnp.dot(attn.astype(jnp.bfloat16), wo,
                      preferred_element_type=jnp.float32) + bo
        # TODO(synk): dropout omitted (inference-mode identity).
        return layer_norm(q_in + out, g, b)

    def ffn(x2, wf, b1, b2, g, b):
        w1 = wf[:, :F]            # (D, F)
        w2t = wf[:, F:]           # (D, F) == W2^T
        hid = jnp.dot(x2.astype(jnp.bfloat16), w1,
                      preferred_element_type=jnp.float32) + b1
        hid = jnp.maximum(hid, 0.0)
        out = jax.lax.dot_general(hid.astype(jnp.bfloat16), w2t,
                                  dimension_numbers=(((1,), (1,)), ((), ())),
                                  preferred_element_type=jnp.float32) + b2
        return layer_norm(x2 + out, g, b)

    # Layer loop lives inside the kernel (L is tiny -> static unroll).
    for l in range(L):
        vec = vec_ref[l]          # (16, 128) f32: packed biases + LN params

        # masked self-attention (+ residual + LayerNorm)
        h2 = mha(h2, h2,
                 att_w_ref[l, SA_WQ], att_w_ref[l, SA_WK],
                 att_w_ref[l, SA_WV], att_w_ref[l, SA_WO],
                 vec[SA_BQ, :D], vec[SA_BK, :D], vec[SA_BV, :D], vec[SA_BO, :D],
                 vec[SA_G, :D], vec[SA_B, :D])
        # encoder-decoder attention
        h2 = mha(h2, x_enc2,
                 att_w_ref[l, ED_WQ], att_w_ref[l, ED_WK],
                 att_w_ref[l, ED_WV], att_w_ref[l, ED_WO],
                 vec[ED_BQ, :D], vec[ED_BK, :D], vec[ED_BV, :D], vec[ED_BO, :D],
                 vec[ED_G, :D], vec[ED_B, :D])
        # position-wise feed forward
        h2 = ffn(h2, ff_w_ref[l],
                 vec[FF_B1, :F], vec[FF_B2, :D], vec[FF_G, :D], vec[FF_B, :D])

    out_ref[...] = h2.reshape(out_ref.shape)


# ---------------------------------------------------------------------------
# Wrappers
# ---------------------------------------------------------------------------
def decoder_forward(x_encoder, x, packed):
    """Single invocation, no grid, whole arrays resident in VMEM (v5e/v6e/v7x)."""
    att_w, ff_w, vec = packed
    return pl.pallas_call(
        decoder_kernel,
        out_shape=jax.ShapeDtypeStruct((B, T, D), jnp.float32),
        in_specs=[pl.BlockSpec(memory_space=pltpu.MemorySpace.VMEM)
                  for _ in range(5)],
        out_specs=pl.BlockSpec(memory_space=pltpu.MemorySpace.VMEM),
    )(x_encoder, x, att_w, ff_w, vec)


def decoder_forward_batch_parallel(x_encoder, x, packed):
    """grid=(B,) 'parallel' variant: on v7x each of the two TensorCores takes one
    batch element (weights re-fetched per core, ~tens of KiB)."""
    att_w, ff_w, vec = packed

    def full_spec(arr):
        nd = arr.ndim
        return pl.BlockSpec(arr.shape, lambda i, _nd=nd: (0,) * _nd)

    act_spec = lambda: pl.BlockSpec((1, T, D), lambda i: (i, 0, 0))
    return pl.pallas_call(
        decoder_kernel,
        out_shape=jax.ShapeDtypeStruct((B, T, D), jnp.float32),
        grid=(B,),
        in_specs=[act_spec(), act_spec(),
                  full_spec(att_w), full_spec(ff_w), full_spec(vec)],
        out_specs=act_spec(),
        compiler_params=pltpu.CompilerParams(dimension_semantics=("parallel",)),
    )(x_encoder, x, att_w, ff_w, vec)


# ---------------------------------------------------------------------------
# Deterministic synthetic parameters, packing, and pure-JAX f32 reference.
# ---------------------------------------------------------------------------
def init_params(key):
    keys = iter(jax.random.split(key, 64))

    def rnd(shape, scale=0.05):
        return (scale * jax.random.normal(next(keys), shape)).astype(jnp.float32)

    layers = []
    for _ in range(L):
        p = {}
        for pre in ("sa", "ed"):
            p[f"{pre}_wq"] = rnd((D, D)); p[f"{pre}_wk"] = rnd((D, D))
            p[f"{pre}_wv"] = rnd((D, D)); p[f"{pre}_wo"] = rnd((D, D))
            p[f"{pre}_bq"] = rnd((D,)); p[f"{pre}_bk"] = rnd((D,))
            p[f"{pre}_bv"] = rnd((D,)); p[f"{pre}_bo"] = rnd((D,))
            p[f"{pre}_g"] = jnp.ones((D,), jnp.float32)
            p[f"{pre}_b"] = jnp.zeros((D,), jnp.float32)
        p["ff_w1"] = rnd((D, F)); p["ff_b1"] = rnd((F,))
        p["ff_w2"] = rnd((F, D)); p["ff_b2"] = rnd((D,))
        p["ff_g"] = jnp.ones((D,), jnp.float32)
        p["ff_b"] = jnp.zeros((D,), jnp.float32)
        layers.append(p)
    return layers


def pack_params(layers):
    def row(v):
        return jnp.zeros((VW,), jnp.float32).at[: v.shape[0]].set(v)

    # (L, 8, D, D) bf16, leading-stacked -> no in-kernel lane slicing of weights.
    att_w = jnp.stack([
        jnp.stack([p["sa_wq"], p["sa_wk"], p["sa_wv"], p["sa_wo"],
                   p["ed_wq"], p["ed_wk"], p["ed_wv"], p["ed_wo"]])
        for p in layers]).astype(jnp.bfloat16)
    # (L, D, 2F) bf16, lane-dense: [W1 | W2^T].
    ff_w = jnp.stack([jnp.concatenate([p["ff_w1"], p["ff_w2"].T], axis=1)
                      for p in layers]).astype(jnp.bfloat16)
    # (L, 16, 128) f32 lane-dense: all biases + LayerNorm gamma/beta.
    vec = jnp.stack([jnp.stack([
        row(p["sa_bq"]), row(p["sa_bk"]), row(p["sa_bv"]), row(p["sa_bo"]),
        row(p["sa_g"]), row(p["sa_b"]),
        row(p["ed_bq"]), row(p["ed_bk"]), row(p["ed_bv"]), row(p["ed_bo"]),
        row(p["ed_g"]), row(p["ed_b"]),
        row(p["ff_b1"]), row(p["ff_b2"]), row(p["ff_g"]), row(p["ff_b"])])
        for p in layers])
    return att_w, ff_w, vec


def _ref_layer_norm(x, g, b):
    mu = jnp.mean(x, axis=-1, keepdims=True)
    var = jnp.mean((x - mu) ** 2, axis=-1, keepdims=True)
    return (x - mu) * jax.lax.rsqrt(var + EPS) * g + b


def _ref_mha(q_in, kv_in, wq, bq, wk, bk, wv, bv, wo, bo, g, b):
    q = jnp.einsum("btd,de->bte", q_in, wq) + bq
    k = jnp.einsum("btd,de->bte", kv_in, wk) + bk
    v = jnp.einsum("btd,de->bte", kv_in, wv) + bv
    heads = []
    for h in range(H):
        qh = q[:, :, h * DK:(h + 1) * DK]
        kh = k[:, :, h * DK:(h + 1) * DK]
        vh = v[:, :, h * DK:(h + 1) * DK]
        s = jnp.einsum("btd,bsd->bts", qh, kh) * SCALE
        s = s - jnp.max(s, axis=-1, keepdims=True)
        p = jnp.exp(s)
        p = p / jnp.sum(p, axis=-1, keepdims=True)
        heads.append(jnp.einsum("bts,bsd->btd", p, vh))
    attn = jnp.concatenate(heads, axis=-1)
    out = jnp.einsum("btd,de->bte", attn, wo) + bo
    return _ref_layer_norm(q_in + out, g, b)


def _ref_ffn(x, w1, b1, w2, b2, g, b):
    hid = jnp.maximum(jnp.einsum("btd,df->btf", x, w1) + b1, 0.0)
    out = jnp.einsum("btf,fd->btd", hid, w2) + b2
    return _ref_layer_norm(x + out, g, b)


def decoder_ref(x_encoder, x, layers):
    h = x
    for p in layers:
        h = _ref_mha(h, h, p["sa_wq"], p["sa_bq"], p["sa_wk"], p["sa_bk"],
                     p["sa_wv"], p["sa_bv"], p["sa_wo"], p["sa_bo"],
                     p["sa_g"], p["sa_b"])
        h = _ref_mha(h, x_encoder, p["ed_wq"], p["ed_bq"], p["ed_wk"], p["ed_bk"],
                     p["ed_wv"], p["ed_bv"], p["ed_wo"], p["ed_bo"],
                     p["ed_g"], p["ed_b"])
        h = _ref_ffn(h, p["ff_w1"], p["ff_b1"], p["ff_w2"], p["ff_b2"],
                     p["ff_g"], p["ff_b"])
    return h


if __name__ == "__main__":
    key = jax.random.PRNGKey(0)
    k_enc, k_x, k_params = jax.random.split(key, 3)

    x_encoder = jax.random.normal(k_enc, (B, T, D), dtype=jnp.float32)
    x = jax.random.normal(k_x, (B, T, D), dtype=jnp.float32)
    layers = init_params(k_params)
    packed = pack_params(layers)

    ref = jax.block_until_ready(decoder_ref(x_encoder, x, layers))

    # Single-invocation, whole-array-resident kernel.
    out = jax.block_until_ready(decoder_forward(x_encoder, x, packed))
    assert out.shape == (B, T, D)
    # bf16 MXU operands / bf16-stored weights vs a pure-f32 reference:
    # expected error envelope is a few 1e-3, well inside 1e-2.
    if not jnp.allclose(out, ref, atol=1e-2, rtol=1e-2):
        raise AssertionError("Pallas decoder (no-grid) mismatch vs f32 reference")

    # Batch-parallel variant (2x on v7x's two TensorCores; same result everywhere).
    out_mc = jax.block_until_ready(decoder_forward_batch_parallel(x_encoder, x, packed))
    if not jnp.allclose(out_mc, ref, atol=1e-2, rtol=1e-2):
        raise AssertionError("Pallas decoder (batch-parallel) mismatch vs f32 reference")

    print("KERNEL_OK")
</pallas_src>

<mosaic_0001>
module attributes {stable_mosaic.version = 11 : i64} {
  func.func @decoder_kernel(%arg0: memref<2x8x32xf32, #tpu.memory_space<vmem>>, %arg1: memref<2x8x32xf32, #tpu.memory_space<vmem>>, %arg2: memref<2x8x32x32xbf16, #tpu.memory_space<vmem>>, %arg3: memref<2x32x128xbf16, #tpu.memory_space<vmem>>, %arg4: memref<2x16x128xf32, #tpu.memory_space<vmem>>, %arg5: memref<2x8x32xf32, #tpu.memory_space<vmem>>) attributes {dimension_semantics = [], scalar_prefetch = 0 : i64, scratch_operands = 0 : i64, tpu.core_type = #tpu.core_type<tc>} {
    %c0 = arith.constant 0 : index
    %c0_0 = arith.constant 0 : index
    %c0_1 = arith.constant 0 : index
    %0 = vector.load %arg0[%c0, %c0_0, %c0_1] : memref<2x8x32xf32, #tpu.memory_space<vmem>>, vector<2x8x32xf32>
    %1 = vector.shape_cast %0 : vector<2x8x32xf32> to vector<16x32xf32>
    %c0_2 = arith.constant 0 : index
    %c0_3 = arith.constant 0 : index
    %c0_4 = arith.constant 0 : index
    %2 = vector.load %arg1[%c0_2, %c0_3, %c0_4] : memref<2x8x32xf32, #tpu.memory_space<vmem>>, vector<2x8x32xf32>
    %3 = vector.shape_cast %2 : vector<2x8x32xf32> to vector<16x32xf32>
    %4 = tpu.iota {dimensions = array<i32: 3>} : vector<4x1x1x32xi32>
    %5 = tpu.iota {dimensions = array<i32: 0>} : vector<4x1x1x32xi32>
    %c8_i32 = arith.constant 8 : i32
    %6 = vector.broadcast %c8_i32 : i32 to vector<4x1x1x32xi32>
    %7 = arith.muli %5, %6 : vector<4x1x1x32xi32>
    %8 = arith.cmpi sge, %4, %7 : vector<4x1x1x32xi32>
    %c1_i32 = arith.constant 1 : i32
    %9 = vector.broadcast %c1_i32 : i32 to vector<4x1x1x32xi32>
    %10 = arith.addi %5, %9 : vector<4x1x1x32xi32>
    %c8_i32_5 = arith.constant 8 : i32
    %11 = vector.broadcast %c8_i32_5 : i32 to vector<4x1x1x32xi32>
    %12 = arith.muli %10, %11 : vector<4x1x1x32xi32>
    %13 = arith.cmpi slt, %4, %12 : vector<4x1x1x32xi32>
    %14 = arith.andi %8, %13 : vector<4x1x1x32xi1>
    %15 = arith.extui %14 : vector<4x1x1x32xi1> to vector<4x1x1x32xi32>
    %16 = arith.sitofp %15 : vector<4x1x1x32xi32> to vector<4x1x1x32xf32>
    %cst = arith.constant 0.353553385 : f32
    %17 = vector.broadcast %cst : f32 to vector<4x1x1x32xf32>
    %18 = arith.mulf %16, %17 : vector<4x1x1x32xf32>
    %c0_6 = arith.constant 0 : index
    %c0_7 = arith.constant 0 : index
    %c0_8 = arith.constant 0 : index
    %19 = vector.load %arg4[%c0_6, %c0_7, %c0_8] : memref<2x16x128xf32, #tpu.memory_space<vmem>>, vector<1x16x128xf32>
    %20 = vector.shape_cast %19 : vector<1x16x128xf32> to vector<16x128xf32>
    %c0_9 = arith.constant 0 : index
    %c0_10 = arith.constant 0 : index
    %c0_11 = arith.constant 0 : index
    %c0_12 = arith.constant 0 : index
    %21 = vector.load %arg2[%c0_9, %c0_10, %c0_11, %c0_12] : memref<2x8x32x32xbf16, #tpu.memory_space<vmem>>, vector<1x1x32x32xbf16>
    %22 = vector.shape_cast %21 : vector<1x1x32x32xbf16> to vector<32x32xbf16>
    %c0_13 = arith.constant 0 : index
    %c1 = arith.constant 1 : index
    %c0_14 = arith.constant 0 : index
    %c0_15 = arith.constant 0 : index
    %23 = vector.load %arg2[%c0_13, %c1, %c0_14, %c0_15] : memref<2x8x32x32xbf16, #tpu.memory_space<vmem>>, vector<1x1x32x32xbf16>
    %24 = vector.shape_cast %23 : vector<1x1x32x32xbf16> to vector<32x32xbf16>
    %c0_16 = arith.constant 0 : index
    %c2 = arith.constant 2 : index
    %c0_17 = arith.constant 0 : index
    %c0_18 = arith.constant 0 : index
    %25 = vector.load %arg2[%c0_16, %c2, %c0_17, %c0_18] : memref<2x8x32x32xbf16, #tpu.memory_space<vmem>>, vector<1x1x32x32xbf16>
    %26 = vector.shape_cast %25 : vector<1x1x32x32xbf16> to vector<32x32xbf16>
    %c0_19 = arith.constant 0 : index
    %c3 = arith.constant 3 : index
    %c0_20 = arith.constant 0 : index
    %c0_21 = arith.constant 0 : index
    %27 = vector.load %arg2[%c0_19, %c3, %c0_20, %c0_21] : memref<2x8x32x32xbf16, #tpu.memory_space<vmem>>, vector<1x1x32x32xbf16>
    %28 = vector.shape_cast %27 : vector<1x1x32x32xbf16> to vector<32x32xbf16>
    %29 = vector.extract_strided_slice %20 {offsets = [0, 0], sizes = [1, 32], strides = [1, 1]} : vector<16x128xf32> to vector<1x32xf32>
    %30 = vector.shape_cast %29 : vector<1x32xf32> to vector<32xf32>
    %31 = vector.extract_strided_slice %20 {offsets = [1, 0], sizes = [1, 32], strides = [1, 1]} : vector<16x128xf32> to vector<1x32xf32>
    %32 = vector.shape_cast %31 : vector<1x32xf32> to vector<32xf32>
    %33 = vector.extract_strided_slice %20 {offsets = [2, 0], sizes = [1, 32], strides = [1, 1]} : vector<16x128xf32> to vector<1x32xf32>
    %34 = vector.shape_cast %33 : vector<1x32xf32> to vector<32xf32>
    %35 = vector.extract_strided_slice %20 {offsets = [3, 0], sizes = [1, 32], strides = [1, 1]} : vector<16x128xf32> to vector<1x32xf32>
    %36 = vector.shape_cast %35 : vector<1x32xf32> to vector<32xf32>
    %37 = vector.extract_strided_slice %20 {offsets = [4, 0], sizes = [1, 32], strides = [1, 1]} : vector<16x128xf32> to vector<1x32xf32>
    %38 = vector.shape_cast %37 : vector<1x32xf32> to vector<32xf32>
    %39 = vector.extract_strided_slice %20 {offsets = [5, 0], sizes = [1, 32], strides = [1, 1]} : vector<16x128xf32> to vector<1x32xf32>
    %40 = vector.shape_cast %39 : vector<1x32xf32> to vector<32xf32>
    %41 = arith.truncf %3 : vector<16x32xf32> to vector<16x32xbf16>
    %cst_22 = arith.constant dense<0.000000e+00> : vector<16x32xf32>
    %42 = tpu.matmul %41, %22, %cst_22 {dimension_numbers = #tpu.dot_dimension_numbers<[1], [0], [0], [1], [0, 0, 1, 1], [], []>} : vector<16x32xbf16>, vector<32x32xbf16>, vector<16x32xf32> -> vector<16x32xf32>
    %43 = vector.shape_cast %30 : vector<32xf32> to vector<1x32xf32>
    %44 = vector.broadcast %43 : vector<1x32xf32> to vector<16x32xf32>
    %45 = arith.addf %42, %44 : vector<16x32xf32>
    %46 = arith.truncf %3 : vector<16x32xf32> to vector<16x32xbf16>
    %cst_23 = arith.constant dense<0.000000e+00> : vector<16x32xf32>
    %47 = tpu.matmul %46, %24, %cst_23 {dimension_numbers = #tpu.dot_dimension_numbers<[1], [0], [0], [1], [0, 0, 1, 1], [], []>} : vector<16x32xbf16>, vector<32x32xbf16>, vector<16x32xf32> -> vector<16x32xf32>
    %48 = vector.shape_cast %32 : vector<32xf32> to vector<1x32xf32>
    %49 = vector.broadcast %48 : vector<1x32xf32> to vector<16x32xf32>
    %50 = arith.addf %47, %49 : vector<16x32xf32>
    %51 = arith.truncf %3 : vector<16x32xf32> to vector<16x32xbf16>
    %cst_24 = arith.constant dense<0.000000e+00> : vector<16x32xf32>
    %52 = tpu.matmul %51, %26, %cst_24 {dimension_numbers = #tpu.dot_dimension_numbers<[1], [0], [0], [1], [0, 0, 1, 1], [], []>} : vector<16x32xbf16>, vector<32x32xbf16>, vector<16x32xf32> -> vector<16x32xf32>
    %53 = vector.shape_cast %34 : vector<32xf32> to vector<1x32xf32>
    %54 = vector.broadcast %53 : vector<1x32xf32> to vector<16x32xf32>
    %55 = arith.addf %52, %54 : vector<16x32xf32>
    %56 = vector.shape_cast %45 : vector<16x32xf32> to vector<2x8x32xf32>
    %57 = vector.shape_cast %50 : vector<16x32xf32> to vector<2x8x32xf32>
    %58 = vector.shape_cast %55 : vector<16x32xf32> to vector<2x8x32xf32>
    %59 = vector.shape_cast %56 : vector<2x8x32xf32> to vector<1x2x8x32xf32>
    %60 = vector.broadcast %59 : vector<1x2x8x32xf32> to vector<4x2x8x32xf32>
    %61 = vector.broadcast %18 : vector<4x1x1x32xf32> to vector<4x2x8x32xf32>
    %62 = arith.mulf %60, %61 : vector<4x2x8x32xf32>
    %63 = vector.shape_cast %62 : vector<4x2x8x32xf32> to vector<8x8x32xf32>
    %64 = arith.truncf %63 : vector<8x8x32xf32> to vector<8x8x32xbf16>
    %65 = vector.shape_cast %57 : vector<2x8x32xf32> to vector<1x2x8x32xf32>
    %66 = vector.shape_cast %65 : vector<1x2x8x32xf32> to vector<1x2x8x32xf32>
    %67 = vector.broadcast %66 : vector<1x2x8x32xf32> to vector<4x2x8x32xf32>
    %68 = vector.shape_cast %67 : vector<4x2x8x32xf32> to vector<8x8x32xf32>
    %69 = arith.truncf %68 : vector<8x8x32xf32> to vector<8x8x32xbf16>
    %70 = vector.shape_cast %58 : vector<2x8x32xf32> to vector<1x2x8x32xf32>
    %71 = vector.broadcast %70 : vector<1x2x8x32xf32> to vector<4x2x8x32xf32>
    %72 = vector.broadcast %16 : vector<4x1x1x32xf32> to vector<4x2x8x32xf32>
    %73 = arith.mulf %71, %72 : vector<4x2x8x32xf32>
    %74 = vector.shape_cast %73 : vector<4x2x8x32xf32> to vector<8x8x32xf32>
    %75 = arith.truncf %74 : vector<8x8x32xf32> to vector<8x8x32xbf16>
    "tpu.trace_start"() <{level = 10 : i32, message = "ntd,nsd->nts"}> : () -> ()
    %cst_25 = arith.constant dense<0.000000e+00> : vector<8x8x8xf32>
    %76 = tpu.matmul %64, %69, %cst_25 {dimension_numbers = #tpu.dot_dimension_numbers<[2], [2], [1], [1], [0, 0, 0, 1, 1, 1], [0], [0]>} : vector<8x8x32xbf16>, vector<8x8x32xbf16>, vector<8x8x8xf32> -> vector<8x8x8xf32>
    "tpu.trace_stop"() : () -> ()
    %cst_26 = arith.constant dense<0xFF800000> : vector<8x8xf32>
    %77 = vector.multi_reduction <maximumf>, %76, %cst_26 [2] : vector<8x8x8xf32> to vector<8x8xf32>
    %78 = vector.shape_cast %77 : vector<8x8xf32> to vector<8x8x1xf32>
    %79 = vector.broadcast %78 : vector<8x8x1xf32> to vector<8x8x8xf32>
    %80 = arith.subf %76, %79 : vector<8x8x8xf32>
    %81 = math.exp %80 : vector<8x8x8xf32>
    %cst_27 = arith.constant dense<0.000000e+00> : vector<8x8xf32>
    %82 = vector.multi_reduction <add>, %81, %cst_27 [2] : vector<8x8x8xf32> to vector<8x8xf32>
    %83 = vector.shape_cast %82 : vector<8x8xf32> to vector<8x8x1xf32>
    %84 = tpu.reciprocal %83 {approx = true} : vector<8x8x1xf32> -> vector<8x8x1xf32>
    %85 = vector.broadcast %84 : vector<8x8x1xf32> to vector<8x8x8xf32>
    %86 = arith.mulf %81, %85 : vector<8x8x8xf32>
    %87 = arith.truncf %86 : vector<8x8x8xf32> to vector<8x8x8xbf16>
    "tpu.trace_start"() <{level = 10 : i32, message = "nts,nsd->ntd"}> : () -> ()
    %cst_28 = arith.constant dense<0.000000e+00> : vector<8x8x32xf32>
    %88 = tpu.matmul %87, %75, %cst_28 {dimension_numbers = #tpu.dot_dimension_numbers<[2], [1], [1], [2], [0, 0, 0, 1, 1, 2], [0], [0]>} : vector<8x8x8xbf16>, vector<8x8x32xbf16>, vector<8x8x32xf32> -> vector<8x8x32xf32>
    "tpu.trace_stop"() : () -> ()
    %89 = vector.shape_cast %88 : vector<8x8x32xf32> to vector<4x2x8x32xf32>
    %cst_29 = arith.constant dense<0.000000e+00> : vector<2x8x32xf32>
    %90 = vector.multi_reduction <add>, %89, %cst_29 [0] : vector<4x2x8x32xf32> to vector<2x8x32xf32>
    %91 = vector.shape_cast %90 : vector<2x8x32xf32> to vector<16x32xf32>
    %92 = arith.truncf %91 : vector<16x32xf32> to vector<16x32xbf16>
    %cst_30 = arith.constant dense<0.000000e+00> : vector<16x32xf32>
    %93 = tpu.matmul %92, %28, %cst_30 {dimension_numbers = #tpu.dot_dimension_numbers<[1], [0], [0], [1], [0, 0, 1, 1], [], []>} : vector<16x32xbf16>, vector<32x32xbf16>, vector<16x32xf32> -> vector<16x32xf32>
    %94 = vector.shape_cast %36 : vector<32xf32> to vector<1x32xf32>
    %95 = vector.broadcast %94 : vector<1x32xf32> to vector<16x32xf32>
    %96 = arith.addf %93, %95 : vector<16x32xf32>
    %97 = arith.addf %3, %96 : vector<16x32xf32>
    %cst_31 = arith.constant dense<0.000000e+00> : vector<16xf32>
    %98 = vector.multi_reduction <add>, %97, %cst_31 [1] : vector<16x32xf32> to vector<16xf32>
    %99 = vector.shape_cast %98 : vector<16xf32> to vector<16x1xf32>
    %cst_32 = arith.constant 3.200000e+01 : f32
    %100 = vector.broadcast %cst_32 : f32 to vector<16x1xf32>
    %101 = arith.divf %99, %100 : vector<16x1xf32>
    %102 = vector.broadcast %101 : vector<16x1xf32> to vector<16x32xf32>
    %103 = arith.subf %97, %102 : vector<16x32xf32>
    %104 = arith.mulf %103, %103 : vector<16x32xf32>
    %cst_33 = arith.constant dense<0.000000e+00> : vector<16xf32>
    %105 = vector.multi_reduction <add>, %104, %cst_33 [1] : vector<16x32xf32> to vector<16xf32>
    %106 = vector.shape_cast %105 : vector<16xf32> to vector<16x1xf32>
    %cst_34 = arith.constant 3.200000e+01 : f32
    %107 = vector.broadcast %cst_34 : f32 to vector<16x1xf32>
    %108 = arith.divf %106, %107 : vector<16x1xf32>
    %109 = vector.broadcast %101 : vector<16x1xf32> to vector<16x32xf32>
    %110 = arith.subf %97, %109 : vector<16x32xf32>
    %cst_35 = arith.constant 9.99999974E-6 : f32
    %111 = vector.broadcast %cst_35 : f32 to vector<16x1xf32>
    %112 = arith.addf %108, %111 : vector<16x1xf32>
    %113 = math.rsqrt %112 : vector<16x1xf32>
    %114 = vector.broadcast %113 : vector<16x1xf32> to vector<16x32xf32>
    %115 = arith.mulf %110, %114 : vector<16x32xf32>
    %116 = vector.shape_cast %38 : vector<32xf32> to vector<1x32xf32>
    %117 = vector.broadcast %116 : vector<1x32xf32> to vector<16x32xf32>
    %118 = arith.mulf %115, %117 : vector<16x32xf32>
    %119 = vector.shape_cast %40 : vector<32xf32> to vector<1x32xf32>
    %120 = vector.broadcast %119 : vector<1x32xf32> to vector<16x32xf32>
    %121 = arith.addf %118, %120 : vector<16x32xf32>
    %c0_36 = arith.constant 0 : index
    %c4 = arith.constant 4 : index
    %c0_37 = arith.constant 0 : index
    %c0_38 = arith.constant 0 : index
    %122 = vector.load %arg2[%c0_36, %c4, %c0_37, %c0_38] : memref<2x8x32x32xbf16, #tpu.memory_space<vmem>>, vector<1x1x32x32xbf16>
    %123 = vector.shape_cast %122 : vector<1x1x32x32xbf16> to vector<32x32xbf16>
    %c0_39 = arith.constant 0 : index
    %c5 = arith.constant 5 : index
    %c0_40 = arith.constant 0 : index
    %c0_41 = arith.constant 0 : index
    %124 = vector.load %arg2[%c0_39, %c5, %c0_40, %c0_41] : memref<2x8x32x32xbf16, #tpu.memory_space<vmem>>, vector<1x1x32x32xbf16>
    %125 = vector.shape_cast %124 : vector<1x1x32x32xbf16> to vector<32x32xbf16>
    %c0_42 = arith.constant 0 : index
    %c6 = arith.constant 6 : index
    %c0_43 = arith.constant 0 : index
    %c0_44 = arith.constant 0 : index
    %126 = vector.load %arg2[%c0_42, %c6, %c0_43, %c0_44] : memref<2x8x32x32xbf16, #tpu.memory_space<vmem>>, vector<1x1x32x32xbf16>
    %127 = vector.shape_cast %126 : vector<1x1x32x32xbf16> to vector<32x32xbf16>
    %c0_45 = arith.constant 0 : index
    %c7 = arith.constant 7 : index
    %c0_46 = arith.constant 0 : index
    %c0_47 = arith.constant 0 : index
    %128 = vector.load %arg2[%c0_45, %c7, %c0_46, %c0_47] : memref<2x8x32x32xbf16, #tpu.memory_space<vmem>>, vector<1x1x32x32xbf16>
    %129 = vector.shape_cast %128 : vector<1x1x32x32xbf16> to vector<32x32xbf16>
    %130 = vector.extract_strided_slice %20 {offsets = [6, 0], sizes = [1, 32], strides = [1, 1]} : vector<16x128xf32> to vector<1x32xf32>
    %131 = vector.shape_cast %130 : vector<1x32xf32> to vector<32xf32>
    %132 = vector.extract_strided_slice %20 {offsets = [7, 0], sizes = [1, 32], strides = [1, 1]} : vector<16x128xf32> to vector<1x32xf32>
    %133 = vector.shape_cast %132 : vector<1x32xf32> to vector<32xf32>
    %134 = vector.extract_strided_slice %20 {offsets = [8, 0], sizes = [1, 32], strides = [1, 1]} : vector<16x128xf32> to vector<1x32xf32>
    %135 = vector.shape_cast %134 : vector<1x32xf32> to vector<32xf32>
    %136 = vector.extract_strided_slice %20 {offsets = [9, 0], sizes = [1, 32], strides = [1, 1]} : vector<16x128xf32> to vector<1x32xf32>
    %137 = vector.shape_cast %136 : vector<1x32xf32> to vector<32xf32>
    %138 = vector.extract_strided_slice %20 {offsets = [10, 0], sizes = [1, 32], strides = [1, 1]} : vector<16x128xf32> to vector<1x32xf32>
    %139 = vector.shape_cast %138 : vector<1x32xf32> to vector<32xf32>
    %140 = vector.extract_strided_slice %20 {offsets = [11, 0], sizes = [1, 32], strides = [1, 1]} : vector<16x128xf32> to vector<1x32xf32>
    %141 = vector.shape_cast %140 : vector<1x32xf32> to vector<32xf32>
    %142 = arith.truncf %121 : vector<16x32xf32> to vector<16x32xbf16>
    %cst_48 = arith.constant dense<0.000000e+00> : vector<16x32xf32>
    %143 = tpu.matmul %142, %123, %cst_48 {dimension_numbers = #tpu.dot_dimension_numbers<[1], [0], [0], [1], [0, 0, 1, 1], [], []>} : vector<16x32xbf16>, vector<32x32xbf16>, vector<16x32xf32> -> vector<16x32xf32>
    %144 = vector.shape_cast %131 : vector<32xf32> to vector<1x32xf32>
    %145 = vector.broadcast %144 : vector<1x32xf32> to vector<16x32xf32>
    %146 = arith.addf %143, %145 : vector<16x32xf32>
    %147 = arith.truncf %1 : vector<16x32xf32> to vector<16x32xbf16>
    %cst_49 = arith.constant dense<0.000000e+00> : vector<16x32xf32>
    %148 = tpu.matmul %147, %125, %cst_49 {dimension_numbers = #tpu.dot_dimension_numbers<[1], [0], [0], [1], [0, 0, 1, 1], [], []>} : vector<16x32xbf16>, vector<32x32xbf16>, vector<16x32xf32> -> vector<16x32xf32>
    %149 = vector.shape_cast %133 : vector<32xf32> to vector<1x32xf32>
    %150 = vector.broadcast %149 : vector<1x32xf32> to vector<16x32xf32>
    %151 = arith.addf %148, %150 : vector<16x32xf32>
    %152 = arith.truncf %1 : vector<16x32xf32> to vector<16x32xbf16>
    %cst_50 = arith.constant dense<0.000000e+00> : vector<16x32xf32>
    %153 = tpu.matmul %152, %127, %cst_50 {dimension_numbers = #tpu.dot_dimension_numbers<[1], [0], [0], [1], [0, 0, 1, 1], [], []>} : vector<16x32xbf16>, vector<32x32xbf16>, vector<16x32xf32> -> vector<16x32xf32>
    %154 = vector.shape_cast %135 : vector<32xf32> to vector<1x32xf32>
    %155 = vector.broadcast %154 : vector<1x32xf32> to vector<16x32xf32>
    %156 = arith.addf %153, %155 : vector<16x32xf32>
    %157 = vector.shape_cast %146 : vector<16x32xf32> to vector<2x8x32xf32>
    %158 = vector.shape_cast %151 : vector<16x32xf32> to vector<2x8x32xf32>
    %159 = vector.shape_cast %156 : vector<16x32xf32> to vector<2x8x32xf32>
    %160 = vector.shape_cast %157 : vector<2x8x32xf32> to vector<1x2x8x32xf32>
    %161 = vector.broadcast %160 : vector<1x2x8x32xf32> to vector<4x2x8x32xf32>
    %162 = vector.broadcast %18 : vector<4x1x1x32xf32> to vector<4x2x8x32xf32>
    %163 = arith.mulf %161, %162 : vector<4x2x8x32xf32>
    %164 = vector.shape_cast %163 : vector<4x2x8x32xf32> to vector<8x8x32xf32>
    %165 = arith.truncf %164 : vector<8x8x32xf32> to vector<8x8x32xbf16>
    %166 = vector.shape_cast %158 : vector<2x8x32xf32> to vector<1x2x8x32xf32>
    %167 = vector.shape_cast %166 : vector<1x2x8x32xf32> to vector<1x2x8x32xf32>
    %168 = vector.broadcast %167 : vector<1x2x8x32xf32> to vector<4x2x8x32xf32>
    %169 = vector.shape_cast %168 : vector<4x2x8x32xf32> to vector<8x8x32xf32>
    %170 = arith.truncf %169 : vector<8x8x32xf32> to vector<8x8x32xbf16>
    %171 = vector.shape_cast %159 : vector<2x8x32xf32> to vector<1x2x8x32xf32>
    %172 = vector.broadcast %171 : vector<1x2x8x32xf32> to vector<4x2x8x32xf32>
    %173 = vector.broadcast %16 : vector<4x1x1x32xf32> to vector<4x2x8x32xf32>
    %174 = arith.mulf %172, %173 : vector<4x2x8x32xf32>
    %175 = vector.shape_cast %174 : vector<4x2x8x32xf32> to vector<8x8x32xf32>
    %176 = arith.truncf %175 : vector<8x8x32xf32> to vector<8x8x32xbf16>
    "tpu.trace_start"() <{level = 10 : i32, message = "ntd,nsd->nts"}> : () -> ()
    %cst_51 = arith.constant dense<0.000000e+00> : vector<8x8x8xf32>
    %177 = tpu.matmul %165, %170, %cst_51 {dimension_numbers = #tpu.dot_dimension_numbers<[2], [2], [1], [1], [0, 0, 0, 1, 1, 1], [0], [0]>} : vector<8x8x32xbf16>, vector<8x8x32xbf16>, vector<8x8x8xf32> -> vector<8x8x8xf32>
    "tpu.trace_stop"() : () -> ()
    %cst_52 = arith.constant dense<0xFF800000> : vector<8x8xf32>
    %178 = vector.multi_reduction <maximumf>, %177, %cst_52 [2] : vector<8x8x8xf32> to vector<8x8xf32>
    %179 = vector.shape_cast %178 : vector<8x8xf32> to vector<8x8x1xf32>
    %180 = vector.broadcast %179 : vector<8x8x1xf32> to vector<8x8x8xf32>
    %181 = arith.subf %177, %180 : vector<8x8x8xf32>
    %182 = math.exp %181 : vector<8x8x8xf32>
    %cst_53 = arith.constant dense<0.000000e+00> : vector<8x8xf32>
    %183 = vector.multi_reduction <add>, %182, %cst_53 [2] : vector<8x8x8xf32> to vector<8x8xf32>
    %184 = vector.shape_cast %183 : vector<8x8xf32> to vector<8x8x1xf32>
    %185 = tpu.reciprocal %184 {approx = true} : vector<8x8x1xf32> -> vector<8x8x1xf32>
    %186 = vector.broadcast %185 : vector<8x8x1xf32> to vector<8x8x8xf32>
    %187 = arith.mulf %182, %186 : vector<8x8x8xf32>
    %188 = arith.truncf %187 : vector<8x8x8xf32> to vector<8x8x8xbf16>
    "tpu.trace_start"() <{level = 10 : i32, message = "nts,nsd->ntd"}> : () -> ()
    %cst_54 = arith.constant dense<0.000000e+00> : vector<8x8x32xf32>
    %189 = tpu.matmul %188, %176, %cst_54 {dimension_numbers = #tpu.dot_dimension_numbers<[2], [1], [1], [2], [0, 0, 0, 1, 1, 2], [0], [0]>} : vector<8x8x8xbf16>, vector<8x8x32xbf16>, vector<8x8x32xf32> -> vector<8x8x32xf32>
    "tpu.trace_stop"() : () -> ()
    %190 = vector.shape_cast %189 : vector<8x8x32xf32> to vector<4x2x8x32xf32>
    %cst_55 = arith.constant dense<0.000000e+00> : vector<2x8x32xf32>
    %191 = vector.multi_reduction <add>, %190, %cst_55 [0] : vector<4x2x8x32xf32> to vector<2x8x32xf32>
    %192 = vector.shape_cast %191 : vector<2x8x32xf32> to vector<16x32xf32>
    %193 = arith.truncf %192 : vector<16x32xf32> to vector<16x32xbf16>
    %cst_56 = arith.constant dense<0.000000e+00> : vector<16x32xf32>
    %194 = tpu.matmul %193, %129, %cst_56 {dimension_numbers = #tpu.dot_dimension_numbers<[1], [0], [0], [1], [0, 0, 1, 1], [], []>} : vector<16x32xbf16>, vector<32x32xbf16>, vector<16x32xf32> -> vector<16x32xf32>
    %195 = vector.shape_cast %137 : vector<32xf32> to vector<1x32xf32>
    %196 = vector.broadcast %195 : vector<1x32xf32> to vector<16x32xf32>
    %197 = arith.addf %194, %196 : vector<16x32xf32>
    %198 = arith.addf %121, %197 : vector<16x32xf32>
    %cst_57 = arith.constant dense<0.000000e+00> : vector<16xf32>
    %199 = vector.multi_reduction <add>, %198, %cst_57 [1] : vector<16x32xf32> to vector<16xf32>
    %200 = vector.shape_cast %199 : vector<16xf32> to vector<16x1xf32>
    %cst_58 = arith.constant 3.200000e+01 : f32
    %201 = vector.broadcast %cst_58 : f32 to vector<16x1xf32>
    %202 = arith.divf %200, %201 : vector<16x1xf32>
    %203 = vector.broadcast %202 : vector<16x1xf32> to vector<16x32xf32>
    %204 = arith.subf %198, %203 : vector<16x32xf32>
    %205 = arith.mulf %204, %204 : vector<16x32xf32>
    %cst_59 = arith.constant dense<0.000000e+00> : vector<16xf32>
    %206 = vector.multi_reduction <add>, %205, %cst_59 [1] : vector<16x32xf32> to vector<16xf32>
    %207 = vector.shape_cast %206 : vector<16xf32> to vector<16x1xf32>
    %cst_60 = arith.constant 3.200000e+01 : f32
    %208 = vector.broadcast %cst_60 : f32 to vector<16x1xf32>
    %209 = arith.divf %207, %208 : vector<16x1xf32>
    %210 = vector.broadcast %202 : vector<16x1xf32> to vector<16x32xf32>
    %211 = arith.subf %198, %210 : vector<16x32xf32>
    %cst_61 = arith.constant 9.99999974E-6 : f32
    %212 = vector.broadcast %cst_61 : f32 to vector<16x1xf32>
    %213 = arith.addf %209, %212 : vector<16x1xf32>
    %214 = math.rsqrt %213 : vector<16x1xf32>
    %215 = vector.broadcast %214 : vector<16x1xf32> to vector<16x32xf32>
    %216 = arith.mulf %211, %215 : vector<16x32xf32>
    %217 = vector.shape_cast %139 : vector<32xf32> to vector<1x32xf32>
    %218 = vector.broadcast %217 : vector<1x32xf32> to vector<16x32xf32>
    %219 = arith.mulf %216, %218 : vector<16x32xf32>
    %220 = vector.shape_cast %141 : vector<32xf32> to vector<1x32xf32>
    %221 = vector.broadcast %220 : vector<1x32xf32> to vector<16x32xf32>
    %222 = arith.addf %219, %221 : vector<16x32xf32>
    %c0_62 = arith.constant 0 : index
    %c0_63 = arith.constant 0 : index
    %c0_64 = arith.constant 0 : index
    %223 = vector.load %arg3[%c0_62, %c0_63, %c0_64] : memref<2x32x128xbf16, #tpu.memory_space<vmem>>, vector<1x32x128xbf16>
    %224 = vector.shape_cast %223 : vector<1x32x128xbf16> to vector<32x128xbf16>
    %225 = vector.extract_strided_slice %20 {offsets = [12, 0], sizes = [1, 64], strides = [1, 1]} : vector<16x128xf32> to vector<1x64xf32>
    %226 = vector.shape_cast %225 : vector<1x64xf32> to vector<64xf32>
    %227 = vector.extract_strided_slice %20 {offsets = [13, 0], sizes = [1, 32], strides = [1, 1]} : vector<16x128xf32> to vector<1x32xf32>
    %228 = vector.shape_cast %227 : vector<1x32xf32> to vector<32xf32>
    %229 = vector.extract_strided_slice %20 {offsets = [14, 0], sizes = [1, 32], strides = [1, 1]} : vector<16x128xf32> to vector<1x32xf32>
    %230 = vector.shape_cast %229 : vector<1x32xf32> to vector<32xf32>
    %231 = vector.extract_strided_slice %20 {offsets = [15, 0], sizes = [1, 32], strides = [1, 1]} : vector<16x128xf32> to vector<1x32xf32>
    %232 = vector.shape_cast %231 : vector<1x32xf32> to vector<32xf32>
    %233 = vector.extract_strided_slice %224 {offsets = [0, 0], sizes = [32, 64], strides = [1, 1]} : vector<32x128xbf16> to vector<32x64xbf16>
    %234 = vector.extract_strided_slice %224 {offsets = [0, 64], sizes = [32, 64], strides = [1, 1]} : vector<32x128xbf16> to vector<32x64xbf16>
    %235 = arith.truncf %222 : vector<16x32xf32> to vector<16x32xbf16>
    %cst_65 = arith.constant dense<0.000000e+00> : vector<16x64xf32>
    %236 = tpu.matmul %235, %233, %cst_65 {dimension_numbers = #tpu.dot_dimension_numbers<[1], [0], [0], [1], [0, 0, 1, 1], [], []>} : vector<16x32xbf16>, vector<32x64xbf16>, vector<16x64xf32> -> vector<16x64xf32>
    %237 = vector.shape_cast %226 : vector<64xf32> to vector<1x64xf32>
    %238 = vector.broadcast %237 : vector<1x64xf32> to vector<16x64xf32>
    %239 = arith.addf %236, %238 : vector<16x64xf32>
    %cst_66 = arith.constant 0.000000e+00 : f32
    %240 = vector.broadcast %cst_66 : f32 to vector<16x64xf32>
    %241 = arith.maximumf %239, %240 : vector<16x64xf32>
    %242 = arith.truncf %241 : vector<16x64xf32> to vector<16x64xbf16>
    %cst_67 = arith.constant dense<0.000000e+00> : vector<16x32xf32>
    %243 = tpu.matmul %242, %234, %cst_67 {dimension_numbers = #tpu.dot_dimension_numbers<[1], [1], [0], [0], [0, 0, 1, 0], [], []>} : vector<16x64xbf16>, vector<32x64xbf16>, vector<16x32xf32> -> vector<16x32xf32>
    %244 = vector.shape_cast %228 : vector<32xf32> to vector<1x32xf32>
    %245 = vector.broadcast %244 : vector<1x32xf32> to vector<16x32xf32>
    %246 = arith.addf %243, %245 : vector<16x32xf32>
    %247 = arith.addf %222, %246 : vector<16x32xf32>
    %cst_68 = arith.constant dense<0.000000e+00> : vector<16xf32>
    %248 = vector.multi_reduction <add>, %247, %cst_68 [1] : vector<16x32xf32> to vector<16xf32>
    %249 = vector.shape_cast %248 : vector<16xf32> to vector<16x1xf32>
    %cst_69 = arith.constant 3.200000e+01 : f32
    %250 = vector.broadcast %cst_69 : f32 to vector<16x1xf32>
    %251 = arith.divf %249, %250 : vector<16x1xf32>
    %252 = vector.broadcast %251 : vector<16x1xf32> to vector<16x32xf32>
    %253 = arith.subf %247, %252 : vector<16x32xf32>
    %254 = arith.mulf %253, %253 : vector<16x32xf32>
    %cst_70 = arith.constant dense<0.000000e+00> : vector<16xf32>
    %255 = vector.multi_reduction <add>, %254, %cst_70 [1] : vector<16x32xf32> to vector<16xf32>
    %256 = vector.shape_cast %255 : vector<16xf32> to vector<16x1xf32>
    %cst_71 = arith.constant 3.200000e+01 : f32
    %257 = vector.broadcast %cst_71 : f32 to vector<16x1xf32>
    %258 = arith.divf %256, %257 : vector<16x1xf32>
    %259 = vector.broadcast %251 : vector<16x1xf32> to vector<16x32xf32>
    %260 = arith.subf %247, %259 : vector<16x32xf32>
    %cst_72 = arith.constant 9.99999974E-6 : f32
    %261 = vector.broadcast %cst_72 : f32 to vector<16x1xf32>
    %262 = arith.addf %258, %261 : vector<16x1xf32>
    %263 = math.rsqrt %262 : vector<16x1xf32>
    %264 = vector.broadcast %263 : vector<16x1xf32> to vector<16x32xf32>
    %265 = arith.mulf %260, %264 : vector<16x32xf32>
    %266 = vector.shape_cast %230 : vector<32xf32> to vector<1x32xf32>
    %267 = vector.broadcast %266 : vector<1x32xf32> to vector<16x32xf32>
    %268 = arith.mulf %265, %267 : vector<16x32xf32>
    %269 = vector.shape_cast %232 : vector<32xf32> to vector<1x32xf32>
    %270 = vector.broadcast %269 : vector<1x32xf32> to vector<16x32xf32>
    %271 = arith.addf %268, %270 : vector<16x32xf32>
    %c1_73 = arith.constant 1 : index
    %c0_74 = arith.constant 0 : index
    %c0_75 = arith.constant 0 : index
    %272 = vector.load %arg4[%c1_73, %c0_74, %c0_75] : memref<2x16x128xf32, #tpu.memory_space<vmem>>, vector<1x16x128xf32>
    %273 = vector.shape_cast %272 : vector<1x16x128xf32> to vector<16x128xf32>
    %c1_76 = arith.constant 1 : index
    %c0_77 = arith.constant 0 : index
    %c0_78 = arith.constant 0 : index
    %c0_79 = arith.constant 0 : index
    %274 = vector.load %arg2[%c1_76, %c0_77, %c0_78, %c0_79] : memref<2x8x32x32xbf16, #tpu.memory_space<vmem>>, vector<1x1x32x32xbf16>
    %275 = vector.shape_cast %274 : vector<1x1x32x32xbf16> to vector<32x32xbf16>
    %c1_80 = arith.constant 1 : index
    %c1_81 = arith.constant 1 : index
    %c0_82 = arith.constant 0 : index
    %c0_83 = arith.constant 0 : index
    %276 = vector.load %arg2[%c1_80, %c1_81, %c0_82, %c0_83] : memref<2x8x32x32xbf16, #tpu.memory_space<vmem>>, vector<1x1x32x32xbf16>
    %277 = vector.shape_cast %276 : vector<1x1x32x32xbf16> to vector<32x32xbf16>
    %c1_84 = arith.constant 1 : index
    %c2_85 = arith.constant 2 : index
    %c0_86 = arith.constant 0 : index
    %c0_87 = arith.constant 0 : index
    %278 = vector.load %arg2[%c1_84, %c2_85, %c0_86, %c0_87] : memref<2x8x32x32xbf16, #tpu.memory_space<vmem>>, vector<1x1x32x32xbf16>
    %279 = vector.shape_cast %278 : vector<1x1x32x32xbf16> to vector<32x32xbf16>
    %c1_88 = arith.constant 1 : index
    %c3_89 = arith.constant 3 : index
    %c0_90 = arith.constant 0 : index
    %c0_91 = arith.constant 0 : index
    %280 = vector.load %arg2[%c1_88, %c3_89, %c0_90, %c0_91] : memref<2x8x32x32xbf16, #tpu.memory_space<vmem>>, vector<1x1x32x32xbf16>
    %281 = vector.shape_cast %280 : vector<1x1x32x32xbf16> to vector<32x32xbf16>
    %282 = vector.extract_strided_slice %273 {offsets = [0, 0], sizes = [1, 32], strides = [1, 1]} : vector<16x128xf32> to vector<1x32xf32>
    %283 = vector.shape_cast %282 : vector<1x32xf32> to vector<32xf32>
    %284 = vector.extract_strided_slice %273 {offsets = [1, 0], sizes = [1, 32], strides = [1, 1]} : vector<16x128xf32> to vector<1x32xf32>
    %285 = vector.shape_cast %284 : vector<1x32xf32> to vector<32xf32>
    %286 = vector.extract_strided_slice %273 {offsets = [2, 0], sizes = [1, 32], strides = [1, 1]} : vector<16x128xf32> to vector<1x32xf32>
    %287 = vector.shape_cast %286 : vector<1x32xf32> to vector<32xf32>
    %288 = vector.extract_strided_slice %273 {offsets = [3, 0], sizes = [1, 32], strides = [1, 1]} : vector<16x128xf32> to vector<1x32xf32>
    %289 = vector.shape_cast %288 : vector<1x32xf32> to vector<32xf32>
    %290 = vector.extract_strided_slice %273 {offsets = [4, 0], sizes = [1, 32], strides = [1, 1]} : vector<16x128xf32> to vector<1x32xf32>
    %291 = vector.shape_cast %290 : vector<1x32xf32> to vector<32xf32>
    %292 = vector.extract_strided_slice %273 {offsets = [5, 0], sizes = [1, 32], strides = [1, 1]} : vector<16x128xf32> to vector<1x32xf32>
    %293 = vector.shape_cast %292 : vector<1x32xf32> to vector<32xf32>
    %294 = arith.truncf %271 : vector<16x32xf32> to vector<16x32xbf16>
    %cst_92 = arith.constant dense<0.000000e+00> : vector<16x32xf32>
    %295 = tpu.matmul %294, %275, %cst_92 {dimension_numbers = #tpu.dot_dimension_numbers<[1], [0], [0], [1], [0, 0, 1, 1], [], []>} : vector<16x32xbf16>, vector<32x32xbf16>, vector<16x32xf32> -> vector<16x32xf32>
    %296 = vector.shape_cast %283 : vector<32xf32> to vector<1x32xf32>
    %297 = vector.broadcast %296 : vector<1x32xf32> to vector<16x32xf32>
    %298 = arith.addf %295, %297 : vector<16x32xf32>
    %299 = arith.truncf %271 : vector<16x32xf32> to vector<16x32xbf16>
    %cst_93 = arith.constant dense<0.000000e+00> : vector<16x32xf32>
    %300 = tpu.matmul %299, %277, %cst_93 {dimension_numbers = #tpu.dot_dimension_numbers<[1], [0], [0], [1], [0, 0, 1, 1], [], []>} : vector<16x32xbf16>, vector<32x32xbf16>, vector<16x32xf32> -> vector<16x32xf32>
    %301 = vector.shape_cast %285 : vector<32xf32> to vector<1x32xf32>
    %302 = vector.broadcast %301 : vector<1x32xf32> to vector<16x32xf32>
    %303 = arith.addf %300, %302 : vector<16x32xf32>
    %304 = arith.truncf %271 : vector<16x32xf32> to vector<16x32xbf16>
    %cst_94 = arith.constant dense<0.000000e+00> : vector<16x32xf32>
    %305 = tpu.matmul %304, %279, %cst_94 {dimension_numbers = #tpu.dot_dimension_numbers<[1], [0], [0], [1], [0, 0, 1, 1], [], []>} : vector<16x32xbf16>, vector<32x32xbf16>, vector<16x32xf32> -> vector<16x32xf32>
    %306 = vector.shape_cast %287 : vector<32xf32> to vector<1x32xf32>
    %307 = vector.broadcast %306 : vector<1x32xf32> to vector<16x32xf32>
    %308 = arith.addf %305, %307 : vector<16x32xf32>
    %309 = vector.shape_cast %298 : vector<16x32xf32> to vector<2x8x32xf32>
    %310 = vector.shape_cast %303 : vector<16x32xf32> to vector<2x8x32xf32>
    %311 = vector.shape_cast %308 : vector<16x32xf32> to vector<2x8x32xf32>
    %312 = vector.shape_cast %309 : vector<2x8x32xf32> to vector<1x2x8x32xf32>
    %313 = vector.broadcast %312 : vector<1x2x8x32xf32> to vector<4x2x8x32xf32>
    %314 = vector.broadcast %18 : vector<4x1x1x32xf32> to vector<4x2x8x32xf32>
    %315 = arith.mulf %313, %314 : vector<4x2x8x32xf32>
    %316 = vector.shape_cast %315 : vector<4x2x8x32xf32> to vector<8x8x32xf32>
    %317 = arith.truncf %316 : vector<8x8x32xf32> to vector<8x8x32xbf16>
    %318 = vector.shape_cast %310 : vector<2x8x32xf32> to vector<1x2x8x32xf32>
    %319 = vector.shape_cast %318 : vector<1x2x8x32xf32> to vector<1x2x8x32xf32>
    %320 = vector.broadcast %319 : vector<1x2x8x32xf32> to vector<4x2x8x32xf32>
    %321 = vector.shape_cast %320 : vector<4x2x8x32xf32> to vector<8x8x32xf32>
    %322 = arith.truncf %321 : vector<8x8x32xf32> to vector<8x8x32xbf16>
    %323 = vector.shape_cast %311 : vector<2x8x32xf32> to vector<1x2x8x32xf32>
    %324 = vector.broadcast %323 : vector<1x2x8x32xf32> to vector<4x2x8x32xf32>
    %325 = vector.broadcast %16 : vector<4x1x1x32xf32> to vector<4x2x8x32xf32>
    %326 = arith.mulf %324, %325 : vector<4x2x8x32xf32>
    %327 = vector.shape_cast %326 : vector<4x2x8x32xf32> to vector<8x8x32xf32>
    %328 = arith.truncf %327 : vector<8x8x32xf32> to vector<8x8x32xbf16>
    "tpu.trace_start"() <{level = 10 : i32, message = "ntd,nsd->nts"}> : () -> ()
    %cst_95 = arith.constant dense<0.000000e+00> : vector<8x8x8xf32>
    %329 = tpu.matmul %317, %322, %cst_95 {dimension_numbers = #tpu.dot_dimension_numbers<[2], [2], [1], [1], [0, 0, 0, 1, 1, 1], [0], [0]>} : vector<8x8x32xbf16>, vector<8x8x32xbf16>, vector<8x8x8xf32> -> vector<8x8x8xf32>
    "tpu.trace_stop"() : () -> ()
    %cst_96 = arith.constant dense<0xFF800000> : vector<8x8xf32>
    %330 = vector.multi_reduction <maximumf>, %329, %cst_96 [2] : vector<8x8x8xf32> to vector<8x8xf32>
    %331 = vector.shape_cast %330 : vector<8x8xf32> to vector<8x8x1xf32>
    %332 = vector.broadcast %331 : vector<8x8x1xf32> to vector<8x8x8xf32>
    %333 = arith.subf %329, %332 : vector<8x8x8xf32>
    %334 = math.exp %333 : vector<8x8x8xf32>
    %cst_97 = arith.constant dense<0.000000e+00> : vector<8x8xf32>
    %335 = vector.multi_reduction <add>, %334, %cst_97 [2] : vector<8x8x8xf32> to vector<8x8xf32>
    %336 = vector.shape_cast %335 : vector<8x8xf32> to vector<8x8x1xf32>
    %337 = tpu.reciprocal %336 {approx = true} : vector<8x8x1xf32> -> vector<8x8x1xf32>
    %338 = vector.broadcast %337 : vector<8x8x1xf32> to vector<8x8x8xf32>
    %339 = arith.mulf %334, %338 : vector<8x8x8xf32>
    %340 = arith.truncf %339 : vector<8x8x8xf32> to vector<8x8x8xbf16>
    "tpu.trace_start"() <{level = 10 : i32, message = "nts,nsd->ntd"}> : () -> ()
    %cst_98 = arith.constant dense<0.000000e+00> : vector<8x8x32xf32>
    %341 = tpu.matmul %340, %328, %cst_98 {dimension_numbers = #tpu.dot_dimension_numbers<[2], [1], [1], [2], [0, 0, 0, 1, 1, 2], [0], [0]>} : vector<8x8x8xbf16>, vector<8x8x32xbf16>, vector<8x8x32xf32> -> vector<8x8x32xf32>
    "tpu.trace_stop"() : () -> ()
    %342 = vector.shape_cast %341 : vector<8x8x32xf32> to vector<4x2x8x32xf32>
    %cst_99 = arith.constant dense<0.000000e+00> : vector<2x8x32xf32>
    %343 = vector.multi_reduction <add>, %342, %cst_99 [0] : vector<4x2x8x32xf32> to vector<2x8x32xf32>
    %344 = vector.shape_cast %343 : vector<2x8x32xf32> to vector<16x32xf32>
    %345 = arith.truncf %344 : vector<16x32xf32> to vector<16x32xbf16>
    %cst_100 = arith.constant dense<0.000000e+00> : vector<16x32xf32>
    %346 = tpu.matmul %345, %281, %cst_100 {dimension_numbers = #tpu.dot_dimension_numbers<[1], [0], [0], [1], [0, 0, 1, 1], [], []>} : vector<16x32xbf16>, vector<32x32xbf16>, vector<16x32xf32> -> vector<16x32xf32>
    %347 = vector.shape_cast %289 : vector<32xf32> to vector<1x32xf32>
    %348 = vector.broadcast %347 : vector<1x32xf32> to vector<16x32xf32>
    %349 = arith.addf %346, %348 : vector<16x32xf32>
    %350 = arith.addf %271, %349 : vector<16x32xf32>
    %cst_101 = arith.constant dense<0.000000e+00> : vector<16xf32>
    %351 = vector.multi_reduction <add>, %350, %cst_101 [1] : vector<16x32xf32> to vector<16xf32>
    %352 = vector.shape_cast %351 : vector<16xf32> to vector<16x1xf32>
    %cst_102 = arith.constant 3.200000e+01 : f32
    %353 = vector.broadcast %cst_102 : f32 to vector<16x1xf32>
    %354 = arith.divf %352, %353 : vector<16x1xf32>
    %355 = vector.broadcast %354 : vector<16x1xf32> to vector<16x32xf32>
    %356 = arith.subf %350, %355 : vector<16x32xf32>
    %357 = arith.mulf %356, %356 : vector<16x32xf32>
    %cst_103 = arith.constant dense<0.000000e+00> : vector<16xf32>
    %358 = vector.multi_reduction <add>, %357, %cst_103 [1] : vector<16x32xf32> to vector<16xf32>
    %359 = vector.shape_cast %358 : vector<16xf32> to vector<16x1xf32>
    %cst_104 = arith.constant 3.200000e+01 : f32
    %360 = vector.broadcast %cst_104 : f32 to vector<16x1xf32>
    %361 = arith.divf %359, %360 : vector<16x1xf32>
    %362 = vector.broadcast %354 : vector<16x1xf32> to vector<16x32xf32>
    %363 = arith.subf %350, %362 : vector<16x32xf32>
    %cst_105 = arith.constant 9.99999974E-6 : f32
    %364 = vector.broadcast %cst_105 : f32 to vector<16x1xf32>
    %365 = arith.addf %361, %364 : vector<16x1xf32>
    %366 = math.rsqrt %365 : vector<16x1xf32>
    %367 = vector.broadcast %366 : vector<16x1xf32> to vector<16x32xf32>
    %368 = arith.mulf %363, %367 : vector<16x32xf32>
    %369 = vector.shape_cast %291 : vector<32xf32> to vector<1x32xf32>
    %370 = vector.broadcast %369 : vector<1x32xf32> to vector<16x32xf32>
    %371 = arith.mulf %368, %370 : vector<16x32xf32>
    %372 = vector.shape_cast %293 : vector<32xf32> to vector<1x32xf32>
    %373 = vector.broadcast %372 : vector<1x32xf32> to vector<16x32xf32>
    %374 = arith.addf %371, %373 : vector<16x32xf32>
    %c1_106 = arith.constant 1 : index
    %c4_107 = arith.constant 4 : index
    %c0_108 = arith.constant 0 : index
    %c0_109 = arith.constant 0 : index
    %375 = vector.load %arg2[%c1_106, %c4_107, %c0_108, %c0_109] : memref<2x8x32x32xbf16, #tpu.memory_space<vmem>>, vector<1x1x32x32xbf16>
    %376 = vector.shape_cast %375 : vector<1x1x32x32xbf16> to vector<32x32xbf16>
    %c1_110 = arith.constant 1 : index
    %c5_111 = arith.constant 5 : index
    %c0_112 = arith.constant 0 : index
    %c0_113 = arith.constant 0 : index
    %377 = vector.load %arg2[%c1_110, %c5_111, %c0_112, %c0_113] : memref<2x8x32x32xbf16, #tpu.memory_space<vmem>>, vector<1x1x32x32xbf16>
    %378 = vector.shape_cast %377 : vector<1x1x32x32xbf16> to vector<32x32xbf16>
    %c1_114 = arith.constant 1 : index
    %c6_115 = arith.constant 6 : index
    %c0_116 = arith.constant 0 : index
    %c0_117 = arith.constant 0 : index
    %379 = vector.load %arg2[%c1_114, %c6_115, %c0_116, %c0_117] : memref<2x8x32x32xbf16, #tpu.memory_space<vmem>>, vector<1x1x32x32xbf16>
    %380 = vector.shape_cast %379 : vector<1x1x32x32xbf16> to vector<32x32xbf16>
    %c1_118 = arith.constant 1 : index
    %c7_119 = arith.constant 7 : index
    %c0_120 = arith.constant 0 : index
    %c0_121 = arith.constant 0 : index
    %381 = vector.load %arg2[%c1_118, %c7_119, %c0_120, %c0_121] : memref<2x8x32x32xbf16, #tpu.memory_space<vmem>>, vector<1x1x32x32xbf16>
    %382 = vector.shape_cast %381 : vector<1x1x32x32xbf16> to vector<32x32xbf16>
    %383 = vector.extract_strided_slice %273 {offsets = [6, 0], sizes = [1, 32], strides = [1, 1]} : vector<16x128xf32> to vector<1x32xf32>
    %384 = vector.shape_cast %383 : vector<1x32xf32> to vector<32xf32>
    %385 = vector.extract_strided_slice %273 {offsets = [7, 0], sizes = [1, 32], strides = [1, 1]} : vector<16x128xf32> to vector<1x32xf32>
    %386 = vector.shape_cast %385 : vector<1x32xf32> to vector<32xf32>
    %387 = vector.extract_strided_slice %273 {offsets = [8, 0], sizes = [1, 32], strides = [1, 1]} : vector<16x128xf32> to vector<1x32xf32>
    %388 = vector.shape_cast %387 : vector<1x32xf32> to vector<32xf32>
    %389 = vector.extract_strided_slice %273 {offsets = [9, 0], sizes = [1, 32], strides = [1, 1]} : vector<16x128xf32> to vector<1x32xf32>
    %390 = vector.shape_cast %389 : vector<1x32xf32> to vector<32xf32>
    %391 = vector.extract_strided_slice %273 {offsets = [10, 0], sizes = [1, 32], strides = [1, 1]} : vector<16x128xf32> to vector<1x32xf32>
    %392 = vector.shape_cast %391 : vector<1x32xf32> to vector<32xf32>
    %393 = vector.extract_strided_slice %273 {offsets = [11, 0], sizes = [1, 32], strides = [1, 1]} : vector<16x128xf32> to vector<1x32xf32>
    %394 = vector.shape_cast %393 : vector<1x32xf32> to vector<32xf32>
    %395 = arith.truncf %374 : vector<16x32xf32> to vector<16x32xbf16>
    %cst_122 = arith.constant dense<0.000000e+00> : vector<16x32xf32>
    %396 = tpu.matmul %395, %376, %cst_122 {dimension_numbers = #tpu.dot_dimension_numbers<[1], [0], [0], [1], [0, 0, 1, 1], [], []>} : vector<16x32xbf16>, vector<32x32xbf16>, vector<16x32xf32> -> vector<16x32xf32>
    %397 = vector.shape_cast %384 : vector<32xf32> to vector<1x32xf32>
    %398 = vector.broadcast %397 : vector<1x32xf32> to vector<16x32xf32>
    %399 = arith.addf %396, %398 : vector<16x32xf32>
    %400 = arith.truncf %1 : vector<16x32xf32> to vector<16x32xbf16>
    %cst_123 = arith.constant dense<0.000000e+00> : vector<16x32xf32>
    %401 = tpu.matmul %400, %378, %cst_123 {dimension_numbers = #tpu.dot_dimension_numbers<[1], [0], [0], [1], [0, 0, 1, 1], [], []>} : vector<16x32xbf16>, vector<32x32xbf16>, vector<16x32xf32> -> vector<16x32xf32>
    %402 = vector.shape_cast %386 : vector<32xf32> to vector<1x32xf32>
    %403 = vector.broadcast %402 : vector<1x32xf32> to vector<16x32xf32>
    %404 = arith.addf %401, %403 : vector<16x32xf32>
    %405 = arith.truncf %1 : vector<16x32xf32> to vector<16x32xbf16>
    %cst_124 = arith.constant dense<0.000000e+00> : vector<16x32xf32>
    %406 = tpu.matmul %405, %380, %cst_124 {dimension_numbers = #tpu.dot_dimension_numbers<[1], [0], [0], [1], [0, 0, 1, 1], [], []>} : vector<16x32xbf16>, vector<32x32xbf16>, vector<16x32xf32> -> vector<16x32xf32>
    %407 = vector.shape_cast %388 : vector<32xf32> to vector<1x32xf32>
    %408 = vector.broadcast %407 : vector<1x32xf32> to vector<16x32xf32>
    %409 = arith.addf %406, %408 : vector<16x32xf32>
    %410 = vector.shape_cast %399 : vector<16x32xf32> to vector<2x8x32xf32>
    %411 = vector.shape_cast %404 : vector<16x32xf32> to vector<2x8x32xf32>
    %412 = vector.shape_cast %409 : vector<16x32xf32> to vector<2x8x32xf32>
    %413 = vector.shape_cast %410 : vector<2x8x32xf32> to vector<1x2x8x32xf32>
    %414 = vector.broadcast %413 : vector<1x2x8x32xf32> to vector<4x2x8x32xf32>
    %415 = vector.broadcast %18 : vector<4x1x1x32xf32> to vector<4x2x8x32xf32>
    %416 = arith.mulf %414, %415 : vector<4x2x8x32xf32>
    %417 = vector.shape_cast %416 : vector<4x2x8x32xf32> to vector<8x8x32xf32>
    %418 = arith.truncf %417 : vector<8x8x32xf32> to vector<8x8x32xbf16>
    %419 = vector.shape_cast %411 : vector<2x8x32xf32> to vector<1x2x8x32xf32>
    %420 = vector.shape_cast %419 : vector<1x2x8x32xf32> to vector<1x2x8x32xf32>
    %421 = vector.broadcast %420 : vector<1x2x8x32xf32> to vector<4x2x8x32xf32>
    %422 = vector.shape_cast %421 : vector<4x2x8x32xf32> to vector<8x8x32xf32>
    %423 = arith.truncf %422 : vector<8x8x32xf32> to vector<8x8x32xbf16>
    %424 = vector.shape_cast %412 : vector<2x8x32xf32> to vector<1x2x8x32xf32>
    %425 = vector.broadcast %424 : vector<1x2x8x32xf32> to vector<4x2x8x32xf32>
    %426 = vector.broadcast %16 : vector<4x1x1x32xf32> to vector<4x2x8x32xf32>
    %427 = arith.mulf %425, %426 : vector<4x2x8x32xf32>
    %428 = vector.shape_cast %427 : vector<4x2x8x32xf32> to vector<8x8x32xf32>
    %429 = arith.truncf %428 : vector<8x8x32xf32> to vector<8x8x32xbf16>
    "tpu.trace_start"() <{level = 10 : i32, message = "ntd,nsd->nts"}> : () -> ()
    %cst_125 = arith.constant dense<0.000000e+00> : vector<8x8x8xf32>
    %430 = tpu.matmul %418, %423, %cst_125 {dimension_numbers = #tpu.dot_dimension_numbers<[2], [2], [1], [1], [0, 0, 0, 1, 1, 1], [0], [0]>} : vector<8x8x32xbf16>, vector<8x8x32xbf16>, vector<8x8x8xf32> -> vector<8x8x8xf32>
    "tpu.trace_stop"() : () -> ()
    %cst_126 = arith.constant dense<0xFF800000> : vector<8x8xf32>
    %431 = vector.multi_reduction <maximumf>, %430, %cst_126 [2] : vector<8x8x8xf32> to vector<8x8xf32>
    %432 = vector.shape_cast %431 : vector<8x8xf32> to vector<8x8x1xf32>
    %433 = vector.broadcast %432 : vector<8x8x1xf32> to vector<8x8x8xf32>
    %434 = arith.subf %430, %433 : vector<8x8x8xf32>
    %435 = math.exp %434 : vector<8x8x8xf32>
    %cst_127 = arith.constant dense<0.000000e+00> : vector<8x8xf32>
    %436 = vector.multi_reduction <add>, %435, %cst_127 [2] : vector<8x8x8xf32> to vector<8x8xf32>
    %437 = vector.shape_cast %436 : vector<8x8xf32> to vector<8x8x1xf32>
    %438 = tpu.reciprocal %437 {approx = true} : vector<8x8x1xf32> -> vector<8x8x1xf32>
    %439 = vector.broadcast %438 : vector<8x8x1xf32> to vector<8x8x8xf32>
    %440 = arith.mulf %435, %439 : vector<8x8x8xf32>
    %441 = arith.truncf %440 : vector<8x8x8xf32> to vector<8x8x8xbf16>
    "tpu.trace_start"() <{level = 10 : i32, message = "nts,nsd->ntd"}> : () -> ()
    %cst_128 = arith.constant dense<0.000000e+00> : vector<8x8x32xf32>
    %442 = tpu.matmul %441, %429, %cst_128 {dimension_numbers = #tpu.dot_dimension_numbers<[2], [1], [1], [2], [0, 0, 0, 1, 1, 2], [0], [0]>} : vector<8x8x8xbf16>, vector<8x8x32xbf16>, vector<8x8x32xf32> -> vector<8x8x32xf32>
    "tpu.trace_stop"() : () -> ()
    %443 = vector.shape_cast %442 : vector<8x8x32xf32> to vector<4x2x8x32xf32>
    %cst_129 = arith.constant dense<0.000000e+00> : vector<2x8x32xf32>
    %444 = vector.multi_reduction <add>, %443, %cst_129 [0] : vector<4x2x8x32xf32> to vector<2x8x32xf32>
    %445 = vector.shape_cast %444 : vector<2x8x32xf32> to vector<16x32xf32>
    %446 = arith.truncf %445 : vector<16x32xf32> to vector<16x32xbf16>
    %cst_130 = arith.constant dense<0.000000e+00> : vector<16x32xf32>
    %447 = tpu.matmul %446, %382, %cst_130 {dimension_numbers = #tpu.dot_dimension_numbers<[1], [0], [0], [1], [0, 0, 1, 1], [], []>} : vector<16x32xbf16>, vector<32x32xbf16>, vector<16x32xf32> -> vector<16x32xf32>
    %448 = vector.shape_cast %390 : vector<32xf32> to vector<1x32xf32>
    %449 = vector.broadcast %448 : vector<1x32xf32> to vector<16x32xf32>
    %450 = arith.addf %447, %449 : vector<16x32xf32>
    %451 = arith.addf %374, %450 : vector<16x32xf32>
    %cst_131 = arith.constant dense<0.000000e+00> : vector<16xf32>
    %452 = vector.multi_reduction <add>, %451, %cst_131 [1] : vector<16x32xf32> to vector<16xf32>
    %453 = vector.shape_cast %452 : vector<16xf32> to vector<16x1xf32>
    %cst_132 = arith.constant 3.200000e+01 : f32
    %454 = vector.broadcast %cst_132 : f32 to vector<16x1xf32>
    %455 = arith.divf %453, %454 : vector<16x1xf32>
    %456 = vector.broadcast %455 : vector<16x1xf32> to vector<16x32xf32>
    %457 = arith.subf %451, %456 : vector<16x32xf32>
    %458 = arith.mulf %457, %457 : vector<16x32xf32>
    %cst_133 = arith.constant dense<0.000000e+00> : vector<16xf32>
    %459 = vector.multi_reduction <add>, %458, %cst_133 [1] : vector<16x32xf32> to vector<16xf32>
    %460 = vector.shape_cast %459 : vector<16xf32> to vector<16x1xf32>
    %cst_134 = arith.constant 3.200000e+01 : f32
    %461 = vector.broadcast %cst_134 : f32 to vector<16x1xf32>
    %462 = arith.divf %460, %461 : vector<16x1xf32>
    %463 = vector.broadcast %455 : vector<16x1xf32> to vector<16x32xf32>
    %464 = arith.subf %451, %463 : vector<16x32xf32>
    %cst_135 = arith.constant 9.99999974E-6 : f32
    %465 = vector.broadcast %cst_135 : f32 to vector<16x1xf32>
    %466 = arith.addf %462, %465 : vector<16x1xf32>
    %467 = math.rsqrt %466 : vector<16x1xf32>
    %468 = vector.broadcast %467 : vector<16x1xf32> to vector<16x32xf32>
    %469 = arith.mulf %464, %468 : vector<16x32xf32>
    %470 = vector.shape_cast %392 : vector<32xf32> to vector<1x32xf32>
    %471 = vector.broadcast %470 : vector<1x32xf32> to vector<16x32xf32>
    %472 = arith.mulf %469, %471 : vector<16x32xf32>
    %473 = vector.shape_cast %394 : vector<32xf32> to vector<1x32xf32>
    %474 = vector.broadcast %473 : vector<1x32xf32> to vector<16x32xf32>
    %475 = arith.addf %472, %474 : vector<16x32xf32>
    %c1_136 = arith.constant 1 : index
    %c0_137 = arith.constant 0 : index
    %c0_138 = arith.constant 0 : index
    %476 = vector.load %arg3[%c1_136, %c0_137, %c0_138] : memref<2x32x128xbf16, #tpu.memory_space<vmem>>, vector<1x32x128xbf16>
    %477 = vector.shape_cast %476 : vector<1x32x128xbf16> to vector<32x128xbf16>
    %478 = vector.extract_strided_slice %273 {offsets = [12, 0], sizes = [1, 64], strides = [1, 1]} : vector<16x128xf32> to vector<1x64xf32>
    %479 = vector.shape_cast %478 : vector<1x64xf32> to vector<64xf32>
    %480 = vector.extract_strided_slice %273 {offsets = [13, 0], sizes = [1, 32], strides = [1, 1]} : vector<16x128xf32> to vector<1x32xf32>
    %481 = vector.shape_cast %480 : vector<1x32xf32> to vector<32xf32>
    %482 = vector.extract_strided_slice %273 {offsets = [14, 0], sizes = [1, 32], strides = [1, 1]} : vector<16x128xf32> to vector<1x32xf32>
    %483 = vector.shape_cast %482 : vector<1x32xf32> to vector<32xf32>
    %484 = vector.extract_strided_slice %273 {offsets = [15, 0], sizes = [1, 32], strides = [1, 1]} : vector<16x128xf32> to vector<1x32xf32>
    %485 = vector.shape_cast %484 : vector<1x32xf32> to vector<32xf32>
    %486 = vector.extract_strided_slice %477 {offsets = [0, 0], sizes = [32, 64], strides = [1, 1]} : vector<32x128xbf16> to vector<32x64xbf16>
    %487 = vector.extract_strided_slice %477 {offsets = [0, 64], sizes = [32, 64], strides = [1, 1]} : vector<32x128xbf16> to vector<32x64xbf16>
    %488 = arith.truncf %475 : vector<16x32xf32> to vector<16x32xbf16>
    %cst_139 = arith.constant dense<0.000000e+00> : vector<16x64xf32>
    %489 = tpu.matmul %488, %486, %cst_139 {dimension_numbers = #tpu.dot_dimension_numbers<[1], [0], [0], [1], [0, 0, 1, 1], [], []>} : vector<16x32xbf16>, vector<32x64xbf16>, vector<16x64xf32> -> vector<16x64xf32>
    %490 = vector.shape_cast %479 : vector<64xf32> to vector<1x64xf32>
    %491 = vector.broadcast %490 : vector<1x64xf32> to vector<16x64xf32>
    %492 = arith.addf %489, %491 : vector<16x64xf32>
    %cst_140 = arith.constant 0.000000e+00 : f32
    %493 = vector.broadcast %cst_140 : f32 to vector<16x64xf32>
    %494 = arith.maximumf %492, %493 : vector<16x64xf32>
    %495 = arith.truncf %494 : vector<16x64xf32> to vector<16x64xbf16>
    %cst_141 = arith.constant dense<0.000000e+00> : vector<16x32xf32>
    %496 = tpu.matmul %495, %487, %cst_141 {dimension_numbers = #tpu.dot_dimension_numbers<[1], [1], [0], [0], [0, 0, 1, 0], [], []>} : vector<16x64xbf16>, vector<32x64xbf16>, vector<16x32xf32> -> vector<16x32xf32>
    %497 = vector.shape_cast %481 : vector<32xf32> to vector<1x32xf32>
    %498 = vector.broadcast %497 : vector<1x32xf32> to vector<16x32xf32>
    %499 = arith.addf %496, %498 : vector<16x32xf32>
    %500 = arith.addf %475, %499 : vector<16x32xf32>
    %cst_142 = arith.constant dense<0.000000e+00> : vector<16xf32>
    %501 = vector.multi_reduction <add>, %500, %cst_142 [1] : vector<16x32xf32> to vector<16xf32>
    %502 = vector.shape_cast %501 : vector<16xf32> to vector<16x1xf32>
    %cst_143 = arith.constant 3.200000e+01 : f32
    %503 = vector.broadcast %cst_143 : f32 to vector<16x1xf32>
    %504 = arith.divf %502, %503 : vector<16x1xf32>
    %505 = vector.broadcast %504 : vector<16x1xf32> to vector<16x32xf32>
    %506 = arith.subf %500, %505 : vector<16x32xf32>
    %507 = arith.mulf %506, %506 : vector<16x32xf32>
    %cst_144 = arith.constant dense<0.000000e+00> : vector<16xf32>
    %508 = vector.multi_reduction <add>, %507, %cst_144 [1] : vector<16x32xf32> to vector<16xf32>
    %509 = vector.shape_cast %508 : vector<16xf32> to vector<16x1xf32>
    %cst_145 = arith.constant 3.200000e+01 : f32
    %510 = vector.broadcast %cst_145 : f32 to vector<16x1xf32>
    %511 = arith.divf %509, %510 : vector<16x1xf32>
    %512 = vector.broadcast %504 : vector<16x1xf32> to vector<16x32xf32>
    %513 = arith.subf %500, %512 : vector<16x32xf32>
    %cst_146 = arith.constant 9.99999974E-6 : f32
    %514 = vector.broadcast %cst_146 : f32 to vector<16x1xf32>
    %515 = arith.addf %511, %514 : vector<16x1xf32>
    %516 = math.rsqrt %515 : vector<16x1xf32>
    %517 = vector.broadcast %516 : vector<16x1xf32> to vector<16x32xf32>
    %518 = arith.mulf %513, %517 : vector<16x32xf32>
    %519 = vector.shape_cast %483 : vector<32xf32> to vector<1x32xf32>
    %520 = vector.broadcast %519 : vector<1x32xf32> to vector<16x32xf32>
    %521 = arith.mulf %518, %520 : vector<16x32xf32>
    %522 = vector.shape_cast %485 : vector<32xf32> to vector<1x32xf32>
    %523 = vector.broadcast %522 : vector<1x32xf32> to vector<16x32xf32>
    %524 = arith.addf %521, %523 : vector<16x32xf32>
    %525 = vector.shape_cast %524 : vector<16x32xf32> to vector<2x8x32xf32>
    %c0_147 = arith.constant 0 : index
    %c0_148 = arith.constant 0 : index
    %c0_149 = arith.constant 0 : index
    %526 = vector.load %arg5[%c0_147, %c0_148, %c0_149] : memref<2x8x32xf32, #tpu.memory_space<vmem>>, vector<2x8x32xf32>
    tpu.vector_store %arg5[%c0_147, %c0_148, %c0_149], %525 {strides = array<i32>} : memref<2x8x32xf32, #tpu.memory_space<vmem>>, vector<2x8x32xf32>,
    return
  }
}

</mosaic_0001>

<bundles_post_ra>
// kernel: tpu_custom_call.1
= control target key start
LH: loop header
LB: loop body
LE: loop exit
PB: predicated region body
PF: predicated region fallthrough
CT: control target
= control target key end

     0   :  { %10 = vsyncpa [#allocation3], 0  ;;  %s7309_s0 = inlined_call_operand.hbm [shape: f32[2,8,32], index: 0, kind: input, shape index: {}]   ;;  %s7310_s1 = inlined_call_operand.hbm [shape: f32[2,8,32], index: 1, kind: input, shape index: {}]   ;;  %s7311_s2 = inlined_call_operand.hbm [shape: bf16[2,8,32,32], index: 2, kind: input, shape index: {}]   ;;  %s7312_s3 = inlined_call_operand.hbm [shape: bf16[2,32,128], index: 3, kind: input, shape index: {}]   ;;  %s7313_s4 = inlined_call_operand.hbm [shape: f32[2,16,128], index: 4, kind: input, shape index: {}]   ;;  %s7314_s5 = inlined_call_operand.hbm [shape: f32[2,8,32], index: 5, kind: output, shape index: {}]  }
   0x1   :  { %11 = vsyncpa [#allocation6], 0 }
   0x2   :  { %12 = vsyncpa [#allocation9], 0 }
   0x3   :  { %13 = vsyncpa [#allocation4], 0  ;;  %s6315_s18 = smov [#allocation5]   ;;  %s6175_s22 = scalar_lea.hbm %s7310_s1, 256 }
   0x4   :  { %s31_s19 = sshll.u32 %s6315_s18, 4  ;;  %p6176_p0 = scmp.ne.s32.totalorder %s7310_s1, %s6175_s22  ;;  %s32_s19 = int_to_ptr.vmem [resolvable:$true] %s31_s19 }
   0x5   :  { %p6179_p1 = scmp.lt.u32.totalorder %s6175_s22, %s7310_s1 }
   0x7   :  { %p6181_p2 = pnand %p6179_p1, %p6176_p0 }
   0x9   :  { %6184 = shalt.err (!%p6181_p2)
}
   0xa   :  { %s6185_s27 = scalar_lea.vmem %s32_s19, 256  ;;  %p6190_p4 = scmp.lt.s32.totalorder %s32_s19, %s32_s19 }
   0xb   :  { %p6186_p3 = scmp.ne.s32.totalorder %s32_s19, %s6185_s27  ;;  %p6191_p5 = scmp.lt.s32.totalorder %s6185_s27, %s6185_s27 }
   0xd   :  { %p6192_p6 = por %p6191_p5, %p6190_p4 }
   0xf   :  { %p6193_p7 = pnand %p6192_p6, %p6186_p3 }
  0x11   :  { %6196 = shalt.err (!%p6193_p7)
}
  0x12   :  { %s6316_s28 = smov 128   ;;  %s6317_s29 = smov 8  }
  0x13   :  { %37 = dma.hbm_to_vmem [thread:$0]  %s7310_s1, 256, %s32_s19, [#allocation6], %s6316_s28, %s6316_s28, %s6317_s29  }
  0x14   :  { %s6318_s7 = smov [#allocation8]   ;;  %s6319_s9 = smov [#allocation2]  }
  0x15   :  { %s55_s8 = sshll.u32 %s6318_s7, 4  ;;  %s19_s10 = sshll.u32 %s6319_s9, 4  ;;  %s56_s8 = int_to_ptr.vmem [resolvable:$true] %s55_s8  ;;  %s20_s10 = int_to_ptr.vmem [resolvable:$true] %s19_s10 }
  0x16   :  { %s6197_s13 = scalar_lea.hbm %s7312_s3, 512 }
  0x17   :  { %p6198_p8 = scmp.ne.s32.totalorder %s7312_s3, %s6197_s13  ;;  %p6201_p9 = scmp.lt.u32.totalorder %s6197_s13, %s7312_s3 }
  0x19   :  { %p6203_p10 = pnand %p6201_p9, %p6198_p8 }
  0x1b   :  { %6206 = shalt.err (!%p6203_p10)
}
  0x1c   :  { %s6207_s1 = scalar_lea.vmem %s56_s8, 512  ;;  %p6212_p12 = scmp.lt.s32.totalorder %s56_s8, %s56_s8 }
  0x1d   :  { %p6208_p11 = scmp.ne.s32.totalorder %s56_s8, %s6207_s1  ;;  %p6213_p13 = scmp.lt.s32.totalorder %s6207_s1, %s6207_s1 }
  0x1f   :  { %p6214_p0 = por %p6213_p13, %p6212_p12 }
  0x21   :  { %p6215_p1 = pnand %p6214_p0, %p6208_p11 }
  0x23   :  { %6218 = shalt.err (!%p6215_p1)
}
  0x24   :  { %s6320_s18 = smov 64   ;;  %s6321_s19 = smov 4  }
  0x25   :  { %61 = dma.hbm_to_vmem [thread:$0]  %s7312_s3, 512, %s56_s8, [#allocation9], %s6320_s18, %s6320_s18, %s6321_s19  }
  0x26   :  { %s6219_s24 = scalar_lea.hbm %s7309_s0, 256 }
  0x27   :  { %p6220_p2 = scmp.ne.s32.totalorder %s7309_s0, %s6219_s24  ;;  %p6223_p3 = scmp.lt.u32.totalorder %s6219_s24, %s7309_s0 }
  0x29   :  { %p6225_p4 = pnand %p6223_p3, %p6220_p2 }
  0x2b   :  { %6228 = shalt.err (!%p6225_p4)
}
  0x2c   :  { %s6229_s6 = scalar_lea.vmem %s20_s10, 256  ;;  %p6234_p6 = scmp.lt.s32.totalorder %s20_s10, %s20_s10 }
  0x2d   :  { %p6230_p5 = scmp.ne.s32.totalorder %s20_s10, %s6229_s6  ;;  %p6235_p7 = scmp.lt.s32.totalorder %s6229_s6, %s6229_s6 }
  0x2f   :  { %p6236_p8 = por %p6235_p7, %p6234_p6 }
  0x31   :  { %p6237_p9 = pnand %p6236_p8, %p6230_p5 }
  0x33   :  { %6240 = shalt.err (!%p6237_p9)
}
  0x34   :  { %25 = dma.hbm_to_vmem [thread:$0]  %s7309_s0, 256, %s20_s10, [#allocation3], %s6316_s28, %s6316_s28, %s6317_s29  }
  0x35   :  { %s6322_s8 = smov [#allocation7]   ;;  %s6323_s11 = smov [#allocation10]  }
  0x36   :  { %s43_s9 = sshll.u32 %s6322_s8, 4  ;;  %s67_s12 = sshll.u32 %s6323_s11, 4  ;;  %s44_s9 = int_to_ptr.vmem [resolvable:$true] %s43_s9  ;;  %s68_s12 = int_to_ptr.vmem [resolvable:$true] %s67_s12 }
  0x37   :  { %s6241_s15 = scalar_lea.hbm %s7311_s2, 4096 }
  0x38   :  { %p6242_p10 = scmp.ne.s32.totalorder %s7311_s2, %s6241_s15  ;;  %p6245_p11 = scmp.lt.u32.totalorder %s6241_s15, %s7311_s2 }
  0x3a   :  { %p6247_p12 = pnand %p6245_p11, %p6242_p10 }
  0x3c   :  { %6250 = shalt.err (!%p6247_p12)
}
  0x3d   :  { %s6251_s0 = scalar_lea.vmem %s44_s9, 4096  ;;  %p6256_p0 = scmp.lt.s32.totalorder %s44_s9, %s44_s9 }
  0x3e   :  { %p6252_p13 = scmp.ne.s32.totalorder %s44_s9, %s6251_s0  ;;  %p6257_p1 = scmp.lt.s32.totalorder %s6251_s0, %s6251_s0 }
  0x40   :  { %p6258_p2 = por %p6257_p1, %p6256_p0 }
  0x42   :  { %p6259_p3 = pnand %p6258_p2, %p6252_p13 }
  0x44   :  { %6262 = shalt.err (!%p6259_p3)
}
  0x45   :  { %49 = dma.hbm_to_vmem [thread:$0]  %s7311_s2, 4096, %s44_s9, [#allocation6], %s6320_s18, %s6320_s18, %s6321_s19  }
  0x46   :  { %s6263_s24 = scalar_lea.hbm %s7313_s4, 512 }
  0x47   :  { %p6264_p4 = scmp.ne.s32.totalorder %s7313_s4, %s6263_s24  ;;  %p6267_p5 = scmp.lt.u32.totalorder %s6263_s24, %s7313_s4 }
  0x49   :  { %p6269_p6 = pnand %p6267_p5, %p6264_p4 }
  0x4b   :  { %6272 = shalt.err (!%p6269_p6)
}
  0x4c   :  { %s6273_s6 = scalar_lea.vmem %s68_s12, 512  ;;  %p6278_p8 = scmp.lt.s32.totalorder %s68_s12, %s68_s12 }
  0x4d   :  { %p6274_p7 = scmp.ne.s32.totalorder %s68_s12, %s6273_s6  ;;  %p6279_p9 = scmp.lt.s32.totalorder %s6273_s6, %s6273_s6 }
  0x4f   :  { %p6280_p10 = por %p6279_p9, %p6278_p8 }
  0x51   :  { %p6281_p11 = pnand %p6280_p10, %p6274_p7 }
  0x53   :  { %6284 = shalt.err (!%p6281_p11)
}
  0x54   :  { %73 = dma.hbm_to_vmem [thread:$0]  %s7313_s4, 512, %s68_s12, [#allocation9], %s6316_s28, %s6316_s28, %s6317_s29  }
  0x55   :  { %6307 = dma.done.wait [#allocation3], 256  }
  0x56   :  { %6308 = vsyncadd [#allocation3], 4294967040 }
  0x57   :  { %6309 = dma.done.wait [#allocation6], 4352  }
  0x58   :  { %6310 = vsyncadd [#allocation6], 4294962944 }
  0x59   :  { %6311 = dma.done.wait [#allocation9], 1024  }
  0x5a   :  { %6312 = vsyncadd [#allocation9], 4294966272  ;;  %v6324_v0 = vmov 0.0   ;;  %vm6325_vm0 = vmmov 0   ;;  %v5987_v1 = vld [vmem:[#allocation7] sm:$0xff]   ;;  %v5988_v2 = vld [vmem:[#allocation7 + $0x8] sm:$0xff]   ;;  %v94_v10 = vlaneseq }
  0x5b   :  { %5431 = vmatprep.subr.bf16.mxu1 %v6324_v0  ;;  %5435 = vmatprep.mubr.msk.bf16.mxu1 %vm6325_vm0, %v6324_v0  ;;  %v6438_v3 = vld [vmem:[#allocation5] sm:$0xff]  ;;  %v6440_v4 = vld [vmem:[#allocation5 + $0x8] sm:$0xff]  ;;  %vm158_vm1 = vcmask 261120   ;;  %v5991_v8 = vld [vmem:[#allocation7 + $0x20] sm:$0xff]   ;;  %vm801_vm12 = vcmask 1043456   ;;  %vm701_vm13 = vcmask 64512  }
  0x5c   :  { %5447 = vmatprep.subr.bf16.mxu0 %v6324_v0  ;;  %5451 = vmatprep.mubr.msk.bf16.mxu0 %vm6325_vm0, %v6324_v0  ;;  %v141_v5 = vpack.c.bf16 %v6440_v4, %v6438_v3  ;;  %v5989_v6 = vld [vmem:[#allocation7 + $0x10] sm:$0xff]   ;;  %v5990_v7 = vld [vmem:[#allocation7 + $0x18] sm:$0xff]   ;;  %v5992_v9 = vld [vmem:[#allocation7 + $0x28] sm:$0xff]   ;;  %v6459_v11 = vshrl.u32 %v94_v10, 7  ;;  %v95_v13 = vand.u32 127, %v94_v10  ;;  %vm2521_vm14 = vcmask 523264  }
  0x5d   :  { %5432 = vmatpush3.bf16.msra.mxu1 %v5987_v1  ;;  %5448 = vmatpush3.bf16.msra.mxu0 %v5991_v8  ;;  %v6467_v19 = vld [vmem:[#allocation10] sm:$0xff]  ;;  %s6326_s4 = smov [#allocation11]  }
  0x5e   :  { %5433 = vmatprep.subr.bf16.mxu1 %v6324_v0  ;;  %5449 = vmatprep.subr.bf16.mxu0 %v6324_v0  ;;  %v6462_v15 = vsub.s32 1, %v6459_v11  ;;  %v6465_v17 = vsub.s32 0, %v6459_v11  ;;  %vm100_vm2 = vcmp.lt.s32.totalorder %v95_v13, 8  ;;  %vm97_vm3 = vcmp.ge.s32.totalorder %v95_v13, 8 }
  0x5f   :  { %v6474_v22 = vsel %vm100_vm2, 1.0, %v6324_v0  ;;  %vm101_vm4 = vcmp.lt.s32.totalorder %v95_v13, 16  ;;  %vm98_vm6 = vcmp.ge.s32.totalorder %v95_v13, 16  ;;  %vm102_vm7 = vcmp.lt.s32.totalorder %v95_v13, 24 }
  0x60   :  { %v206_v20 = vrot.slane %v6467_v19, %v6462_v15  ;;  %v145_v21 = vrot.slane %v6467_v19, %v6465_v17  ;;  %v6477_v27 = vmul.f32 0.35355338, %v6474_v22  ;;  %vm105_vm5 = vmand %vm97_vm3, %vm101_vm4  ;;  %vm99_vm9 = vcmp.ge.s32.totalorder %v95_v13, 24 }
  0x61   :  { %5434 = vmatpush3.bf16.msra.mxu1 %v5988_v2  ;;  %5450 = vmatpush3.bf16.msra.mxu0 %v5992_v9  ;;  %v6484_v37 = vsel %vm105_vm5, 1.0, %v6324_v0  ;;  %vm106_vm8 = vmand %vm98_vm6, %vm102_vm7  ;;  %vm103_vm10 = vcmp.lt.s32.totalorder %v95_v13, 32  ;;  %v6540_v58 = vsub.s32 2, %v6459_v11 }
  0x62   :  { %5439 = vmatprep.subr.bf16.mxu1 %v6324_v0  ;;  %5461 = vmatprep.subr.bf16.mxu0 %v6324_v0  ;;  %v6489_v39 = vmul.f32 0.35355338, %v6484_v37  ;;  %v6498_v43 = vsel %vm106_vm8, 1.0, %v6324_v0  ;;  %vm107_vm11 = vmand %vm99_vm9, %vm103_vm10 }
  0x63   :  { %v6505_v45 = vmul.f32 0.35355338, %v6498_v43  ;;  %v6514_v49 = vsel %vm107_vm11, 1.0, %v6324_v0  ;;  %v263_v61 = vrot.slane %v6467_v19, %v6540_v58 }
  0x64   :  { %5436 = vmatmul.mubr.msk.bf16.vlgmr.msra.gmra.mrb[0].mxu1 %vm158_vm1, %v141_v5  ;;  %5452 = vmatmul.mubr.msk.bf16.vlgmr.msra.gmra.mrb[0].mxu0 %vm158_vm1, %v141_v5  ;;  %v6521_v51 = vmul.f32 0.35355338, %v6514_v49 }
  0x65   :  { %5440 = vmatpush3.bf16.msra.mxu1 %v5989_v6  ;;  %5443 = vmatprep.mubr.msk.bf16.mxu1 %vm6325_vm0, %v6324_v0 }
  0x66   :  { %5441 = vmatprep.subr.bf16.mxu1 %v6324_v0  ;;  %5463 = vmatprep.mubr.msk.bf16.mxu0 %vm6325_vm0, %v6324_v0 }
  0x69   :  { %5442 = vmatpush3.bf16.msra.mxu1 %v5990_v7 }
  0x6a   :  { %5455 = vmatprep.subr.bf16.mxu1 %v6324_v0 }
  0x6c   :  { %5444 = vmatmul.mubr.msk.bf16.vlgmr.msra.gmra.mrb[4].mxu1 %vm158_vm1, %v141_v5 }
  0x6d   :  { %5457 = vmatprep.mubr.msk.bf16.mxu1 %vm6325_vm0, %v6324_v0 }
 0x137   :  { %v196_v12 = vpop.f32.mrb[0].mxu1  ;;  %v310_v59 = vpop.f32.mrb[0].mxu0 }
 0x138   :  { %v5437_v14 = vpop.f32.mrb[1].mxu1  ;;  %v197_v28 = vadd.f32 %v196_v12, %v145_v21  ;;  %v5453_v60 = vpop.f32.mrb[1].mxu0  ;;  %v6544_v1 = vadd.f32 %v310_v59, %v263_v61 }
 0x139   :  { %v199_v16 = vpop.f32.mrb[2].mxu1  ;;  %v313_v62 = vpop.f32.mrb[2].mxu0 }
 0x13a   :  { %v5438_v18 = vpop.f32.mrb[3].mxu1  ;;  %v200_v32 = vadd.f32 %v199_v16, %v145_v21  ;;  %v317_v35 = vmul.f32 %v197_v28, %v6477_v27  ;;  %v319_v42 = vmul.f32 %v197_v28, %v6489_v39  ;;  %v321_v48 = vmul.f32 %v197_v28, %v6505_v45  ;;  %v5454_v63 = vpop.f32.mrb[3].mxu0 }
 0x13b   :  { %v323_v54 = vmul.f32 %v197_v28, %v6521_v51  ;;  %v6546_v2 = vadd.f32 %v313_v62, %v263_v61  ;;  %v335_v5 = vmul.f32 %v6474_v22, %v6544_v1 }
 0x13c   :  { %v318_v38 = vmul.f32 %v200_v32, %v6477_v27  ;;  %v325_v40 = vpack.c.bf16 %v317_v35, %v317_v35  ;;  %v320_v44 = vmul.f32 %v200_v32, %v6489_v39  ;;  %v327_v46 = vpack.c.bf16 %v319_v42, %v319_v42 }
 0x13d   :  { %v322_v50 = vmul.f32 %v200_v32, %v6505_v45  ;;  %v329_v52 = vpack.c.bf16 %v321_v48, %v321_v48  ;;  %v324_v55 = vmul.f32 %v200_v32, %v6521_v51  ;;  %v331_v56 = vpack.c.bf16 %v323_v54, %v323_v54 }
 0x13e   :  { %v326_v41 = vpack.c.bf16 %v318_v38, %v318_v38  ;;  %v328_v47 = vpack.c.bf16 %v320_v44, %v320_v44  ;;  %v336_v6 = vmul.f32 %v6474_v22, %v6546_v2  ;;  %v343_v7 = vpack.c.bf16 %v335_v5, %v335_v5 }
 0x13f   :  { %v253_v23 = vpop.f32.mrb[4].mxu1  ;;  %v330_v53 = vpack.c.bf16 %v322_v50, %v322_v50  ;;  %v332_v57 = vpack.c.bf16 %v324_v55, %v324_v55 }
 0x140   :  { %v254_v24 = vadd.f32 %v253_v23, %v206_v20  ;;  %v5445_v25 = vpop.f32.mrb[5].mxu1  ;;  %v344_v8 = vpack.c.bf16 %v336_v6, %v336_v6  ;;  %v803_v9 = vsel %vm801_vm12, %v343_v7, 0 }
 0x141   :  { %v256_v26 = vpop.f32.mrb[6].mxu1 }
 0x142   :  { %v333_v29 = vpack.c.bf16 %v254_v24, %v254_v24  ;;  %v257_v30 = vadd.f32 %v256_v26, %v206_v20  ;;  %v5446_v31 = vpop.f32.mrb[7].mxu1  ;;  %v849_v10 = vsel %vm801_vm12, %v344_v8, 0 }
 0x144   :  { %v355_v33 = vsel %vm158_vm1, %v333_v29, 0  ;;  %v334_v34 = vpack.c.bf16 %v257_v30, %v257_v30 }
 0x145   :  { %5456 = vmatpush3.bf16.xpose.msra.mxu1 %v355_v33 }
 0x146   :  { %v401_v36 = vsel %vm158_vm1, %v334_v34, 0  ;;  %5467 = vmatprep.subr.bf16.mxu1 %v6324_v0 }
 0x147   :  { %5462 = vmatpush3.bf16.xpose.msra.mxu0 %v401_v36 }
 0x148   :  { %5473 = vmatprep.subr.bf16.mxu0 %v6324_v0 }
 0x14c   :  { %5458 = vmatmul.mubr.msk.bf16.vlgmr.msra.gmra.mrb[8].mxu1 %vm158_vm1, %v325_v40 }
 0x14d   :  { %5468 = vmatpush3.bf16.xpose.msra.mxu1 %v355_v33  ;;  %5469 = vmatprep.mubr.msk.bf16.mxu1 %vm6325_vm0, %v6324_v0 }
 0x14e   :  { %5464 = vmatmul.mubr.msk.bf16.vlgmr.msra.gmra.mrb[4].mxu0 %vm158_vm1, %v326_v41  ;;  %5479 = vmatprep.subr.bf16.mxu1 %v6324_v0 }
 0x14f   :  { %5474 = vmatpush3.bf16.xpose.msra.mxu0 %v401_v36  ;;  %5475 = vmatprep.mubr.msk.bf16.mxu0 %vm6325_vm0, %v6324_v0 }
 0x150   :  { %5485 = vmatprep.subr.bf16.mxu0 %v6324_v0 }
 0x154   :  { %5470 = vmatmul.mubr.msk.bf16.vlgmr.msra.gmra.mrb[12].mxu1 %vm158_vm1, %v327_v46 }
 0x155   :  { %5480 = vmatpush3.bf16.xpose.msra.mxu1 %v355_v33  ;;  %5481 = vmatprep.mubr.msk.bf16.mxu1 %vm6325_vm0, %v6324_v0 }
 0x156   :  { %5476 = vmatmul.mubr.msk.bf16.vlgmr.msra.gmra.mrb[8].mxu0 %vm158_vm1, %v328_v47  ;;  %5491 = vmatprep.subr.bf16.mxu1 %v6324_v0 }
 0x157   :  { %5486 = vmatpush3.bf16.xpose.msra.mxu0 %v401_v36  ;;  %5487 = vmatprep.mubr.msk.bf16.mxu0 %vm6325_vm0, %v6324_v0 }
 0x158   :  { %5497 = vmatprep.subr.bf16.mxu0 %v6324_v0 }
 0x15c   :  { %5482 = vmatmul.mubr.msk.bf16.vlgmr.msra.gmra.mrb[16].mxu1 %vm158_vm1, %v329_v52 }
 0x15d   :  { %5492 = vmatpush3.bf16.xpose.msra.mxu1 %v355_v33  ;;  %5493 = vmatprep.mubr.msk.bf16.mxu1 %vm6325_vm0, %v6324_v0 }
 0x15e   :  { %5488 = vmatmul.mubr.msk.bf16.vlgmr.msra.gmra.mrb[12].mxu0 %vm158_vm1, %v330_v53  ;;  %5503 = vmatprep.subr.bf16.mxu1 %v6324_v0 }
 0x15f   :  { %5498 = vmatpush3.bf16.xpose.msra.mxu0 %v401_v36  ;;  %5499 = vmatprep.mubr.msk.bf16.mxu0 %vm6325_vm0, %v6324_v0 }
 0x160   :  { %5509 = vmatprep.subr.bf16.mxu0 %v6324_v0 }
 0x164   :  { %5494 = vmatmul.mubr.msk.bf16.vlgmr.msra.gmra.mrb[20].mxu1 %vm158_vm1, %v331_v56 }
 0x165   :  { %5505 = vmatprep.mubr.msk.bf16.mxu1 %vm6325_vm0, %v6324_v0  ;;  %5504 = vmatpush3.bf16.msra.mxu1 %v803_v9 }
 0x166   :  { %5500 = vmatmul.mubr.msk.bf16.vlgmr.msra.gmra.mrb[16].mxu0 %vm158_vm1, %v332_v57  ;;  %5515 = vmatprep.subr.bf16.mxu1 %v6324_v0 }
 0x167   :  { %5511 = vmatprep.mubr.msk.bf16.mxu0 %vm6325_vm0, %v6324_v0  ;;  %5510 = vmatpush3.bf16.msra.mxu0 %v849_v10 }
 0x168   :  { %5521 = vmatprep.subr.bf16.mxu0 %v6324_v0 }
 0x21f   :  { %v391_v12 = vpop.f32.mrb[8].mxu1 }
 0x220   :  { %v5459_v13 = vpop.f32.mrb[9].mxu1  ;;  %v702_v14 = vsel %vm701_vm13, %v391_v12, -inf }
 0x221   :  { %v437_v16 = vpop.f32.mrb[4].mxu0  ;;  %703 = vmax.xlane.f32.xlu0 %v702_v14  ;;  %v394_v18 = vpop.f32.mrb[10].mxu1 }
 0x222   :  { %v5460_v20 = vpop.f32.mrb[11].mxu1  ;;  %v5465_v21 = vpop.f32.mrb[5].mxu0  ;;  %v705_v25 = vsel %vm701_vm13, %v437_v16, -inf }
 0x223   :  { %v440_v23 = vpop.f32.mrb[6].mxu0 }
 0x224   :  { %v5466_v24 = vpop.f32.mrb[7].mxu0 }
 0x225   :  { %706 = vmax.xlane.f32.xlu0 %v705_v25 }
 0x227   :  { %v480_v26 = vpop.f32.mrb[12].mxu1 }
 0x228   :  { %v5471_v28 = vpop.f32.mrb[13].mxu1  ;;  %v708_v29 = vsel %vm701_vm13, %v480_v26, -inf }
 0x229   :  { %v523_v30 = vpop.f32.mrb[8].mxu0  ;;  %709 = vmax.xlane.f32.xlu1 %v708_v29  ;;  %v483_v31 = vpop.f32.mrb[14].mxu1 }
 0x22a   :  { %v5472_v32 = vpop.f32.mrb[15].mxu1  ;;  %v5477_v33 = vpop.f32.mrb[9].mxu0  ;;  %v711_v36 = vsel %vm701_vm13, %v523_v30, -inf }
 0x22b   :  { %v526_v34 = vpop.f32.mrb[10].mxu0 }
 0x22c   :  { %v5478_v35 = vpop.f32.mrb[11].mxu0 }
 0x22d   :  { %712 = vmax.xlane.f32.xlu1 %v711_v36 }
 0x22f   :  { %v566_v38 = vpop.f32.mrb[16].mxu1 }
 0x230   :  { %v5483_v40 = vpop.f32.mrb[17].mxu1  ;;  %v714_v41 = vsel %vm701_vm13, %v566_v38, -inf }
 0x231   :  { %v609_v42 = vpop.f32.mrb[12].mxu0  ;;  %715 = vmax.xlane.f32.xlu0 %v714_v41  ;;  %v569_v44 = vpop.f32.mrb[18].mxu1 }
 0x232   :  { %v5484_v46 = vpop.f32.mrb[19].mxu1  ;;  %v5489_v47 = vpop.f32.mrb[13].mxu0  ;;  %v717_v48 = vsel %vm701_vm13, %v609_v42, -inf }
 0x233   :  { %v612_v50 = vpop.f32.mrb[14].mxu0  ;;  %718 = vmax.xlane.f32.xlu1 %v717_v48 }
 0x234   :  { %v5490_v52 = vpop.f32.mrb[15].mxu0 }
 0x237   :  { %v652_v53 = vpop.f32.mrb[20].mxu1 }
 0x238   :  { %v5495_v54 = vpop.f32.mrb[21].mxu1  ;;  %v720_v55 = vsel %vm701_vm13, %v652_v53, -inf }
 0x239   :  { %v695_v56 = vpop.f32.mrb[16].mxu0  ;;  %721 = vmax.xlane.f32.xlu0 %v720_v55  ;;  %v655_v57 = vpop.f32.mrb[22].mxu1 }
 0x23a   :  { %v5496_v59 = vpop.f32.mrb[23].mxu1  ;;  %v5501_v60 = vpop.f32.mrb[17].mxu0  ;;  %v723_v61 = vsel %vm701_vm13, %v695_v56, -inf }
 0x23b   :  { %v698_v62 = vpop.f32.mrb[18].mxu0  ;;  %724 = vmax.xlane.f32.xlu1 %v723_v61  ;;  %v337_v61 = vmul.f32 %v6484_v37, %v6544_v1 }
 0x23c   :  { %v5502_v63 = vpop.f32.mrb[19].mxu0 }
 0x2ae   :  { %v704_v5 = vpop.xlane.xlu0 %703 }
 0x2af   :  { %v726_v6 = vsub.f32 %v391_v12, %v704_v5 }
 0x2b1   :  { %v734_v7 = vmul.f32 1.442695, %v726_v6  ;;  %v345_v6 = vpack.c.bf16 %v337_v61, %v337_v61  ;;  %v5993_v61 = vld [vmem:[#allocation7 + $0x30] sm:$0xff]  }
 0x2b2   :  { %v707_v8 = vpop.xlane.xlu0 %706 }
 0x2b3   :  { %6023 = vpow2.f32 %v734_v7  ;;  %v727_v9 = vsub.f32 %v437_v16, %v707_v8  ;;  %v338_v7 = vmul.f32 %v6484_v37, %v6546_v2 }
 0x2b5   :  { %v736_v10 = vmul.f32 1.442695, %v727_v9 }
 0x2b6   :  { %v710_v13 = vpop.xlane.xlu1 %709 }
 0x2b7   :  { %6025 = vpow2.f32 %v736_v10  ;;  %v728_v14 = vsub.f32 %v480_v26, %v710_v13  ;;  %v895_v13 = vsel %vm801_vm12, %v345_v6, 0 }
 0x2b9   :  { %v738_v18 = vmul.f32 1.442695, %v728_v14 }
 0x2ba   :  { %v713_v20 = vpop.xlane.xlu1 %712 }
 0x2bb   :  { %6027 = vpow2.f32 %v738_v18  ;;  %v729_v21 = vsub.f32 %v523_v30, %v713_v20  ;;  %v346_v18 = vpack.c.bf16 %v338_v7, %v338_v7  ;;  %v339_v20 = vmul.f32 %v6498_v43, %v6544_v1 }
 0x2bd   :  { %v6024_v23 = vpop.eup %6023  ;;  %v740_v24 = vmul.f32 1.442695, %v729_v21 }
 0x2be   :  { %v716_v25 = vpop.xlane.xlu0 %715  ;;  %v750_v28 = vsel %vm701_vm13, %v6024_v23, 0.0 }
 0x2bf   :  { %6029 = vpow2.f32 %v740_v24  ;;  %v730_v29 = vsub.f32 %v566_v38, %v716_v25  ;;  %751 = vadd.xlane.f32.xlu0 %v750_v28  ;;  %v941_v28 = vsel %vm801_vm12, %v346_v18, 0 }
 0x2c0   :  { %v719_v12 = vpop.xlane.xlu1 %718 }
 0x2c1   :  { %v6026_v31 = vpop.eup %6025  ;;  %v742_v32 = vmul.f32 1.442695, %v730_v29  ;;  %v731_v16 = vsub.f32 %v609_v42, %v719_v12  ;;  %v347_v29 = vpack.c.bf16 %v339_v20, %v339_v20  ;;  %v340_v12 = vmul.f32 %v6498_v43, %v6546_v2 }
 0x2c2   :  { %v753_v33 = vsel %vm701_vm13, %v6026_v31, 0.0 }
 0x2c3   :  { %6031 = vpow2.f32 %v742_v32  ;;  %v744_v26 = vmul.f32 1.442695, %v731_v16  ;;  %754 = vadd.xlane.f32.xlu1 %v753_v33  ;;  %v987_v33 = vsel %vm801_vm12, %v347_v29, 0 }
 0x2c5   :  { %v6028_v34 = vpop.eup %6027  ;;  %6033 = vpow2.f32 %v744_v26 }
 0x2c6   :  { %v722_v30 = vpop.xlane.xlu0 %721  ;;  %v756_v35 = vsel %vm701_vm13, %v6028_v34, 0.0 }
 0x2c7   :  { %v732_v36 = vsub.f32 %v652_v53, %v722_v30  ;;  %757 = vadd.xlane.f32.xlu0 %v756_v35  ;;  %v341_v30 = vmul.f32 %v6514_v49, %v6544_v1  ;;  %v342_v1 = vmul.f32 %v6514_v49, %v6546_v2 }
 0x2c8   :  { %v725_v40 = vpop.xlane.xlu1 %724 }
 0x2c9   :  { %v6030_v41 = vpop.eup %6029  ;;  %v746_v38 = vmul.f32 1.442695, %v732_v36  ;;  %v733_v44 = vsub.f32 %v695_v56, %v725_v40 }
 0x2ca   :  { %v759_v46 = vsel %vm701_vm13, %v6030_v41, 0.0 }
 0x2cb   :  { %6035 = vpow2.f32 %v746_v38  ;;  %v748_v42 = vmul.f32 1.442695, %v733_v44  ;;  %760 = vadd.xlane.f32.xlu1 %v759_v46  ;;  %v349_v44 = vpack.c.bf16 %v341_v30, %v341_v30 }
 0x2cd   :  { %v6568_v47 = vpop.eup %6031  ;;  %6037 = vpow2.f32 %v748_v42 }
 0x2ce   :  { %v762_v48 = vsel %vm701_vm13, %v6568_v47, 0.0 }
 0x2cf   :  { %v6572_v50 = vpop.eup %6033  ;;  %763 = vadd.xlane.f32.xlu0 %v762_v48 }
 0x2d0   :  { %v765_v52 = vsel %vm701_vm13, %v6572_v50, 0.0 }
 0x2d1   :  { %766 = vadd.xlane.f32.xlu1 %v765_v52  ;;  %v350_v52 = vpack.c.bf16 %v342_v1, %v342_v1 }
 0x2d5   :  { %v6576_v53 = vpop.eup %6035 }
 0x2d6   :  { %v768_v54 = vsel %vm701_vm13, %v6576_v53, 0.0 }
 0x2d7   :  { %v6580_v55 = vpop.eup %6037  ;;  %769 = vadd.xlane.f32.xlu0 %v768_v54 }
 0x2d8   :  { %v771_v56 = vsel %vm701_vm13, %v6580_v55, 0.0 }
 0x2d9   :  { %772 = vadd.xlane.f32.xlu1 %v771_v56 }
 0x34c   :  { %v752_v57 = vpop.xlane.xlu0 %751 }
 0x34d   :  { %6039 = vrcp.f32 %v752_v57 }
 0x350   :  { %v755_v59 = vpop.xlane.xlu1 %754 }
 0x351   :  { %6041 = vrcp.f32 %v755_v59 }
 0x354   :  { %v758_v60 = vpop.xlane.xlu0 %757 }
 0x355   :  { %6043 = vrcp.f32 %v758_v60 }
 0x357   :  { %v6040_v62 = vpop.eup %6039 }
 0x358   :  { %v782_v63 = vmul.f32 %v6040_v62, %v6024_v23  ;;  %v761_v5 = vpop.xlane.xlu1 %760  ;;  %v5994_v62 = vld [vmem:[#allocation7 + $0x38] sm:$0xff]  }
 0x359   :  { %6045 = vrcp.f32 %v761_v5 }
 0x35a   :  { %v790_v8 = vpack.c.bf16 %v782_v63, %v782_v63 }
 0x35b   :  { %v6042_v9 = vpop.eup %6041 }
 0x35c   :  { %v783_v10 = vmul.f32 %v6042_v9, %v6026_v31  ;;  %5506 = vmatmul.mubr.msk.bf16.vlgmr.msra.gmra.mrb[24].mxu1 %vm701_vm13, %v790_v8  ;;  %v764_v14 = vpop.xlane.xlu0 %763 }
 0x35d   :  { %5516 = vmatpush3.bf16.msra.mxu1 %v895_v13  ;;  %6047 = vrcp.f32 %v764_v14  ;;  %5517 = vmatprep.mubr.msk.bf16.mxu1 %vm6325_vm0, %v6324_v0 }
 0x35e   :  { %v767_v21 = vpop.xlane.xlu1 %766  ;;  %v791_v23 = vpack.c.bf16 %v783_v10, %v783_v10  ;;  %5527 = vmatprep.subr.bf16.mxu1 %v6324_v0 }
 0x35f   :  { %v6044_v24 = vpop.eup %6043  ;;  %6049 = vrcp.f32 %v767_v21 }
 0x360   :  { %v784_v25 = vmul.f32 %v6044_v24, %v6028_v34  ;;  %5512 = vmatmul.mubr.msk.bf16.vlgmr.msra.gmra.mrb[20].mxu0 %vm701_vm13, %v791_v23  ;;  %v348_v34 = vpack.c.bf16 %v340_v12, %v340_v12 }
 0x361   :  { %5522 = vmatpush3.bf16.msra.mxu0 %v941_v28  ;;  %5523 = vmatprep.mubr.msk.bf16.mxu0 %vm6325_vm0, %v6324_v0 }
 0x362   :  { %v792_v31 = vpack.c.bf16 %v784_v25, %v784_v25  ;;  %5533 = vmatprep.subr.bf16.mxu0 %v6324_v0  ;;  %v1033_v38 = vsel %vm801_vm12, %v348_v34, 0 }
 0x363   :  { %v6046_v32 = vpop.eup %6045 }
 0x364   :  { %v785_v16 = vmul.f32 %v6046_v32, %v6030_v41  ;;  %5518 = vmatmul.mubr.msk.bf16.vlgmr.msra.gmra.mrb[28].mxu1 %vm701_vm13, %v792_v31  ;;  %v770_v26 = vpop.xlane.xlu0 %769 }
 0x365   :  { %5528 = vmatpush3.bf16.msra.mxu1 %v987_v33  ;;  %6051 = vrcp.f32 %v770_v26  ;;  %5529 = vmatprep.mubr.msk.bf16.mxu1 %vm6325_vm0, %v6324_v0 }
 0x366   :  { %v773_v35 = vpop.xlane.xlu1 %772  ;;  %v793_v36 = vpack.c.bf16 %v785_v16, %v785_v16  ;;  %5539 = vmatprep.subr.bf16.mxu1 %v6324_v0 }
 0x367   :  { %v6048_v40 = vpop.eup %6047  ;;  %6053 = vrcp.f32 %v773_v35 }
 0x368   :  { %v786_v41 = vmul.f32 %v6048_v40, %v6568_v47  ;;  %5524 = vmatmul.mubr.msk.bf16.vlgmr.msra.gmra.mrb[24].mxu0 %vm701_vm13, %v793_v36  ;;  %v1079_v47 = vsel %vm801_vm12, %v349_v44, 0 }
 0x369   :  { %v6050_v46 = vpop.eup %6049  ;;  %5534 = vmatpush3.bf16.msra.mxu0 %v1033_v38  ;;  %5535 = vmatprep.mubr.msk.bf16.mxu0 %vm6325_vm0, %v6324_v0 }
 0x36a   :  { %v787_v42 = vmul.f32 %v6050_v46, %v6572_v50  ;;  %v794_v48 = vpack.c.bf16 %v786_v41, %v786_v41  ;;  %5545 = vmatprep.subr.bf16.mxu0 %v6324_v0  ;;  %v1125_v50 = vsel %vm801_vm12, %v350_v52, 0 }
 0x36c   :  { %5530 = vmatmul.mubr.msk.bf16.vlgmr.msra.gmra.mrb[32].mxu1 %vm701_vm13, %v794_v48  ;;  %v795_v2 = vpack.c.bf16 %v787_v42, %v787_v42 }
 0x36d   :  { %5540 = vmatpush3.bf16.msra.mxu1 %v1079_v47  ;;  %5541 = vmatprep.mubr.msk.bf16.mxu1 %vm6325_vm0, %v6324_v0 }
 0x36e   :  { %5551 = vmatprep.subr.bf16.mxu1 %v6324_v0 }
 0x36f   :  { %v6052_v54 = vpop.eup %6051 }
 0x370   :  { %v788_v56 = vmul.f32 %v6052_v54, %v6576_v53  ;;  %5536 = vmatmul.mubr.msk.bf16.vlgmr.msra.gmra.mrb[28].mxu0 %vm701_vm13, %v795_v2 }
 0x371   :  { %v6054_v57 = vpop.eup %6053  ;;  %5546 = vmatpush3.bf16.msra.mxu0 %v1125_v50  ;;  %5547 = vmatprep.mubr.msk.bf16.mxu0 %vm6325_vm0, %v6324_v0 }
 0x372   :  { %v789_v59 = vmul.f32 %v6054_v57, %v6580_v55  ;;  %v796_v60 = vpack.c.bf16 %v788_v56, %v788_v56  ;;  %5559 = vmatprep.subr.bf16.mxu0 %v6324_v0 }
 0x374   :  { %5542 = vmatmul.mubr.msk.bf16.vlgmr.msra.gmra.mrb[36].mxu1 %vm701_vm13, %v796_v60  ;;  %v797_v53 = vpack.c.bf16 %v789_v59, %v789_v59 }
 0x375   :  { %5555 = vmatprep.mubr.msk.bf16.mxu1 %vm6325_vm0, %v6324_v0  ;;  %5552 = vmatpush3.bf16.msra.mxu1 %v5993_v61 }
 0x376   :  { %5553 = vmatprep.subr.bf16.mxu1 %v6324_v0 }
 0x378   :  { %5548 = vmatmul.mubr.msk.bf16.vlgmr.msra.gmra.mrb[32].mxu0 %vm701_vm13, %v797_v53 }
 0x379   :  { %5563 = vmatprep.mubr.msk.bf16.mxu0 %vm6325_vm0, %v6324_v0  ;;  %5554 = vmatpush3.bf16.msra.mxu1 %v5994_v62  ;;  %v6650_v62 = vsub.s32 3, %v6459_v11 }
 0x37a   :  { %5567 = vmatprep.subr.bf16.mxu1 %v6324_v0 }
 0x42f   :  { %v839_v55 = vpop.f32.mrb[24].mxu1 }
 0x430   :  { %v5507_v63 = vpop.f32.mrb[25].mxu1  ;;  %v1167_v14 = vsel %vm158_vm1, %v839_v55, 0.0  ;;  %v1185_v55 = vrot.slane %v6467_v19, %v6650_v62 }
 0x431   :  { %v842_v5 = vpop.f32.mrb[26].mxu1 }
 0x432   :  { %v5508_v6 = vpop.f32.mrb[27].mxu1 }
 0x433   :  { %v885_v7 = vpop.f32.mrb[20].mxu0 }
 0x434   :  { %v5513_v8 = vpop.f32.mrb[21].mxu0  ;;  %v1174_v28 = vsel %vm158_vm1, %v885_v7, 0.0 }
 0x435   :  { %v888_v9 = vpop.f32.mrb[22].mxu0 }
 0x436   :  { %v5514_v10 = vpop.f32.mrb[23].mxu0 }
 0x437   :  { %v931_v13 = vpop.f32.mrb[28].mxu1 }
 0x438   :  { %v1168_v18 = vsel %vm158_vm1, %v931_v13, 0.0  ;;  %v5519_v20 = vpop.f32.mrb[29].mxu1 }
 0x439   :  { %v1169_v21 = vadd.f32 %v1168_v18, %v1167_v14  ;;  %v934_v23 = vpop.f32.mrb[30].mxu1 }
 0x43a   :  { %v5520_v24 = vpop.f32.mrb[31].mxu1 }
 0x43b   :  { %v977_v25 = vpop.f32.mrb[24].mxu0 }
 0x43c   :  { %v1175_v29 = vsel %vm158_vm1, %v977_v25, 0.0  ;;  %v5525_v12 = vpop.f32.mrb[25].mxu0 }
 0x43d   :  { %v1176_v31 = vadd.f32 %v1175_v29, %v1174_v28  ;;  %v980_v32 = vpop.f32.mrb[26].mxu0 }
 0x43e   :  { %v5526_v16 = vpop.f32.mrb[27].mxu0  ;;  %v5995_v32 = vld [vmem:[#allocation7 + $0x50] sm:$0xff]  }
 0x43f   :  { %v1023_v33 = vpop.f32.mrb[32].mxu1  ;;  %v90_v16 = vld [vmem:[#allocation2] sm:$0xff] }
 0x440   :  { %v1170_v26 = vsel %vm158_vm1, %v1023_v33, 0.0  ;;  %v5531_v34 = vpop.f32.mrb[33].mxu1  ;;  %v91_v33 = vld [vmem:[#allocation2 + $0x8] sm:$0xff] }
 0x441   :  { %v1171_v30 = vadd.f32 %v1170_v26, %v1169_v21  ;;  %v1026_v35 = vpop.f32.mrb[34].mxu1  ;;  %v6661_v26 = vpack.c.bf16 %v91_v33, %v90_v16  ;;  %v5997_v34 = vld [vmem:[#allocation7 + $0x40] sm:$0xff]  }
 0x442   :  { %v5532_v36 = vpop.f32.mrb[35].mxu1  ;;  %5560 = vmatpush3.bf16.msra.mxu0 %v5997_v34 }
 0x443   :  { %v1069_v40 = vpop.f32.mrb[28].mxu0  ;;  %5561 = vmatprep.subr.bf16.mxu0 %v6324_v0 }
 0x444   :  { %v1177_v41 = vsel %vm158_vm1, %v1069_v40, 0.0  ;;  %v5537_v38 = vpop.f32.mrb[29].mxu0 }
 0x445   :  { %v1178_v44 = vadd.f32 %v1177_v41, %v1176_v31  ;;  %v1072_v1 = vpop.f32.mrb[30].mxu0 }
 0x446   :  { %v5538_v46 = vpop.f32.mrb[31].mxu0  ;;  %v6671_v1 = vsub.s32 4, %v6459_v11 }
 0x447   :  { %v1115_v42 = vpop.f32.mrb[36].mxu1 }
 0x448   :  { %v1172_v48 = vsel %vm158_vm1, %v1115_v42, 0.0  ;;  %v5543_v47 = vpop.f32.mrb[37].mxu1  ;;  %v1274_v46 = vrot.slane %v6467_v19, %v6671_v1  ;;  %v6676_v42 = vsub.s32 5, %v6459_v11 }
 0x449   :  { %v1173_v52 = vadd.f32 %v1172_v48, %v1171_v30  ;;  %v1118_v2 = vpop.f32.mrb[38].mxu1  ;;  %v5998_v30 = vld [vmem:[#allocation7 + $0x48] sm:$0xff]  }
 0x44a   :  { %v5544_v54 = vpop.f32.mrb[39].mxu1  ;;  %5562 = vmatpush3.bf16.msra.mxu0 %v5998_v30 }
 0x44b   :  { %v1161_v56 = vpop.f32.mrb[32].mxu0  ;;  %5575 = vmatprep.subr.bf16.mxu0 %v6324_v0 }
 0x44c   :  { %v1179_v50 = vsel %vm158_vm1, %v1161_v56, 0.0  ;;  %v5549_v57 = vpop.f32.mrb[33].mxu0  ;;  %v1280_v56 = vrot.slane %v6467_v19, %v6676_v42 }
 0x44d   :  { %v1180_v59 = vadd.f32 %v1179_v50, %v1178_v44  ;;  %v1164_v60 = vpop.f32.mrb[34].mxu0 }
 0x44e   :  { %v5550_v53 = vpop.f32.mrb[35].mxu0  ;;  %v5999_v60 = vld [vmem:[#allocation7 + $0x60] sm:$0xff]  }
 0x44f   :  { %v1181_v61 = vpack.c.bf16 %v1180_v59, %v1173_v52 }
 0x451   :  { %5556 = vmatmul.mubr.msk.bf16.vlgmr.msra.gmra.mrb[40].mxu1 %vm158_vm1, %v1181_v61  ;;  %v6000_v61 = vld [vmem:[#allocation7 + $0x68] sm:$0xff]  }
 0x452   :  { %5571 = vmatprep.mubr.msk.bf16.mxu1 %vm6325_vm0, %v6324_v0  ;;  %5568 = vmatpush3.bf16.msra.mxu1 %v5995_v32 }
 0x453   :  { %5569 = vmatprep.subr.bf16.mxu1 %v6324_v0 }
 0x524   :  { %v1235_v63 = vpop.f32.mrb[40].mxu1 }
 0x525   :  { %v1236_v5 = vadd.f32 %v1235_v63, %v1185_v55  ;;  %v5557_v6 = vpop.f32.mrb[41].mxu1 }
 0x526   :  { %v1238_v7 = vpop.f32.mrb[42].mxu1 }
 0x527   :  { %v1239_v8 = vadd.f32 %v1238_v7, %v1185_v55  ;;  %v5558_v9 = vpop.f32.mrb[43].mxu1  ;;  %v1242_v10 = vadd.f32 %v1236_v5, %v6438_v3  ;;  %v6696_v55 = vsub.s32 7, %v6459_v11 }
 0x529   :  { %v1244_v13 = vsel %vm158_vm1, %v1242_v10, 0.0  ;;  %v1243_v14 = vadd.f32 %v1239_v8, %v6440_v4  ;;  %v5996_v4 = vld [vmem:[#allocation7 + $0x58] sm:$0xff]   ;;  %v1368_v63 = vrot.slane %v6467_v19, %v6696_v55 }
 0x52a   :  { %1245 = vadd.xlane.f32.xlu0 %v1244_v13  ;;  %5570 = vmatpush3.bf16.msra.mxu1 %v5996_v4 }
 0x52b   :  { %v1247_v18 = vsel %vm158_vm1, %v1243_v14, 0.0  ;;  %5583 = vmatprep.subr.bf16.mxu1 %v6324_v0 }
 0x52c   :  { %1248 = vadd.xlane.f32.xlu1 %v1247_v18 }
 0x52d   :  { %5572 = vmatmul.mubr.msk.bf16.vlgmr.msra.gmra.mrb[44].mxu1 %vm158_vm1, %v6661_v26 }
 0x52e   :  { %5585 = vmatprep.mubr.msk.bf16.mxu1 %vm6325_vm0, %v6324_v0 }
 0x5b7   :  { %v1246_v20 = vpop.xlane.xlu0 %1245 }
 0x5b8   :  { %v1251_v21 = vmul.f32 0.03125, %v1246_v20 }
 0x5b9   :  { %v1249_v23 = vpop.xlane.xlu1 %1248 }
 0x5ba   :  { %v1253_v24 = vsub.f32 %v1242_v10, %v1251_v21  ;;  %v1252_v25 = vmul.f32 0.03125, %v1249_v23  ;;  %v6705_v21 = vsub.s32 6, %v6459_v11 }
 0x5bc   :  { %v1254_v28 = vsub.f32 %v1243_v14, %v1252_v25  ;;  %v1255_v29 = vmul.f32 %v1253_v24, %v1253_v24  ;;  %v1307_v23 = vrot.slane %v6467_v19, %v6705_v21 }
 0x5be   :  { %v1257_v12 = vsel %vm158_vm1, %v1255_v29, 0.0  ;;  %v1256_v31 = vmul.f32 %v1254_v28, %v1254_v28 }
 0x5bf   :  { %1258 = vadd.xlane.f32.xlu0 %v1257_v12 }
 0x5c0   :  { %v1260_v3 = vsel %vm158_vm1, %v1256_v31, 0.0 }
 0x5c1   :  { %1261 = vadd.xlane.f32.xlu1 %v1260_v3 }
 0x600   :  { %v1418_v5 = vpop.f32.mrb[44].mxu1 }
 0x601   :  { %v1419_v6 = vadd.f32 %v1418_v5, %v1368_v63  ;;  %v5573_v7 = vpop.f32.mrb[45].mxu1 }
 0x602   :  { %v1421_v8 = vpop.f32.mrb[46].mxu1 }
 0x603   :  { %v1498_v9 = vpack.c.bf16 %v1419_v6, %v1419_v6  ;;  %v1422_v10 = vadd.f32 %v1421_v8, %v1368_v63  ;;  %v5574_v13 = vpop.f32.mrb[47].mxu1 }
 0x605   :  { %v1520_v14 = vsel %vm158_vm1, %v1498_v9, 0  ;;  %v1499_v18 = vpack.c.bf16 %v1422_v10, %v1422_v10 }
 0x606   :  { %5584 = vmatpush3.bf16.xpose.msra.mxu1 %v1520_v14 }
 0x607   :  { %v1566_v20 = vsel %vm158_vm1, %v1499_v18, 0  ;;  %5595 = vmatprep.subr.bf16.mxu1 %v6324_v0 }
 0x64c   :  { %v1259_v35 = vpop.xlane.xlu0 %1258 }
 0x64d   :  { %v1263_v36 = vmul.f32 0.03125, %v1259_v35 }
 0x64e   :  { %v1262_v40 = vpop.xlane.xlu1 %1261 }
 0x64f   :  { %v1265_v41 = vadd.f32 1e-05, %v1263_v36  ;;  %v1264_v38 = vmul.f32 0.03125, %v1262_v40 }
 0x651   :  { %6055 = vrsqrt.f32 %v1265_v41  ;;  %v1266_v44 = vadd.f32 1e-05, %v1264_v38 }
 0x653   :  { %6057 = vrsqrt.f32 %v1266_v44 }
 0x65b   :  { %v6056_v48 = vpop.eup %6055 }
 0x65c   :  { %v1269_v47 = vmul.f32 %v6056_v48, %v1253_v24 }
 0x65d   :  { %v6058_v52 = vpop.eup %6057 }
 0x65e   :  { %v1275_v2 = vmul.f32 %v1274_v46, %v1269_v47  ;;  %v1270_v54 = vmul.f32 %v6058_v52, %v1254_v28 }
 0x660   :  { %v1276_v50 = vmul.f32 %v1274_v46, %v1270_v54  ;;  %v6680_v57 = vadd.f32 %v1280_v56, %v1275_v2  ;;  %v6747_v54 = vld [vmem:[#allocation10 + $0x8] sm:$0xff] }
 0x662   :  { %v6682_v59 = vadd.f32 %v1280_v56, %v1276_v50  ;;  %v1428_v56 = vrot.slane %v6747_v54, %v6465_v17 }
 0x664   :  { %v1303_v53 = vpack.c.bf16 %v6682_v59, %v6680_v57 }
 0x666   :  { %5564 = vmatmul.mubr.msk.bf16.vlgmr.msra.gmra.mrb[36].mxu0 %vm158_vm1, %v1303_v53 }
 0x667   :  { %5576 = vmatpush3.bf16.msra.mxu0 %v5999_v60  ;;  %5579 = vmatprep.mubr.msk.bf16.mxu0 %vm6325_vm0, %v6324_v0 }
 0x668   :  { %5577 = vmatprep.subr.bf16.mxu0 %v6324_v0 }
 0x66b   :  { %5578 = vmatpush3.bf16.msra.mxu0 %v6000_v61 }
 0x66c   :  { %5589 = vmatprep.subr.bf16.mxu0 %v6324_v0 }
 0x66e   :  { %5580 = vmatmul.mubr.msk.bf16.vlgmr.msra.gmra.mrb[40].mxu0 %vm158_vm1, %v6661_v26 }
 0x66f   :  { %5591 = vmatprep.mubr.msk.bf16.mxu0 %vm6325_vm0, %v6324_v0 }
 0x674   :  { %5590 = vmatpush3.bf16.xpose.msra.mxu0 %v1566_v20 }
 0x675   :  { %5601 = vmatprep.subr.bf16.mxu0 %v6324_v0 }
 0x739   :  { %v1357_v24 = vpop.f32.mrb[36].mxu0 }
 0x73a   :  { %v1358_v25 = vadd.f32 %v1357_v24, %v1307_v23  ;;  %v5565_v28 = vpop.f32.mrb[37].mxu0 }
 0x73b   :  { %v1360_v29 = vpop.f32.mrb[38].mxu0 }
 0x73c   :  { %v1482_v12 = vmul.f32 %v1358_v25, %v6477_v27  ;;  %v5566_v31 = vpop.f32.mrb[39].mxu0  ;;  %v1361_v3 = vadd.f32 %v1360_v29, %v1307_v23  ;;  %v1484_v33 = vmul.f32 %v1358_v25, %v6489_v39  ;;  %v1486_v41 = vmul.f32 %v1358_v25, %v6505_v45 }
 0x73d   :  { %v1488_v48 = vmul.f32 %v1358_v25, %v6521_v51 }
 0x73e   :  { %v1490_v32 = vpack.c.bf16 %v1482_v12, %v1482_v12  ;;  %v1483_v4 = vmul.f32 %v1361_v3, %v6477_v27  ;;  %v1485_v35 = vmul.f32 %v1361_v3, %v6489_v39  ;;  %v1492_v36 = vpack.c.bf16 %v1484_v33, %v1484_v33 }
 0x73f   :  { %v1487_v38 = vmul.f32 %v1361_v3, %v6505_v45  ;;  %v1494_v44 = vpack.c.bf16 %v1486_v41, %v1486_v41  ;;  %v1489_v47 = vmul.f32 %v1361_v3, %v6521_v51  ;;  %v1496_v52 = vpack.c.bf16 %v1488_v48, %v1488_v48 }
 0x740   :  { %5586 = vmatmul.mubr.msk.bf16.vlgmr.msra.gmra.mrb[48].mxu1 %vm158_vm1, %v1490_v32  ;;  %v1491_v16 = vpack.c.bf16 %v1483_v4, %v1483_v4  ;;  %v1493_v40 = vpack.c.bf16 %v1485_v35, %v1485_v35 }
 0x741   :  { %5596 = vmatpush3.bf16.xpose.msra.mxu1 %v1520_v14  ;;  %v1475_v11 = vpop.f32.mrb[40].mxu0  ;;  %5597 = vmatprep.mubr.msk.bf16.mxu1 %vm6325_vm0, %v6324_v0  ;;  %v1495_v46 = vpack.c.bf16 %v1487_v38, %v1487_v38  ;;  %v1497_v2 = vpack.c.bf16 %v1489_v47, %v1489_v47 }
 0x742   :  { %5607 = vmatprep.subr.bf16.mxu1 %v6324_v0  ;;  %v5581_v19 = vpop.f32.mrb[41].mxu0  ;;  %5592 = vmatmul.mubr.msk.bf16.vlgmr.msra.gmra.mrb[44].mxu0 %vm158_vm1, %v1491_v16  ;;  %v6751_v50 = vadd.f32 %v1475_v11, %v1428_v56 }
 0x743   :  { %v1478_v34 = vpop.f32.mrb[42].mxu0  ;;  %5602 = vmatpush3.bf16.xpose.msra.mxu0 %v1566_v20  ;;  %5603 = vmatprep.mubr.msk.bf16.mxu0 %vm6325_vm0, %v6324_v0 }
 0x744   :  { %v5582_v30 = vpop.f32.mrb[43].mxu0  ;;  %5613 = vmatprep.subr.bf16.mxu0 %v6324_v0  ;;  %v6753_v60 = vadd.f32 %v1478_v34, %v1428_v56  ;;  %v1500_v53 = vmul.f32 %v6474_v22, %v6751_v50 }
 0x746   :  { %v1501_v61 = vmul.f32 %v6474_v22, %v6753_v60  ;;  %v1508_v63 = vpack.c.bf16 %v1500_v53, %v1500_v53 }
 0x748   :  { %5598 = vmatmul.mubr.msk.bf16.vlgmr.msra.gmra.mrb[52].mxu1 %vm158_vm1, %v1492_v36  ;;  %v1509_v5 = vpack.c.bf16 %v1501_v61, %v1501_v61  ;;  %v1966_v6 = vsel %vm801_vm12, %v1508_v63, 0 }
 0x749   :  { %5608 = vmatpush3.bf16.xpose.msra.mxu1 %v1520_v14  ;;  %5609 = vmatprep.mubr.msk.bf16.mxu1 %vm6325_vm0, %v6324_v0 }
 0x74a   :  { %5619 = vmatprep.subr.bf16.mxu1 %v6324_v0  ;;  %5604 = vmatmul.mubr.msk.bf16.vlgmr.msra.gmra.mrb[48].mxu0 %vm158_vm1, %v1493_v40  ;;  %v2012_v7 = vsel %vm801_vm12, %v1509_v5, 0 }
 0x74b   :  { %5614 = vmatpush3.bf16.xpose.msra.mxu0 %v1566_v20  ;;  %5615 = vmatprep.mubr.msk.bf16.mxu0 %vm6325_vm0, %v6324_v0 }
 0x74c   :  { %5625 = vmatprep.subr.bf16.mxu0 %v6324_v0 }
 0x750   :  { %5610 = vmatmul.mubr.msk.bf16.vlgmr.msra.gmra.mrb[56].mxu1 %vm158_vm1, %v1494_v44 }
 0x751   :  { %5620 = vmatpush3.bf16.xpose.msra.mxu1 %v1520_v14  ;;  %5621 = vmatprep.mubr.msk.bf16.mxu1 %vm6325_vm0, %v6324_v0 }
 0x752   :  { %5631 = vmatprep.subr.bf16.mxu1 %v6324_v0  ;;  %5616 = vmatmul.mubr.msk.bf16.vlgmr.msra.gmra.mrb[52].mxu0 %vm158_vm1, %v1495_v46 }
 0x753   :  { %5626 = vmatpush3.bf16.xpose.msra.mxu0 %v1566_v20  ;;  %5627 = vmatprep.mubr.msk.bf16.mxu0 %vm6325_vm0, %v6324_v0 }
 0x754   :  { %5637 = vmatprep.subr.bf16.mxu0 %v6324_v0 }
 0x758   :  { %5622 = vmatmul.mubr.msk.bf16.vlgmr.msra.gmra.mrb[60].mxu1 %vm158_vm1, %v1496_v52 }
 0x759   :  { %5633 = vmatprep.mubr.msk.bf16.mxu1 %vm6325_vm0, %v6324_v0  ;;  %5632 = vmatpush3.bf16.msra.mxu1 %v1966_v6 }
 0x75a   :  { %5628 = vmatmul.mubr.msk.bf16.vlgmr.msra.gmra.mrb[56].mxu0 %vm158_vm1, %v1497_v2  ;;  %5643 = vmatprep.subr.bf16.mxu1 %v6324_v0 }
 0x75b   :  { %5639 = vmatprep.mubr.msk.bf16.mxu0 %vm6325_vm0, %v6324_v0  ;;  %5638 = vmatpush3.bf16.msra.mxu0 %v2012_v7 }
 0x75c   :  { %5649 = vmatprep.subr.bf16.mxu0 %v6324_v0 }
 0x813   :  { %v1556_v8 = vpop.f32.mrb[48].mxu1 }
 0x814   :  { %v5587_v9 = vpop.f32.mrb[49].mxu1  ;;  %v1866_v10 = vsel %vm701_vm13, %v1556_v8, -inf }
 0x815   :  { %1867 = vmax.xlane.f32.xlu0 %v1866_v10  ;;  %v1559_v13 = vpop.f32.mrb[50].mxu1  ;;  %v1602_v14 = vpop.f32.mrb[44].mxu0 }
 0x816   :  { %v5588_v18 = vpop.f32.mrb[51].mxu1  ;;  %v5593_v20 = vpop.f32.mrb[45].mxu0  ;;  %v1869_v23 = vsel %vm701_vm13, %v1602_v14, -inf }
 0x817   :  { %1870 = vmax.xlane.f32.xlu1 %v1869_v23  ;;  %v1605_v24 = vpop.f32.mrb[46].mxu0 }
 0x818   :  { %v5594_v25 = vpop.f32.mrb[47].mxu0 }
 0x81b   :  { %v1645_v28 = vpop.f32.mrb[52].mxu1 }
 0x81c   :  { %v5599_v29 = vpop.f32.mrb[53].mxu1  ;;  %v1872_v12 = vsel %vm701_vm13, %v1645_v28, -inf }
 0x81d   :  { %1873 = vmax.xlane.f32.xlu0 %v1872_v12  ;;  %v1648_v31 = vpop.f32.mrb[54].mxu1  ;;  %v1688_v3 = vpop.f32.mrb[48].mxu0 }
 0x81e   :  { %v5600_v32 = vpop.f32.mrb[55].mxu1  ;;  %v5605_v4 = vpop.f32.mrb[49].mxu0  ;;  %v1875_v16 = vsel %vm701_vm13, %v1688_v3, -inf }
 0x81f   :  { %1876 = vmax.xlane.f32.xlu1 %v1875_v16  ;;  %v1691_v11 = vpop.f32.mrb[50].mxu0 }
 0x820   :  { %v5606_v33 = vpop.f32.mrb[51].mxu0 }
 0x823   :  { %v1731_v19 = vpop.f32.mrb[56].mxu1 }
 0x824   :  { %v5611_v34 = vpop.f32.mrb[57].mxu1  ;;  %v1878_v30 = vsel %vm701_vm13, %v1731_v19, -inf }
 0x825   :  { %1879 = vmax.xlane.f32.xlu0 %v1878_v30  ;;  %v1734_v35 = vpop.f32.mrb[58].mxu1  ;;  %v1774_v36 = vpop.f32.mrb[52].mxu0 }
 0x826   :  { %v5612_v40 = vpop.f32.mrb[59].mxu1  ;;  %v5617_v41 = vpop.f32.mrb[53].mxu0  ;;  %v1881_v38 = vsel %vm701_vm13, %v1774_v36, -inf }
 0x827   :  { %1882 = vmax.xlane.f32.xlu1 %v1881_v38  ;;  %v1777_v44 = vpop.f32.mrb[54].mxu0 }
 0x828   :  { %v5618_v46 = vpop.f32.mrb[55].mxu0 }
 0x82b   :  { %v1817_v48 = vpop.f32.mrb[60].mxu1 }
 0x82c   :  { %v5623_v47 = vpop.f32.mrb[61].mxu1  ;;  %v1884_v52 = vsel %vm701_vm13, %v1817_v48, -inf }
 0x82d   :  { %1885 = vmax.xlane.f32.xlu0 %v1884_v52  ;;  %v1820_v2 = vpop.f32.mrb[62].mxu1  ;;  %v1860_v56 = vpop.f32.mrb[56].mxu0 }
 0x82e   :  { %v5624_v53 = vpop.f32.mrb[63].mxu1  ;;  %v5629_v61 = vpop.f32.mrb[57].mxu0  ;;  %v1887_v63 = vsel %vm701_vm13, %v1860_v56, -inf }
 0x82f   :  { %1888 = vmax.xlane.f32.xlu1 %v1887_v63  ;;  %v1863_v5 = vpop.f32.mrb[58].mxu0 }
 0x830   :  { %v5630_v6 = vpop.f32.mrb[59].mxu0 }
 0x8a2   :  { %v1868_v7 = vpop.xlane.xlu0 %1867 }
 0x8a3   :  { %v1890_v9 = vsub.f32 %v1556_v8, %v1868_v7 }
 0x8a4   :  { %v1871_v13 = vpop.xlane.xlu1 %1870 }
 0x8a5   :  { %v1898_v10 = vmul.f32 1.442695, %v1890_v9  ;;  %v1891_v18 = vsub.f32 %v1602_v14, %v1871_v13 }
 0x8a7   :  { %6059 = vpow2.f32 %v1898_v10  ;;  %v1900_v20 = vmul.f32 1.442695, %v1891_v18  ;;  %v1502_v10 = vmul.f32 %v6484_v37, %v6751_v50 }
 0x8a9   :  { %6061 = vpow2.f32 %v1900_v20  ;;  %v1503_v20 = vmul.f32 %v6484_v37, %v6753_v60 }
 0x8aa   :  { %v1874_v23 = vpop.xlane.xlu0 %1873 }
 0x8ab   :  { %v1892_v24 = vsub.f32 %v1645_v28, %v1874_v23 }
 0x8ac   :  { %v1877_v29 = vpop.xlane.xlu1 %1876 }
 0x8ad   :  { %v1902_v25 = vmul.f32 1.442695, %v1892_v24  ;;  %v1893_v12 = vsub.f32 %v1688_v3, %v1877_v29  ;;  %v1510_v24 = vpack.c.bf16 %v1502_v10, %v1502_v10 }
 0x8af   :  { %6063 = vpow2.f32 %v1902_v25  ;;  %v1904_v31 = vmul.f32 1.442695, %v1893_v12 }
 0x8b1   :  { %v6060_v32 = vpop.eup %6059  ;;  %6065 = vpow2.f32 %v1904_v31  ;;  %v1511_v31 = vpack.c.bf16 %v1503_v20, %v1503_v20 }
 0x8b2   :  { %v1880_v4 = vpop.xlane.xlu0 %1879  ;;  %v1914_v16 = vsel %vm701_vm13, %v6060_v32, 0.0 }
 0x8b3   :  { %v1894_v11 = vsub.f32 %v1731_v19, %v1880_v4  ;;  %1915 = vadd.xlane.f32.xlu0 %v1914_v16  ;;  %v6062_v8 = vpop.eup %6061  ;;  %v2058_v4 = vsel %vm801_vm12, %v1510_v24, 0 }
 0x8b4   :  { %v1883_v14 = vpop.xlane.xlu1 %1882  ;;  %v1917_v34 = vsel %vm701_vm13, %v6062_v8, 0.0 }
 0x8b5   :  { %v1906_v33 = vmul.f32 1.442695, %v1894_v11  ;;  %v1895_v30 = vsub.f32 %v1774_v36, %v1883_v14  ;;  %1918 = vadd.xlane.f32.xlu1 %v1917_v34  ;;  %v1504_v11 = vmul.f32 %v6498_v43, %v6751_v50  ;;  %v1505_v34 = vmul.f32 %v6498_v43, %v6753_v60 }
 0x8b7   :  { %6067 = vpow2.f32 %v1906_v33  ;;  %v1908_v28 = vmul.f32 1.442695, %v1895_v30 }
 0x8b9   :  { %v6064_v35 = vpop.eup %6063  ;;  %6069 = vpow2.f32 %v1908_v28  ;;  %v1512_v28 = vpack.c.bf16 %v1504_v11, %v1504_v11 }
 0x8ba   :  { %v1886_v3 = vpop.xlane.xlu0 %1885  ;;  %v1920_v40 = vsel %vm701_vm13, %v6064_v35, 0.0 }
 0x8bb   :  { %v1896_v41 = vsub.f32 %v1817_v48, %v1886_v3  ;;  %1921 = vadd.xlane.f32.xlu0 %v1920_v40  ;;  %v6066_v38 = vpop.eup %6065 }
 0x8bc   :  { %v1889_v19 = vpop.xlane.xlu1 %1888  ;;  %v1923_v46 = vsel %vm701_vm13, %v6066_v38, 0.0 }
 0x8bd   :  { %v1910_v44 = vmul.f32 1.442695, %v1896_v41  ;;  %v1897_v47 = vsub.f32 %v1860_v56, %v1889_v19  ;;  %1924 = vadd.xlane.f32.xlu1 %v1923_v46  ;;  %v2150_v19 = vsel %vm801_vm12, %v1512_v28, 0 }
 0x8bf   :  { %6071 = vpow2.f32 %v1910_v44  ;;  %v1912_v52 = vmul.f32 1.442695, %v1897_v47  ;;  %v1513_v44 = vpack.c.bf16 %v1505_v34, %v1505_v34 }
 0x8c1   :  { %v6775_v36 = vpop.eup %6067  ;;  %6073 = vpow2.f32 %v1912_v52 }
 0x8c2   :  { %v1926_v2 = vsel %vm701_vm13, %v6775_v36, 0.0 }
 0x8c3   :  { %1927 = vadd.xlane.f32.xlu0 %v1926_v2  ;;  %v6779_v53 = vpop.eup %6069 }
 0x8c4   :  { %v1929_v48 = vsel %vm701_vm13, %v6779_v53, 0.0 }
 0x8c5   :  { %1930 = vadd.xlane.f32.xlu1 %v1929_v48  ;;  %v1507_v48 = vmul.f32 %v6514_v49, %v6753_v60 }
 0x8c9   :  { %v6783_v61 = vpop.eup %6071 }
 0x8ca   :  { %v1932_v56 = vsel %vm701_vm13, %v6783_v61, 0.0 }
 0x8cb   :  { %1933 = vadd.xlane.f32.xlu0 %v1932_v56  ;;  %v6787_v63 = vpop.eup %6073 }
 0x8cc   :  { %v1935_v5 = vsel %vm701_vm13, %v6787_v63, 0.0 }
 0x8cd   :  { %1936 = vadd.xlane.f32.xlu1 %v1935_v5 }
 0x940   :  { %v1916_v6 = vpop.xlane.xlu0 %1915 }
 0x941   :  { %6075 = vrcp.f32 %v1916_v6 }
 0x942   :  { %v1919_v7 = vpop.xlane.xlu1 %1918 }
 0x943   :  { %6077 = vrcp.f32 %v1919_v7 }
 0x948   :  { %v1922_v9 = vpop.xlane.xlu0 %1921 }
 0x949   :  { %6079 = vrcp.f32 %v1922_v9  ;;  %v1515_v9 = vpack.c.bf16 %v1507_v48, %v1507_v48 }
 0x94a   :  { %v1925_v18 = vpop.xlane.xlu1 %1924 }
 0x94b   :  { %v6076_v13 = vpop.eup %6075  ;;  %6081 = vrcp.f32 %v1925_v18 }
 0x94c   :  { %v1946_v23 = vmul.f32 %v6076_v13, %v6060_v32  ;;  %v2288_v13 = vsel %vm801_vm12, %v1515_v9, 0 }
 0x94d   :  { %v6078_v25 = vpop.eup %6077 }
 0x94e   :  { %v1954_v29 = vpack.c.bf16 %v1946_v23, %v1946_v23  ;;  %v1947_v12 = vmul.f32 %v6078_v25, %v6062_v8  ;;  %v2104_v8 = vsel %vm801_vm12, %v1511_v31, 0  ;;  %v6002_v25 = vld [vmem:[#allocation7 + $0x78] sm:$0xff]  }
 0x950   :  { %5634 = vmatmul.mubr.msk.bf16.vlgmr.msra.gmra.mrb[64].mxu1 %vm701_vm13, %v1954_v29  ;;  %v1928_v16 = vpop.xlane.xlu0 %1927  ;;  %v1955_v33 = vpack.c.bf16 %v1947_v12, %v1947_v12 }
 0x951   :  { %5644 = vmatpush3.bf16.msra.mxu1 %v2058_v4  ;;  %6083 = vrcp.f32 %v1928_v16  ;;  %5645 = vmatprep.mubr.msk.bf16.mxu1 %vm6325_vm0, %v6324_v0 }
 0x952   :  { %5655 = vmatprep.subr.bf16.mxu1 %v6324_v0  ;;  %5640 = vmatmul.mubr.msk.bf16.vlgmr.msra.gmra.mrb[60].mxu0 %vm701_vm13, %v1955_v33  ;;  %v1931_v14 = vpop.xlane.xlu1 %1930 }
 0x953   :  { %v6080_v32 = vpop.eup %6079  ;;  %5650 = vmatpush3.bf16.msra.mxu0 %v2104_v8  ;;  %6085 = vrcp.f32 %v1931_v14  ;;  %5651 = vmatprep.mubr.msk.bf16.mxu0 %vm6325_vm0, %v6324_v0 }
 0x954   :  { %v1948_v30 = vmul.f32 %v6080_v32, %v6064_v35  ;;  %5661 = vmatprep.subr.bf16.mxu0 %v6324_v0  ;;  %v1506_v35 = vmul.f32 %v6514_v49, %v6751_v50 }
 0x955   :  { %v6082_v3 = vpop.eup %6081 }
 0x956   :  { %v1956_v40 = vpack.c.bf16 %v1948_v30, %v1948_v30  ;;  %v1949_v41 = vmul.f32 %v6082_v3, %v6066_v38  ;;  %v2196_v38 = vsel %vm801_vm12, %v1513_v44, 0  ;;  %v1514_v50 = vpack.c.bf16 %v1506_v35, %v1506_v35 }
 0x958   :  { %5646 = vmatmul.mubr.msk.bf16.vlgmr.msra.gmra.mrb[68].mxu1 %vm701_vm13, %v1956_v40  ;;  %v1934_v46 = vpop.xlane.xlu0 %1933  ;;  %v1957_v47 = vpack.c.bf16 %v1949_v41, %v1949_v41  ;;  %v2242_v10 = vsel %vm801_vm12, %v1514_v50, 0 }
 0x959   :  { %5656 = vmatpush3.bf16.msra.mxu1 %v2150_v19  ;;  %6087 = vrcp.f32 %v1934_v46  ;;  %5657 = vmatprep.mubr.msk.bf16.mxu1 %vm6325_vm0, %v6324_v0 }
 0x95a   :  { %5667 = vmatprep.subr.bf16.mxu1 %v6324_v0  ;;  %5652 = vmatmul.mubr.msk.bf16.vlgmr.msra.gmra.mrb[64].mxu0 %vm701_vm13, %v1957_v47  ;;  %v1937_v2 = vpop.xlane.xlu1 %1936 }
 0x95b   :  { %v6084_v52 = vpop.eup %6083  ;;  %5662 = vmatpush3.bf16.msra.mxu0 %v2196_v38  ;;  %6089 = vrcp.f32 %v1937_v2  ;;  %5663 = vmatprep.mubr.msk.bf16.mxu0 %vm6325_vm0, %v6324_v0 }
 0x95c   :  { %v1950_v56 = vmul.f32 %v6084_v52, %v6775_v36  ;;  %5673 = vmatprep.subr.bf16.mxu0 %v6324_v0 }
 0x95d   :  { %v6086_v5 = vpop.eup %6085 }
 0x95e   :  { %v1958_v6 = vpack.c.bf16 %v1950_v56, %v1950_v56  ;;  %v1951_v7 = vmul.f32 %v6086_v5, %v6779_v53 }
 0x960   :  { %5658 = vmatmul.mubr.msk.bf16.vlgmr.msra.gmra.mrb[72].mxu1 %vm701_vm13, %v1958_v6  ;;  %v1959_v60 = vpack.c.bf16 %v1951_v7, %v1951_v7 }
 0x961   :  { %5668 = vmatpush3.bf16.msra.mxu1 %v2242_v10  ;;  %5669 = vmatprep.mubr.msk.bf16.mxu1 %vm6325_vm0, %v6324_v0 }
 0x962   :  { %5679 = vmatprep.subr.bf16.mxu1 %v6324_v0  ;;  %5664 = vmatmul.mubr.msk.bf16.vlgmr.msra.gmra.mrb[68].mxu0 %vm701_vm13, %v1959_v60 }
 0x963   :  { %v6088_v36 = vpop.eup %6087  ;;  %5674 = vmatpush3.bf16.msra.mxu0 %v2288_v13  ;;  %5675 = vmatprep.mubr.msk.bf16.mxu0 %vm6325_vm0, %v6324_v0 }
 0x964   :  { %v1952_v18 = vmul.f32 %v6088_v36, %v6783_v61  ;;  %5687 = vmatprep.subr.bf16.mxu0 %v6324_v0  ;;  %v6001_v61 = vld [vmem:[#allocation7 + $0x70] sm:$0xff]  }
 0x965   :  { %v6090_v53 = vpop.eup %6089 }
 0x966   :  { %v1960_v20 = vpack.c.bf16 %v1952_v18, %v1952_v18  ;;  %v1953_v23 = vmul.f32 %v6090_v53, %v6787_v63 }
 0x968   :  { %5670 = vmatmul.mubr.msk.bf16.vlgmr.msra.gmra.mrb[76].mxu1 %vm701_vm13, %v1960_v20  ;;  %v1961_v24 = vpack.c.bf16 %v1953_v23, %v1953_v23 }
 0x969   :  { %5683 = vmatprep.mubr.msk.bf16.mxu1 %vm6325_vm0, %v6324_v0  ;;  %5680 = vmatpush3.bf16.msra.mxu1 %v6001_v61 }
 0x96a   :  { %5676 = vmatmul.mubr.msk.bf16.vlgmr.msra.gmra.mrb[72].mxu0 %vm701_vm13, %v1961_v24  ;;  %5681 = vmatprep.subr.bf16.mxu1 %v6324_v0 }
 0x96b   :  { %5691 = vmatprep.mubr.msk.bf16.mxu0 %vm6325_vm0, %v6324_v0 }
 0x96d   :  { %5682 = vmatpush3.bf16.msra.mxu1 %v6002_v25 }
 0x96e   :  { %5695 = vmatprep.subr.bf16.mxu1 %v6324_v0 }
 0xa23   :  { %v2002_v63 = vpop.f32.mrb[64].mxu1 }
 0xa24   :  { %v5635_v29 = vpop.f32.mrb[65].mxu1  ;;  %v2330_v8 = vsel %vm158_vm1, %v2002_v63, 0.0 }
 0xa25   :  { %v2005_v12 = vpop.f32.mrb[66].mxu1  ;;  %v2048_v31 = vpop.f32.mrb[60].mxu0 }
 0xa26   :  { %v5636_v4 = vpop.f32.mrb[67].mxu1  ;;  %v5641_v16 = vpop.f32.mrb[61].mxu0  ;;  %v2337_v41 = vsel %vm158_vm1, %v2048_v31, 0.0 }
 0xa27   :  { %v2051_v11 = vpop.f32.mrb[62].mxu0  ;;  %v2348_v4 = vrot.slane %v6747_v54, %v6462_v15 }
 0xa28   :  { %v5642_v33 = vpop.f32.mrb[63].mxu0 }
 0xa2b   :  { %v2094_v32 = vpop.f32.mrb[68].mxu1 }
 0xa2c   :  { %v2331_v14 = vsel %vm158_vm1, %v2094_v32, 0.0  ;;  %v5647_v34 = vpop.f32.mrb[69].mxu1 }
 0xa2d   :  { %v2332_v30 = vadd.f32 %v2331_v14, %v2330_v8  ;;  %v2097_v28 = vpop.f32.mrb[70].mxu1  ;;  %v2140_v3 = vpop.f32.mrb[64].mxu0 }
 0xa2e   :  { %v5648_v40 = vpop.f32.mrb[71].mxu1  ;;  %v2338_v44 = vsel %vm158_vm1, %v2140_v3, 0.0  ;;  %v5653_v19 = vpop.f32.mrb[65].mxu0 }
 0xa2f   :  { %v2339_v46 = vadd.f32 %v2338_v44, %v2337_v41  ;;  %v2143_v35 = vpop.f32.mrb[66].mxu0 }
 0xa30   :  { %v5654_v47 = vpop.f32.mrb[67].mxu0 }
 0xa33   :  { %v2186_v52 = vpop.f32.mrb[72].mxu1 }
 0xa34   :  { %v2333_v38 = vsel %vm158_vm1, %v2186_v52, 0.0  ;;  %v5659_v2 = vpop.f32.mrb[73].mxu1 }
 0xa35   :  { %v2334_v48 = vadd.f32 %v2333_v38, %v2332_v30  ;;  %v2189_v56 = vpop.f32.mrb[74].mxu1  ;;  %v2232_v50 = vpop.f32.mrb[68].mxu0  ;;  %v6003_v2 = vld [vmem:[#allocation8] sm:$0xff]  }
 0xa36   :  { %v5660_v5 = vpop.f32.mrb[75].mxu1  ;;  %v2340_v6 = vsel %vm158_vm1, %v2232_v50, 0.0  ;;  %v5665_v7 = vpop.f32.mrb[69].mxu0  ;;  %5688 = vmatpush3.bf16.msra.mxu0 %v6003_v2 }
 0xa37   :  { %v2341_v9 = vadd.f32 %v2340_v6, %v2339_v46  ;;  %v2235_v10 = vpop.f32.mrb[70].mxu0  ;;  %5689 = vmatprep.subr.bf16.mxu0 %v6324_v0 }
 0xa38   :  { %v5666_v60 = vpop.f32.mrb[71].mxu0 }
 0xa39   :  { %v2436_v60 = vrot.slane %v6747_v54, %v6540_v58 }
 0xa3b   :  { %v2278_v36 = vpop.f32.mrb[76].mxu1 }
 0xa3c   :  { %v2335_v13 = vsel %vm158_vm1, %v2278_v36, 0.0  ;;  %v5671_v18 = vpop.f32.mrb[77].mxu1 }
 0xa3d   :  { %v2336_v53 = vadd.f32 %v2335_v13, %v2334_v48  ;;  %v2281_v20 = vpop.f32.mrb[78].mxu1  ;;  %v2324_v23 = vpop.f32.mrb[72].mxu0 }
 0xa3e   :  { %v5672_v24 = vpop.f32.mrb[79].mxu1  ;;  %v2342_v61 = vsel %vm158_vm1, %v2324_v23, 0.0  ;;  %v5677_v25 = vpop.f32.mrb[73].mxu0  ;;  %v2442_v23 = vrot.slane %v6747_v54, %v6650_v62 }
 0xa3f   :  { %v2343_v63 = vadd.f32 %v2342_v61, %v2341_v9  ;;  %v2327_v29 = vpop.f32.mrb[74].mxu0 }
 0xa40   :  { %v5678_v12 = vpop.f32.mrb[75].mxu0 }
 0xa41   :  { %v2344_v31 = vpack.c.bf16 %v2343_v63, %v2336_v53 }
 0xa43   :  { %5684 = vmatmul.mubr.msk.bf16.vlgmr.msra.gmra.mrb[80].mxu1 %vm158_vm1, %v2344_v31  ;;  %v2453_v31 = vrot.slane %v6747_v54, %v6671_v1 }
 0xa44   :  { %5699 = vmatprep.mubr.msk.bf16.mxu1 %vm6325_vm0, %v6324_v0 }
 0xb16   :  { %v2398_v16 = vpop.f32.mrb[80].mxu1 }
 0xb17   :  { %v2399_v11 = vadd.f32 %v2398_v16, %v2348_v4  ;;  %v5685_v33 = vpop.f32.mrb[81].mxu1 }
 0xb18   :  { %v2401_v32 = vpop.f32.mrb[82].mxu1 }
 0xb19   :  { %v2402_v8 = vadd.f32 %v2401_v32, %v2348_v4  ;;  %v5686_v14 = vpop.f32.mrb[83].mxu1  ;;  %v2405_v34 = vadd.f32 %v2399_v11, %v6680_v57 }
 0xb1b   :  { %v2407_v30 = vsel %vm158_vm1, %v2405_v34, 0.0  ;;  %v2406_v28 = vadd.f32 %v2402_v8, %v6682_v59  ;;  %v6004_v59 = vld [vmem:[#allocation8 + $0x8] sm:$0xff]  }
 0xb1c   :  { %2408 = vadd.xlane.f32.xlu0 %v2407_v30  ;;  %5690 = vmatpush3.bf16.msra.mxu0 %v6004_v59 }
 0xb1d   :  { %v2410_v3 = vsel %vm158_vm1, %v2406_v28, 0.0  ;;  %5703 = vmatprep.subr.bf16.mxu0 %v6324_v0 }
 0xb1e   :  { %2411 = vadd.xlane.f32.xlu1 %v2410_v3 }
 0xba9   :  { %v2409_v40 = vpop.xlane.xlu0 %2408 }
 0xbaa   :  { %v2413_v41 = vmul.f32 0.03125, %v2409_v40 }
 0xbab   :  { %v2412_v44 = vpop.xlane.xlu1 %2411 }
 0xbac   :  { %v2415_v19 = vsub.f32 %v2405_v34, %v2413_v41  ;;  %v2414_v46 = vmul.f32 0.03125, %v2412_v44 }
 0xbae   :  { %v2416_v35 = vsub.f32 %v2406_v28, %v2414_v46  ;;  %v2417_v47 = vmul.f32 %v2415_v19, %v2415_v19  ;;  %v2516_v28 = vrot.slane %v6747_v54, %v6676_v42 }
 0xbb0   :  { %v2419_v52 = vsel %vm158_vm1, %v2417_v47, 0.0  ;;  %v2418_v38 = vmul.f32 %v2416_v35, %v2416_v35 }
 0xbb1   :  { %2420 = vadd.xlane.f32.xlu0 %v2419_v52 }
 0xbb2   :  { %v2422_v57 = vsel %vm158_vm1, %v2418_v38, 0.0 }
 0xbb3   :  { %2423 = vadd.xlane.f32.xlu1 %v2422_v57 }
 0xbc4   :  { %2519 = vrot.lane.b32.xlu1 %v6004_v59, %s6320_s18 }
 0xbc7   :  { %2517 = vrot.lane.b32.xlu0 %v6003_v2, %s6320_s18 }
 0xc3e   :  { %v2421_v48 = vpop.xlane.xlu0 %2420 }
 0xc3f   :  { %v2425_v56 = vmul.f32 0.03125, %v2421_v48 }
 0xc40   :  { %v2424_v50 = vpop.xlane.xlu1 %2423 }
 0xc41   :  { %v2427_v5 = vadd.f32 1e-05, %v2425_v56  ;;  %v2426_v6 = vmul.f32 0.03125, %v2424_v50 }
 0xc42   :  { %v2518_v9 = vpop.permute.xlu0 %2517 }
 0xc43   :  { %6091 = vrsqrt.f32 %v2427_v5  ;;  %v2428_v7 = vadd.f32 1e-05, %v2426_v6  ;;  %v2526_v10 = vsel %vm2521_vm14, %v2518_v9, 0 }
 0xc44   :  { %5696 = vmatpush3.bf16.xpose.msra.mxu1 %v2526_v10  ;;  %v2520_v29 = vpop.permute.xlu1 %2519  ;;  %v6005_v10 = vld [vmem:[#allocation7 + $0x80] sm:$0xff]  }
 0xc45   :  { %6093 = vrsqrt.f32 %v2428_v7  ;;  %5697 = vmatprep.subr.bf16.mxu1 %v6324_v0  ;;  %v2529_v12 = vsel %vm2521_vm14, %v2520_v29, 0 }
 0xc4c   :  { %5698 = vmatpush3.bf16.xpose.msra.mxu1 %v2529_v12 }
 0xc4d   :  { %v6092_v36 = vpop.eup %6091  ;;  %5719 = vmatprep.subr.bf16.mxu1 %v6324_v0 }
 0xc4e   :  { %v2431_v13 = vmul.f32 %v6092_v36, %v2415_v19  ;;  %v6007_v36 = vld [vmem:[#allocation7 + $0x88] sm:$0xff]  }
 0xc4f   :  { %v6094_v18 = vpop.eup %6093 }
 0xc50   :  { %v2437_v53 = vmul.f32 %v2436_v60, %v2431_v13  ;;  %v2432_v20 = vmul.f32 %v6094_v18, %v2416_v35  ;;  %v6008_v13 = vld [vmem:[#allocation7 + $0xa8] sm:$0xff]  }
 0xc52   :  { %v2438_v24 = vmul.f32 %v2436_v60, %v2432_v20  ;;  %v2443_v61 = vadd.f32 %v2442_v23, %v2437_v53  ;;  %v6006_v60 = vld [vmem:[#allocation7 + $0xa0] sm:$0xff]  }
 0xc54   :  { %v2444_v25 = vadd.f32 %v2442_v23, %v2438_v24 }
 0xc56   :  { %v2449_v63 = vpack.c.bf16 %v2444_v25, %v2443_v61 }
 0xc58   :  { %5692 = vmatmul.mubr.msk.bf16.vlgmr.msra.gmra.mrb[76].mxu0 %vm158_vm1, %v2449_v63 }
 0xc59   :  { %5707 = vmatprep.mubr.msk.bf16.mxu0 %vm6325_vm0, %v6324_v0  ;;  %5704 = vmatpush3.bf16.msra.mxu0 %v6005_v10 }
 0xc5a   :  { %5705 = vmatprep.subr.bf16.mxu0 %v6324_v0 }
 0xc5d   :  { %5706 = vmatpush3.bf16.msra.mxu0 %v6007_v36 }
 0xc5e   :  { %5711 = vmatprep.subr.bf16.mxu0 %v6324_v0 }
 0xd2b   :  { %v2503_v4 = vpop.f32.mrb[76].mxu0 }
 0xd2c   :  { %v2504_v16 = vadd.f32 %v2503_v4, %v2453_v31  ;;  %v5693_v11 = vpop.f32.mrb[77].mxu0 }
 0xd2d   :  { %v2506_v33 = vpop.f32.mrb[78].mxu0 }
 0xd2e   :  { %v2507_v32 = vadd.f32 %v2506_v33, %v2453_v31  ;;  %v5694_v8 = vpop.f32.mrb[79].mxu0  ;;  %v2510_v14 = vmax.f32 %v2504_v16, 0.0  ;;  %v2609_v16 = vrot.slane %v6747_v54, %v6696_v55 }
 0xd2f   :  { %v6009_v8 = vld [vmem:[#allocation7 + $0x90] sm:$0xff]  }
 0xd30   :  { %v2511_v34 = vmax.f32 %v2507_v32, 0.0 }
 0xd32   :  { %v2512_v30 = vpack.c.bf16 %v2511_v34, %v2510_v14  ;;  %v6010_v34 = vld [vmem:[#allocation7 + $0x98] sm:$0xff]  }
 0xd34   :  { %5700 = vmatmul.mubr.msk.bf16.vlgmr.msra.gmra.mrb[84].mxu1 %vm2521_vm14, %v2512_v30 }
 0xd35   :  { %5723 = vmatprep.mubr.msk.bf16.mxu1 %vm6325_vm0, %v6324_v0  ;;  %5720 = vmatpush3.bf16.msra.mxu1 %v6006_v60 }
 0xd36   :  { %5721 = vmatprep.subr.bf16.mxu1 %v6324_v0 }
 0xd39   :  { %5722 = vmatpush3.bf16.msra.mxu1 %v6008_v13 }
 0xd3a   :  { %5733 = vmatprep.subr.bf16.mxu1 %v6324_v0 }
 0xe07   :  { %v2565_v3 = vpop.f32.mrb[84].mxu1 }
 0xe08   :  { %v2566_v40 = vadd.f32 %v2565_v3, %v2516_v28  ;;  %v5701_v41 = vpop.f32.mrb[85].mxu1 }
 0xe09   :  { %v2568_v44 = vpop.f32.mrb[86].mxu1 }
 0xe0a   :  { %v2569_v19 = vadd.f32 %v2568_v44, %v2516_v28  ;;  %v5702_v46 = vpop.f32.mrb[87].mxu1  ;;  %v2572_v35 = vadd.f32 %v2566_v40, %v2443_v61 }
 0xe0b   :  { %v6915_v46 = vld [vmem:[#allocation10 + $0x10] sm:$0xff] }
 0xe0c   :  { %v2574_v47 = vsel %vm158_vm1, %v2572_v35, 0.0  ;;  %v2573_v52 = vadd.f32 %v2569_v19, %v2444_v25  ;;  %v2603_v25 = vrot.slane %v6747_v54, %v6705_v21 }
 0xe0d   :  { %2575 = vadd.xlane.f32.xlu1 %v2574_v47  ;;  %v2639_v47 = vrot.slane %v6915_v46, %v6465_v17 }
 0xe0e   :  { %v2577_v38 = vsel %vm158_vm1, %v2573_v52, 0.0 }
 0xe0f   :  { %2578 = vadd.xlane.f32.xlu0 %v2577_v38 }
 0xe9a   :  { %v2576_v57 = vpop.xlane.xlu1 %2575 }
 0xe9b   :  { %v2580_v2 = vmul.f32 0.03125, %v2576_v57 }
 0xe9c   :  { %v2579_v59 = vpop.xlane.xlu0 %2578 }
 0xe9d   :  { %v2582_v48 = vsub.f32 %v2572_v35, %v2580_v2  ;;  %v2581_v56 = vmul.f32 0.03125, %v2579_v59  ;;  %v2699_v35 = vrot.slane %v6915_v46, %v6462_v15 }
 0xe9f   :  { %v2583_v50 = vsub.f32 %v2573_v52, %v2581_v56  ;;  %v2584_v5 = vmul.f32 %v2582_v48, %v2582_v48 }
 0xea1   :  { %v2586_v6 = vsel %vm158_vm1, %v2584_v5, 0.0  ;;  %v2585_v7 = vmul.f32 %v2583_v50, %v2583_v50 }
 0xea2   :  { %2587 = vadd.xlane.f32.xlu0 %v2586_v6 }
 0xea3   :  { %v2589_v9 = vsel %vm158_vm1, %v2585_v7, 0.0 }
 0xea4   :  { %2590 = vadd.xlane.f32.xlu1 %v2589_v9 }
 0xf2f   :  { %v2588_v18 = vpop.xlane.xlu0 %2587 }
 0xf30   :  { %v2592_v53 = vmul.f32 0.03125, %v2588_v18 }
 0xf31   :  { %v2591_v20 = vpop.xlane.xlu1 %2590 }
 0xf32   :  { %v2594_v23 = vadd.f32 1e-05, %v2592_v53  ;;  %v2593_v24 = vmul.f32 0.03125, %v2591_v20 }
 0xf34   :  { %6095 = vrsqrt.f32 %v2594_v23  ;;  %v2595_v61 = vadd.f32 1e-05, %v2593_v24  ;;  %v2756_v23 = vrot.slane %v6915_v46, %v6540_v58 }
 0xf36   :  { %6097 = vrsqrt.f32 %v2595_v61 }
 0xf3e   :  { %v6096_v63 = vpop.eup %6095 }
 0xf3f   :  { %v2598_v29 = vmul.f32 %v6096_v63, %v2582_v48 }
 0xf40   :  { %v6098_v12 = vpop.eup %6097 }
 0xf41   :  { %v2604_v31 = vmul.f32 %v2603_v25, %v2598_v29  ;;  %v2599_v4 = vmul.f32 %v6098_v12, %v2583_v50 }
 0xf43   :  { %v2605_v11 = vmul.f32 %v2603_v25, %v2599_v4  ;;  %v6898_v33 = vadd.f32 %v2609_v16, %v2604_v31 }
 0xf45   :  { %v6900_v32 = vadd.f32 %v2609_v16, %v2605_v11 }
 0xf47   :  { %v2635_v14 = vpack.c.bf16 %v6900_v32, %v6898_v33 }
 0xf49   :  { %5708 = vmatmul.mubr.msk.bf16.vlgmr.msra.gmra.mrb[80].mxu0 %vm158_vm1, %v2635_v14  ;;  %5724 = vmatmul.mubr.msk.bf16.vlgmr.msra.gmra.mrb[88].mxu1 %vm158_vm1, %v2635_v14 }
 0xf4a   :  { %5712 = vmatpush3.bf16.msra.mxu0 %v6009_v8  ;;  %5715 = vmatprep.mubr.msk.bf16.mxu0 %vm6325_vm0, %v6324_v0 }
 0xf4b   :  { %5713 = vmatprep.subr.bf16.mxu0 %v6324_v0  ;;  %5735 = vmatprep.mubr.msk.bf16.mxu1 %vm6325_vm0, %v6324_v0 }
 0xf4e   :  { %5714 = vmatpush3.bf16.msra.mxu0 %v6010_v34 }
 0xf4f   :  { %5727 = vmatprep.subr.bf16.mxu0 %v6324_v0 }
 0xf51   :  { %5716 = vmatmul.mubr.msk.bf16.vlgmr.msra.gmra.mrb[84].mxu0 %vm158_vm1, %v2635_v14 }
 0xf52   :  { %5729 = vmatprep.mubr.msk.bf16.mxu0 %vm6325_vm0, %v6324_v0 }
0x101c   :  { %v2689_v54 = vpop.f32.mrb[80].mxu0  ;;  %v2803_v30 = vpop.f32.mrb[88].mxu1 }
0x101d   :  { %v5709_v28 = vpop.f32.mrb[81].mxu0  ;;  %v5725_v3 = vpop.f32.mrb[89].mxu1  ;;  %v2690_v59 = vadd.f32 %v2689_v54, %v2639_v47  ;;  %v6947_v25 = vadd.f32 %v2803_v30, %v2756_v23 }
0x101e   :  { %v2692_v40 = vpop.f32.mrb[82].mxu0  ;;  %v2806_v41 = vpop.f32.mrb[90].mxu1 }
0x101f   :  { %v5710_v44 = vpop.f32.mrb[83].mxu0  ;;  %v5726_v19 = vpop.f32.mrb[91].mxu1  ;;  %v2693_v5 = vadd.f32 %v2692_v40, %v2639_v47  ;;  %v2810_v9 = vmul.f32 %v2690_v59, %v6477_v27  ;;  %v2812_v18 = vmul.f32 %v2690_v59, %v6489_v39  ;;  %v2814_v61 = vmul.f32 %v2690_v59, %v6505_v45 }
0x1020   :  { %v6951_v12 = vadd.f32 %v2806_v41, %v2756_v23  ;;  %v2828_v4 = vmul.f32 %v6474_v22, %v6947_v25  ;;  %v2816_v16 = vmul.f32 %v2690_v59, %v6521_v51 }
0x1021   :  { %v2811_v60 = vmul.f32 %v2693_v5, %v6477_v27  ;;  %v2818_v36 = vpack.c.bf16 %v2810_v9, %v2810_v9  ;;  %v2813_v53 = vmul.f32 %v2693_v5, %v6489_v39  ;;  %v2820_v20 = vpack.c.bf16 %v2812_v18, %v2812_v18 }
0x1022   :  { %v2815_v63 = vmul.f32 %v2693_v5, %v6505_v45  ;;  %v2822_v29 = vpack.c.bf16 %v2814_v61, %v2814_v61  ;;  %v2829_v11 = vmul.f32 %v6474_v22, %v6951_v12  ;;  %v2817_v8 = vmul.f32 %v2693_v5, %v6521_v51 }
0x1023   :  { %v2819_v13 = vpack.c.bf16 %v2811_v60, %v2811_v60  ;;  %v2821_v24 = vpack.c.bf16 %v2813_v53, %v2813_v53  ;;  %v2836_v14 = vpack.c.bf16 %v2828_v4, %v2828_v4  ;;  %v2824_v34 = vpack.c.bf16 %v2816_v16, %v2816_v16 }
0x1024   :  { %v2746_v52 = vpop.f32.mrb[84].mxu0  ;;  %v2823_v31 = vpack.c.bf16 %v2815_v63, %v2815_v63  ;;  %v2837_v54 = vpack.c.bf16 %v2829_v11, %v2829_v11  ;;  %v2825_v30 = vpack.c.bf16 %v2817_v8, %v2817_v8 }
0x1025   :  { %v2747_v38 = vadd.f32 %v2746_v52, %v2699_v35  ;;  %v5717_v57 = vpop.f32.mrb[85].mxu0  ;;  %v3294_v28 = vsel %vm801_vm12, %v2836_v14, 0 }
0x1026   :  { %v2749_v2 = vpop.f32.mrb[86].mxu0  ;;  %v3340_v3 = vsel %vm801_vm12, %v2837_v54, 0 }
0x1027   :  { %v2826_v48 = vpack.c.bf16 %v2747_v38, %v2747_v38  ;;  %v2750_v56 = vadd.f32 %v2749_v2, %v2699_v35  ;;  %v5718_v50 = vpop.f32.mrb[87].mxu0 }
0x1029   :  { %v2848_v6 = vsel %vm158_vm1, %v2826_v48, 0  ;;  %v2827_v7 = vpack.c.bf16 %v2750_v56, %v2750_v56 }
0x102a   :  { %5728 = vmatpush3.bf16.xpose.msra.mxu0 %v2848_v6 }
0x102b   :  { %v2894_v10 = vsel %vm158_vm1, %v2827_v7, 0  ;;  %5739 = vmatprep.subr.bf16.mxu0 %v6324_v0 }
0x102c   :  { %5734 = vmatpush3.bf16.xpose.msra.mxu1 %v2894_v10 }
0x102d   :  { %5745 = vmatprep.subr.bf16.mxu1 %v6324_v0 }
0x1031   :  { %5730 = vmatmul.mubr.msk.bf16.vlgmr.msra.gmra.mrb[88].mxu0 %vm158_vm1, %v2818_v36 }
0x1032   :  { %5740 = vmatpush3.bf16.xpose.msra.mxu0 %v2848_v6  ;;  %5741 = vmatprep.mubr.msk.bf16.mxu0 %vm6325_vm0, %v6324_v0 }
0x1033   :  { %5736 = vmatmul.mubr.msk.bf16.vlgmr.msra.gmra.mrb[92].mxu1 %vm158_vm1, %v2819_v13  ;;  %5751 = vmatprep.subr.bf16.mxu0 %v6324_v0 }
0x1034   :  { %5746 = vmatpush3.bf16.xpose.msra.mxu1 %v2894_v10  ;;  %5747 = vmatprep.mubr.msk.bf16.mxu1 %vm6325_vm0, %v6324_v0 }
0x1035   :  { %5757 = vmatprep.subr.bf16.mxu1 %v6324_v0 }
0x1039   :  { %5742 = vmatmul.mubr.msk.bf16.vlgmr.msra.gmra.mrb[92].mxu0 %vm158_vm1, %v2820_v20 }
0x103a   :  { %5752 = vmatpush3.bf16.xpose.msra.mxu0 %v2848_v6  ;;  %5753 = vmatprep.mubr.msk.bf16.mxu0 %vm6325_vm0, %v6324_v0 }
0x103b   :  { %5748 = vmatmul.mubr.msk.bf16.vlgmr.msra.gmra.mrb[96].mxu1 %vm158_vm1, %v2821_v24  ;;  %5763 = vmatprep.subr.bf16.mxu0 %v6324_v0 }
0x103c   :  { %5758 = vmatpush3.bf16.xpose.msra.mxu1 %v2894_v10  ;;  %5759 = vmatprep.mubr.msk.bf16.mxu1 %vm6325_vm0, %v6324_v0 }
0x103d   :  { %5769 = vmatprep.subr.bf16.mxu1 %v6324_v0 }
0x1041   :  { %5754 = vmatmul.mubr.msk.bf16.vlgmr.msra.gmra.mrb[96].mxu0 %vm158_vm1, %v2822_v29 }
0x1042   :  { %5764 = vmatpush3.bf16.xpose.msra.mxu0 %v2848_v6  ;;  %5765 = vmatprep.mubr.msk.bf16.mxu0 %vm6325_vm0, %v6324_v0 }
0x1043   :  { %5760 = vmatmul.mubr.msk.bf16.vlgmr.msra.gmra.mrb[100].mxu1 %vm158_vm1, %v2823_v31  ;;  %5775 = vmatprep.subr.bf16.mxu0 %v6324_v0 }
0x1044   :  { %5770 = vmatpush3.bf16.xpose.msra.mxu1 %v2894_v10  ;;  %5771 = vmatprep.mubr.msk.bf16.mxu1 %vm6325_vm0, %v6324_v0 }
0x1045   :  { %5781 = vmatprep.subr.bf16.mxu1 %v6324_v0 }
0x1049   :  { %5766 = vmatmul.mubr.msk.bf16.vlgmr.msra.gmra.mrb[100].mxu0 %vm158_vm1, %v2824_v34 }
0x104a   :  { %5776 = vmatpush3.bf16.msra.mxu0 %v3294_v28  ;;  %5777 = vmatprep.mubr.msk.bf16.mxu0 %vm6325_vm0, %v6324_v0 }
0x104b   :  { %5772 = vmatmul.mubr.msk.bf16.vlgmr.msra.gmra.mrb[104].mxu1 %vm158_vm1, %v2825_v30  ;;  %5787 = vmatprep.subr.bf16.mxu0 %v6324_v0 }
0x104c   :  { %5782 = vmatpush3.bf16.msra.mxu1 %v3340_v3  ;;  %5783 = vmatprep.mubr.msk.bf16.mxu1 %vm6325_vm0, %v6324_v0 }
0x104d   :  { %5793 = vmatprep.subr.bf16.mxu1 %v6324_v0 }
0x1104   :  { %v2884_v40 = vpop.f32.mrb[88].mxu0 }
0x1105   :  { %v5731_v41 = vpop.f32.mrb[89].mxu0  ;;  %v3194_v44 = vsel %vm701_vm13, %v2884_v40, -inf }
0x1106   :  { %3195 = vmax.xlane.f32.xlu0 %v3194_v44  ;;  %v2887_v19 = vpop.f32.mrb[90].mxu0  ;;  %v2930_v35 = vpop.f32.mrb[92].mxu1 }
0x1107   :  { %v5732_v47 = vpop.f32.mrb[91].mxu0  ;;  %v5737_v52 = vpop.f32.mrb[93].mxu1  ;;  %v3197_v38 = vsel %vm701_vm13, %v2930_v35, -inf }
0x1108   :  { %3198 = vmax.xlane.f32.xlu1 %v3197_v38  ;;  %v2933_v57 = vpop.f32.mrb[94].mxu1 }
0x1109   :  { %v5738_v2 = vpop.f32.mrb[95].mxu1 }
0x110c   :  { %v2973_v59 = vpop.f32.mrb[92].mxu0 }
0x110d   :  { %v5743_v48 = vpop.f32.mrb[93].mxu0  ;;  %v3200_v56 = vsel %vm701_vm13, %v2973_v59, -inf }
0x110e   :  { %3201 = vmax.xlane.f32.xlu0 %v3200_v56  ;;  %v2976_v50 = vpop.f32.mrb[94].mxu0  ;;  %v3016_v5 = vpop.f32.mrb[96].mxu1 }
0x110f   :  { %v5744_v6 = vpop.f32.mrb[95].mxu0  ;;  %v5749_v7 = vpop.f32.mrb[97].mxu1  ;;  %v3203_v9 = vsel %vm701_vm13, %v3016_v5, -inf }
0x1110   :  { %3204 = vmax.xlane.f32.xlu1 %v3203_v9  ;;  %v3019_v10 = vpop.f32.mrb[98].mxu1 }
0x1111   :  { %v5750_v60 = vpop.f32.mrb[99].mxu1 }
0x1114   :  { %v3059_v36 = vpop.f32.mrb[96].mxu0 }
0x1115   :  { %v5755_v13 = vpop.f32.mrb[97].mxu0  ;;  %v3206_v18 = vsel %vm701_vm13, %v3059_v36, -inf }
0x1116   :  { %3207 = vmax.xlane.f32.xlu0 %v3206_v18  ;;  %v3062_v53 = vpop.f32.mrb[98].mxu0  ;;  %v3102_v20 = vpop.f32.mrb[100].mxu1 }
0x1117   :  { %v5756_v23 = vpop.f32.mrb[99].mxu0  ;;  %v5761_v24 = vpop.f32.mrb[101].mxu1  ;;  %v3209_v61 = vsel %vm701_vm13, %v3102_v20, -inf }
0x1118   :  { %3210 = vmax.xlane.f32.xlu1 %v3209_v61  ;;  %v3105_v63 = vpop.f32.mrb[102].mxu1 }
0x1119   :  { %v5762_v29 = vpop.f32.mrb[103].mxu1 }
0x111c   :  { %v3145_v31 = vpop.f32.mrb[100].mxu0 }
0x111d   :  { %v5767_v4 = vpop.f32.mrb[101].mxu0  ;;  %v3212_v16 = vsel %vm701_vm13, %v3145_v31, -inf }
0x111e   :  { %3213 = vmax.xlane.f32.xlu0 %v3212_v16  ;;  %v3148_v11 = vpop.f32.mrb[102].mxu0  ;;  %v3188_v8 = vpop.f32.mrb[104].mxu1 }
0x111f   :  { %v5768_v14 = vpop.f32.mrb[103].mxu0  ;;  %v5773_v34 = vpop.f32.mrb[105].mxu1  ;;  %v3215_v54 = vsel %vm701_vm13, %v3188_v8, -inf }
0x1120   :  { %3216 = vmax.xlane.f32.xlu1 %v3215_v54  ;;  %v3191_v30 = vpop.f32.mrb[106].mxu1 }
0x1121   :  { %v5774_v28 = vpop.f32.mrb[107].mxu1 }
0x1193   :  { %v3196_v3 = vpop.xlane.xlu0 %3195 }
0x1194   :  { %v3218_v41 = vsub.f32 %v2884_v40, %v3196_v3 }
0x1195   :  { %v3199_v44 = vpop.xlane.xlu1 %3198 }
0x1196   :  { %v3226_v19 = vmul.f32 1.442695, %v3218_v41  ;;  %v3219_v47 = vsub.f32 %v2930_v35, %v3199_v44  ;;  %v2830_v44 = vmul.f32 %v6484_v37, %v6947_v25 }
0x1198   :  { %6099 = vpow2.f32 %v3226_v19  ;;  %v3228_v52 = vmul.f32 1.442695, %v3219_v47  ;;  %v2831_v47 = vmul.f32 %v6484_v37, %v6951_v12 }
0x119a   :  { %6101 = vpow2.f32 %v3228_v52 }
0x119b   :  { %v3202_v38 = vpop.xlane.xlu0 %3201 }
0x119c   :  { %v3220_v57 = vsub.f32 %v2973_v59, %v3202_v38 }
0x119d   :  { %v3205_v2 = vpop.xlane.xlu1 %3204 }
0x119e   :  { %v3230_v48 = vmul.f32 1.442695, %v3220_v57  ;;  %v3221_v56 = vsub.f32 %v3016_v5, %v3205_v2  ;;  %v2838_v57 = vpack.c.bf16 %v2830_v44, %v2830_v44 }
0x11a0   :  { %6103 = vpow2.f32 %v3230_v48  ;;  %v3232_v50 = vmul.f32 1.442695, %v3221_v56 }
0x11a2   :  { %v6100_v6 = vpop.eup %6099  ;;  %6105 = vpow2.f32 %v3232_v50  ;;  %v2839_v50 = vpack.c.bf16 %v2831_v47, %v2831_v47 }
0x11a3   :  { %v3208_v7 = vpop.xlane.xlu0 %3207  ;;  %v3242_v9 = vsel %vm701_vm13, %v6100_v6, 0.0 }
0x11a4   :  { %v6102_v10 = vpop.eup %6101  ;;  %v3222_v40 = vsub.f32 %v3059_v36, %v3208_v7  ;;  %3243 = vadd.xlane.f32.xlu0 %v3242_v9  ;;  %v3386_v9 = vsel %vm801_vm12, %v2838_v57, 0 }
0x11a5   :  { %v3211_v60 = vpop.xlane.xlu1 %3210  ;;  %v3245_v35 = vsel %vm701_vm13, %v6102_v10, 0.0 }
0x11a6   :  { %v3234_v13 = vmul.f32 1.442695, %v3222_v40  ;;  %v3223_v18 = vsub.f32 %v3102_v20, %v3211_v60  ;;  %3246 = vadd.xlane.f32.xlu1 %v3245_v35  ;;  %v2832_v60 = vmul.f32 %v6498_v43, %v6947_v25  ;;  %v2833_v35 = vmul.f32 %v6498_v43, %v6951_v12 }
0x11a8   :  { %6107 = vpow2.f32 %v3234_v13  ;;  %v3236_v59 = vmul.f32 1.442695, %v3223_v18 }
0x11aa   :  { %v6104_v53 = vpop.eup %6103  ;;  %6109 = vpow2.f32 %v3236_v59  ;;  %v2840_v59 = vpack.c.bf16 %v2832_v60, %v2832_v60 }
0x11ab   :  { %v3214_v5 = vpop.xlane.xlu0 %3213  ;;  %v3248_v23 = vsel %vm701_vm13, %v6104_v53, 0.0 }
0x11ac   :  { %v6106_v24 = vpop.eup %6105  ;;  %v3224_v61 = vsub.f32 %v3145_v31, %v3214_v5  ;;  %3249 = vadd.xlane.f32.xlu0 %v3248_v23 }
0x11ad   :  { %v3217_v63 = vpop.xlane.xlu1 %3216  ;;  %v3251_v36 = vsel %vm701_vm13, %v6106_v24, 0.0 }
0x11ae   :  { %v3238_v29 = vmul.f32 1.442695, %v3224_v61  ;;  %v3225_v4 = vsub.f32 %v3188_v8, %v3217_v63  ;;  %3252 = vadd.xlane.f32.xlu1 %v3251_v36  ;;  %v2841_v63 = vpack.c.bf16 %v2833_v35, %v2833_v35 }
0x11b0   :  { %6111 = vpow2.f32 %v3238_v29  ;;  %v3240_v16 = vmul.f32 1.442695, %v3225_v4  ;;  %v3478_v29 = vsel %vm801_vm12, %v2840_v59, 0 }
0x11b2   :  { %v6989_v20 = vpop.eup %6107  ;;  %6113 = vpow2.f32 %v3240_v16  ;;  %v2834_v16 = vmul.f32 %v6514_v49, %v6947_v25 }
0x11b3   :  { %v3254_v11 = vsel %vm701_vm13, %v6989_v20, 0.0 }
0x11b4   :  { %v6993_v14 = vpop.eup %6109  ;;  %3255 = vadd.xlane.f32.xlu0 %v3254_v11  ;;  %v2835_v11 = vmul.f32 %v6514_v49, %v6951_v12 }
0x11b5   :  { %v3257_v31 = vsel %vm701_vm13, %v6993_v14, 0.0 }
0x11b6   :  { %3258 = vadd.xlane.f32.xlu1 %v3257_v31 }
0x11ba   :  { %v6997_v34 = vpop.eup %6111 }
0x11bb   :  { %v3260_v8 = vsel %vm701_vm13, %v6997_v34, 0.0 }
0x11bc   :  { %v7001_v54 = vpop.eup %6113  ;;  %3261 = vadd.xlane.f32.xlu0 %v3260_v8  ;;  %v2842_v8 = vpack.c.bf16 %v2834_v16, %v2834_v16 }
0x11bd   :  { %v3263_v30 = vsel %vm701_vm13, %v7001_v54, 0.0 }
0x11be   :  { %3264 = vadd.xlane.f32.xlu1 %v3263_v30  ;;  %v3570_v12 = vsel %vm801_vm12, %v2842_v8, 0 }
0x1231   :  { %v3244_v28 = vpop.xlane.xlu0 %3243 }
0x1232   :  { %6115 = vrcp.f32 %v3244_v28 }
0x1233   :  { %v3247_v3 = vpop.xlane.xlu1 %3246 }
0x1234   :  { %6117 = vrcp.f32 %v3247_v3 }
0x1239   :  { %v3250_v41 = vpop.xlane.xlu0 %3249 }
0x123a   :  { %6119 = vrcp.f32 %v3250_v41  ;;  %v2843_v41 = vpack.c.bf16 %v2835_v11, %v2835_v11 }
0x123b   :  { %v3253_v19 = vpop.xlane.xlu1 %3252 }
0x123c   :  { %v6116_v52 = vpop.eup %6115  ;;  %6121 = vrcp.f32 %v3253_v19 }
0x123d   :  { %v3274_v38 = vmul.f32 %v6116_v52, %v6100_v6  ;;  %v3432_v6 = vsel %vm801_vm12, %v2839_v50, 0 }
0x123e   :  { %v6118_v2 = vpop.eup %6117 }
0x123f   :  { %v3275_v48 = vmul.f32 %v6118_v2, %v6102_v10  ;;  %v3282_v56 = vpack.c.bf16 %v3274_v38, %v3274_v38  ;;  %v6011_v2 = vld [vmem:[#allocation7 + $0xb0] sm:$0xff]  }
0x1241   :  { %v3256_v7 = vpop.xlane.xlu0 %3255  ;;  %5778 = vmatmul.mubr.msk.bf16.vlgmr.msra.gmra.mrb[104].mxu0 %vm701_vm13, %v3282_v56  ;;  %v3283_v40 = vpack.c.bf16 %v3275_v48, %v3275_v48 }
0x1242   :  { %6123 = vrcp.f32 %v3256_v7  ;;  %5788 = vmatpush3.bf16.msra.mxu0 %v3386_v9  ;;  %5789 = vmatprep.mubr.msk.bf16.mxu0 %vm6325_vm0, %v6324_v0 }
0x1243   :  { %5784 = vmatmul.mubr.msk.bf16.vlgmr.msra.gmra.mrb[108].mxu1 %vm701_vm13, %v3283_v40  ;;  %v3259_v10 = vpop.xlane.xlu1 %3258  ;;  %5799 = vmatprep.subr.bf16.mxu0 %v6324_v0 }
0x1244   :  { %v6120_v13 = vpop.eup %6119  ;;  %5794 = vmatpush3.bf16.msra.mxu1 %v3432_v6  ;;  %6125 = vrcp.f32 %v3259_v10  ;;  %5795 = vmatprep.mubr.msk.bf16.mxu1 %vm6325_vm0, %v6324_v0 }
0x1245   :  { %v3276_v18 = vmul.f32 %v6120_v13, %v6104_v53  ;;  %5805 = vmatprep.subr.bf16.mxu1 %v6324_v0  ;;  %v3524_v53 = vsel %vm801_vm12, %v2841_v63, 0 }
0x1246   :  { %v6122_v5 = vpop.eup %6121 }
0x1247   :  { %v3277_v23 = vmul.f32 %v6122_v5, %v6106_v24  ;;  %v3284_v61 = vpack.c.bf16 %v3276_v18, %v3276_v18 }
0x1249   :  { %v3262_v36 = vpop.xlane.xlu0 %3261  ;;  %5790 = vmatmul.mubr.msk.bf16.vlgmr.msra.gmra.mrb[108].mxu0 %vm701_vm13, %v3284_v61  ;;  %v3285_v4 = vpack.c.bf16 %v3277_v23, %v3277_v23 }
0x124a   :  { %6127 = vrcp.f32 %v3262_v36  ;;  %5800 = vmatpush3.bf16.msra.mxu0 %v3478_v29  ;;  %5801 = vmatprep.mubr.msk.bf16.mxu0 %vm6325_vm0, %v6324_v0 }
0x124b   :  { %5796 = vmatmul.mubr.msk.bf16.vlgmr.msra.gmra.mrb[112].mxu1 %vm701_vm13, %v3285_v4  ;;  %v3265_v24 = vpop.xlane.xlu1 %3264  ;;  %5811 = vmatprep.subr.bf16.mxu0 %v6324_v0 }
0x124c   :  { %v6124_v31 = vpop.eup %6123  ;;  %5806 = vmatpush3.bf16.msra.mxu1 %v3524_v53  ;;  %6129 = vrcp.f32 %v3265_v24  ;;  %5807 = vmatprep.mubr.msk.bf16.mxu1 %vm6325_vm0, %v6324_v0 }
0x124d   :  { %v3278_v25 = vmul.f32 %v6124_v31, %v6989_v20  ;;  %5817 = vmatprep.subr.bf16.mxu1 %v6324_v0  ;;  %v3616_v20 = vsel %vm801_vm12, %v2843_v41, 0 }
0x124e   :  { %v6126_v30 = vpop.eup %6125 }
0x124f   :  { %v3279_v28 = vmul.f32 %v6126_v30, %v6993_v14  ;;  %v3286_v3 = vpack.c.bf16 %v3278_v25, %v3278_v25 }
0x1251   :  { %5802 = vmatmul.mubr.msk.bf16.vlgmr.msra.gmra.mrb[112].mxu0 %vm701_vm13, %v3286_v3  ;;  %v3287_v44 = vpack.c.bf16 %v3279_v28, %v3279_v28 }
0x1252   :  { %5812 = vmatpush3.bf16.msra.mxu0 %v3570_v12  ;;  %5813 = vmatprep.mubr.msk.bf16.mxu0 %vm6325_vm0, %v6324_v0 }
0x1253   :  { %5808 = vmatmul.mubr.msk.bf16.vlgmr.msra.gmra.mrb[116].mxu1 %vm701_vm13, %v3287_v44  ;;  %5823 = vmatprep.subr.bf16.mxu0 %v6324_v0 }
0x1254   :  { %v6128_v19 = vpop.eup %6127  ;;  %5818 = vmatpush3.bf16.msra.mxu1 %v3616_v20  ;;  %5819 = vmatprep.mubr.msk.bf16.mxu1 %vm6325_vm0, %v6324_v0 }
0x1255   :  { %v3280_v14 = vmul.f32 %v6128_v19, %v6997_v34  ;;  %5831 = vmatprep.subr.bf16.mxu1 %v6324_v0  ;;  %v6012_v34 = vld [vmem:[#allocation7 + $0xb8] sm:$0xff]  }
0x1256   :  { %v6130_v47 = vpop.eup %6129 }
0x1257   :  { %v3281_v52 = vmul.f32 %v6130_v47, %v7001_v54  ;;  %v3288_v38 = vpack.c.bf16 %v3280_v14, %v3280_v14 }
0x1259   :  { %5814 = vmatmul.mubr.msk.bf16.vlgmr.msra.gmra.mrb[116].mxu0 %vm701_vm13, %v3288_v38  ;;  %v3289_v57 = vpack.c.bf16 %v3281_v52, %v3281_v52 }
0x125a   :  { %5827 = vmatprep.mubr.msk.bf16.mxu0 %vm6325_vm0, %v6324_v0  ;;  %5824 = vmatpush3.bf16.msra.mxu0 %v6011_v2 }
0x125b   :  { %5820 = vmatmul.mubr.msk.bf16.vlgmr.msra.gmra.mrb[120].mxu1 %vm701_vm13, %v3289_v57  ;;  %5825 = vmatprep.subr.bf16.mxu0 %v6324_v0 }
0x125c   :  { %5835 = vmatprep.mubr.msk.bf16.mxu1 %vm6325_vm0, %v6324_v0 }
0x125e   :  { %5826 = vmatpush3.bf16.msra.mxu0 %v6012_v34 }
0x125f   :  { %5839 = vmatprep.subr.bf16.mxu0 %v6324_v0 }
0x1314   :  { %v3330_v54 = vpop.f32.mrb[104].mxu0 }
0x1315   :  { %v5779_v48 = vpop.f32.mrb[105].mxu0  ;;  %v3658_v10 = vsel %vm158_vm1, %v3330_v54, 0.0 }
0x1316   :  { %v3333_v56 = vpop.f32.mrb[106].mxu0  ;;  %v3376_v50 = vpop.f32.mrb[108].mxu1 }
0x1317   :  { %v5780_v7 = vpop.f32.mrb[107].mxu0  ;;  %v5785_v9 = vpop.f32.mrb[109].mxu1  ;;  %v3665_v23 = vsel %vm158_vm1, %v3376_v50, 0.0 }
0x1318   :  { %v3379_v40 = vpop.f32.mrb[110].mxu1  ;;  %v3676_v7 = vrot.slane %v6915_v46, %v6650_v62 }
0x1319   :  { %v5786_v60 = vpop.f32.mrb[111].mxu1 }
0x131c   :  { %v3422_v6 = vpop.f32.mrb[108].mxu0 }
0x131d   :  { %v3659_v35 = vsel %vm158_vm1, %v3422_v6, 0.0  ;;  %v5791_v13 = vpop.f32.mrb[109].mxu0 }
0x131e   :  { %v3660_v18 = vadd.f32 %v3659_v35, %v3658_v10  ;;  %v3425_v59 = vpop.f32.mrb[110].mxu0  ;;  %v3468_v5 = vpop.f32.mrb[112].mxu1 }
0x131f   :  { %v3666_v61 = vsel %vm158_vm1, %v3468_v5, 0.0  ;;  %v5792_v63 = vpop.f32.mrb[111].mxu0  ;;  %v5797_v36 = vpop.f32.mrb[113].mxu1 }
0x1320   :  { %v3667_v29 = vadd.f32 %v3666_v61, %v3665_v23  ;;  %v3471_v4 = vpop.f32.mrb[114].mxu1 }
0x1321   :  { %v5798_v16 = vpop.f32.mrb[115].mxu1 }
0x1324   :  { %v3514_v53 = vpop.f32.mrb[112].mxu0 }
0x1325   :  { %v3661_v24 = vsel %vm158_vm1, %v3514_v53, 0.0  ;;  %v5803_v11 = vpop.f32.mrb[113].mxu0 }
0x1326   :  { %v3662_v31 = vadd.f32 %v3661_v24, %v3660_v18  ;;  %v3517_v25 = vpop.f32.mrb[114].mxu0  ;;  %v3560_v8 = vpop.f32.mrb[116].mxu1  ;;  %v6013_v11 = vld [vmem:[#allocation7 + $0xd0] sm:$0xff]  }
0x1327   :  { %v3668_v30 = vsel %vm158_vm1, %v3560_v8, 0.0  ;;  %v5804_v28 = vpop.f32.mrb[115].mxu0  ;;  %v5809_v3 = vpop.f32.mrb[117].mxu1  ;;  %v6016_v25 = vld [vmem:[#allocation7 + $0xc8] sm:$0xff]  }
0x1328   :  { %v3669_v41 = vadd.f32 %v3668_v30, %v3667_v29  ;;  %v3563_v12 = vpop.f32.mrb[118].mxu1 }
0x1329   :  { %v5810_v44 = vpop.f32.mrb[119].mxu1 }
0x132a   :  { %v3764_v44 = vrot.slane %v6915_v46, %v6671_v1 }
0x132c   :  { %v3606_v20 = vpop.f32.mrb[116].mxu0 }
0x132d   :  { %v3663_v19 = vsel %vm158_vm1, %v3606_v20, 0.0  ;;  %v5815_v14 = vpop.f32.mrb[117].mxu0 }
0x132e   :  { %v3664_v47 = vadd.f32 %v3663_v19, %v3662_v31  ;;  %v3609_v52 = vpop.f32.mrb[118].mxu0  ;;  %v3652_v38 = vpop.f32.mrb[120].mxu1  ;;  %v6015_v31 = vld [vmem:[#allocation7 + $0xc0] sm:$0xff]  }
0x132f   :  { %v3670_v57 = vsel %vm158_vm1, %v3652_v38, 0.0  ;;  %v5816_v2 = vpop.f32.mrb[119].mxu0  ;;  %v5821_v34 = vpop.f32.mrb[121].mxu1  ;;  %5832 = vmatpush3.bf16.msra.mxu1 %v6015_v31  ;;  %v3770_v38 = vrot.slane %v6915_v46, %v6676_v42 }
0x1330   :  { %v3671_v54 = vadd.f32 %v3670_v57, %v3669_v41  ;;  %v3655_v48 = vpop.f32.mrb[122].mxu1  ;;  %5833 = vmatprep.subr.bf16.mxu1 %v6324_v0 }
0x1331   :  { %v5822_v56 = vpop.f32.mrb[123].mxu1 }
0x1332   :  { %v3672_v50 = vpack.c.bf16 %v3671_v54, %v3664_v47  ;;  %v6017_v54 = vld [vmem:[#allocation7 + $0xe0] sm:$0xff]   ;;  %v6018_v56 = vld [vmem:[#allocation7 + $0xe8] sm:$0xff]  }
0x1333   :  { %5834 = vmatpush3.bf16.msra.mxu1 %v6016_v25 }
0x1334   :  { %5828 = vmatmul.mubr.msk.bf16.vlgmr.msra.gmra.mrb[120].mxu0 %vm158_vm1, %v3672_v50  ;;  %5847 = vmatprep.subr.bf16.mxu1 %v6324_v0  ;;  %v3857_v50 = vrot.slane %v6915_v46, %v6696_v55 }
0x1335   :  { %5843 = vmatprep.mubr.msk.bf16.mxu0 %vm6325_vm0, %v6324_v0  ;;  %5840 = vmatpush3.bf16.msra.mxu0 %v6013_v11 }
0x1336   :  { %5841 = vmatprep.subr.bf16.mxu0 %v6324_v0 }
0x1407   :  { %v3726_v9 = vpop.f32.mrb[120].mxu0 }
0x1408   :  { %v3727_v40 = vadd.f32 %v3726_v9, %v3676_v7  ;;  %v5829_v60 = vpop.f32.mrb[121].mxu0 }
0x1409   :  { %v3729_v6 = vpop.f32.mrb[122].mxu0 }
0x140a   :  { %v3730_v10 = vadd.f32 %v3729_v6, %v3676_v7  ;;  %v5830_v35 = vpop.f32.mrb[123].mxu0  ;;  %v3733_v13 = vadd.f32 %v3727_v40, %v6898_v33 }
0x140c   :  { %v3735_v18 = vsel %vm158_vm1, %v3733_v13, 0.0  ;;  %v3734_v59 = vadd.f32 %v3730_v10, %v6900_v32  ;;  %v6014_v32 = vld [vmem:[#allocation7 + $0xd8] sm:$0xff]  }
0x140d   :  { %3736 = vadd.xlane.f32.xlu0 %v3735_v18  ;;  %5842 = vmatpush3.bf16.msra.mxu0 %v6014_v32 }
0x140e   :  { %v3738_v5 = vsel %vm158_vm1, %v3734_v59, 0.0  ;;  %5855 = vmatprep.subr.bf16.mxu0 %v6324_v0 }
0x140f   :  { %3739 = vadd.xlane.f32.xlu1 %v3738_v5 }
0x1410   :  { %5844 = vmatmul.mubr.msk.bf16.vlgmr.msra.gmra.mrb[124].mxu0 %vm158_vm1, %v6661_v26 }
0x1411   :  { %5857 = vmatprep.mubr.msk.bf16.mxu0 %vm6325_vm0, %v6324_v0 }
0x149a   :  { %v3737_v23 = vpop.xlane.xlu0 %3736 }
0x149b   :  { %v3741_v61 = vmul.f32 0.03125, %v3737_v23 }
0x149c   :  { %v3740_v63 = vpop.xlane.xlu1 %3739 }
0x149d   :  { %v3743_v36 = vsub.f32 %v3733_v13, %v3741_v61  ;;  %v3742_v29 = vmul.f32 0.03125, %v3740_v63 }
0x149f   :  { %v3744_v4 = vsub.f32 %v3734_v59, %v3742_v29  ;;  %v3745_v16 = vmul.f32 %v3743_v36, %v3743_v36 }
0x14a1   :  { %v3747_v53 = vsel %vm158_vm1, %v3745_v16, 0.0  ;;  %v3746_v24 = vmul.f32 %v3744_v4, %v3744_v4 }
0x14a2   :  { %3748 = vadd.xlane.f32.xlu0 %v3747_v53 }
0x14a3   :  { %v3750_v33 = vsel %vm158_vm1, %v3746_v24, 0.0 }
0x14a4   :  { %3751 = vadd.xlane.f32.xlu1 %v3750_v33 }
0x14e3   :  { %v3904_v7 = vpop.f32.mrb[124].mxu0 }
0x14e4   :  { %v3905_v9 = vadd.f32 %v3904_v7, %v3857_v50  ;;  %v5845_v40 = vpop.f32.mrb[125].mxu0 }
0x14e5   :  { %v3907_v60 = vpop.f32.mrb[126].mxu0 }
0x14e6   :  { %v3984_v6 = vpack.c.bf16 %v3905_v9, %v3905_v9  ;;  %v3908_v10 = vadd.f32 %v3907_v60, %v3857_v50  ;;  %v5846_v35 = vpop.f32.mrb[127].mxu0 }
0x14e8   :  { %v4006_v13 = vsel %vm158_vm1, %v3984_v6, 0  ;;  %v3985_v18 = vpack.c.bf16 %v3908_v10, %v3908_v10 }
0x14e9   :  { %5856 = vmatpush3.bf16.xpose.msra.mxu0 %v4006_v13 }
0x14ea   :  { %v4052_v59 = vsel %vm158_vm1, %v3985_v18, 0  ;;  %5867 = vmatprep.subr.bf16.mxu0 %v6324_v0 }
0x152f   :  { %v3749_v8 = vpop.xlane.xlu0 %3748 }
0x1530   :  { %v3753_v30 = vmul.f32 0.03125, %v3749_v8 }
0x1531   :  { %v3752_v28 = vpop.xlane.xlu1 %3751 }
0x1532   :  { %v3755_v3 = vadd.f32 1e-05, %v3753_v30  ;;  %v3754_v41 = vmul.f32 0.03125, %v3752_v28 }
0x1534   :  { %6131 = vrsqrt.f32 %v3755_v3  ;;  %v3756_v12 = vadd.f32 1e-05, %v3754_v41 }
0x1536   :  { %6133 = vrsqrt.f32 %v3756_v12 }
0x153e   :  { %v6132_v20 = vpop.eup %6131 }
0x153f   :  { %v3759_v19 = vmul.f32 %v6132_v20, %v3743_v36  ;;  %v7151_v20 = vld [vmem:[#allocation10 + $0x18] sm:$0xff] }
0x1540   :  { %v6134_v14 = vpop.eup %6133 }
0x1541   :  { %v3765_v47 = vmul.f32 %v3764_v44, %v3759_v19  ;;  %v3760_v52 = vmul.f32 %v6134_v14, %v3744_v4  ;;  %v3914_v19 = vrot.slane %v7151_v20, %v6465_v17 }
0x1543   :  { %v3766_v57 = vmul.f32 %v3764_v44, %v3760_v52  ;;  %v7090_v2 = vadd.f32 %v3770_v38, %v3765_v47 }
0x1545   :  { %v7092_v34 = vadd.f32 %v3770_v38, %v3766_v57 }
0x1547   :  { %v3793_v48 = vpack.c.bf16 %v7092_v34, %v7090_v2 }
0x1549   :  { %5836 = vmatmul.mubr.msk.bf16.vlgmr.msra.gmra.mrb[124].mxu1 %vm158_vm1, %v3793_v48 }
0x154a   :  { %5848 = vmatpush3.bf16.msra.mxu1 %v6017_v54  ;;  %5851 = vmatprep.mubr.msk.bf16.mxu1 %vm6325_vm0, %v6324_v0 }
0x154b   :  { %5849 = vmatprep.subr.bf16.mxu1 %v6324_v0 }
0x154e   :  { %5850 = vmatpush3.bf16.msra.mxu1 %v6018_v56 }
0x154f   :  { %5861 = vmatprep.subr.bf16.mxu1 %v6324_v0 }
0x1551   :  { %5852 = vmatmul.mubr.msk.bf16.vlgmr.msra.gmra.mrb[128].mxu1 %vm158_vm1, %v6661_v26  ;;  %v3797_v26 = vrot.slane %v6915_v46, %v6705_v21 }
0x1552   :  { %5863 = vmatprep.mubr.msk.bf16.mxu1 %vm6325_vm0, %v6324_v0 }
0x1557   :  { %5862 = vmatpush3.bf16.xpose.msra.mxu1 %v4052_v59 }
0x1558   :  { %5873 = vmatprep.subr.bf16.mxu1 %v6324_v0 }
0x161c   :  { %v3847_v5 = vpop.f32.mrb[124].mxu1 }
0x161d   :  { %v3848_v23 = vadd.f32 %v3847_v5, %v3797_v26  ;;  %v5837_v61 = vpop.f32.mrb[125].mxu1 }
0x161e   :  { %v3850_v63 = vpop.f32.mrb[126].mxu1 }
0x161f   :  { %v3968_v36 = vmul.f32 %v3848_v23, %v6477_v27  ;;  %v5838_v29 = vpop.f32.mrb[127].mxu1  ;;  %v3851_v4 = vadd.f32 %v3850_v63, %v3797_v26  ;;  %v3970_v11 = vmul.f32 %v3848_v23, %v6489_v39  ;;  %v3972_v30 = vmul.f32 %v3848_v23, %v6505_v45 }
0x1620   :  { %v3974_v41 = vmul.f32 %v3848_v23, %v6521_v51 }
0x1621   :  { %v3976_v16 = vpack.c.bf16 %v3968_v36, %v3968_v36  ;;  %v3969_v53 = vmul.f32 %v3851_v4, %v6477_v27  ;;  %v3971_v31 = vmul.f32 %v3851_v4, %v6489_v39  ;;  %v3978_v25 = vpack.c.bf16 %v3970_v11, %v3970_v11 }
0x1622   :  { %v3973_v39 = vmul.f32 %v3851_v4, %v6505_v45  ;;  %v3980_v28 = vpack.c.bf16 %v3972_v30, %v3972_v30  ;;  %v3975_v45 = vmul.f32 %v3851_v4, %v6521_v51  ;;  %v3982_v12 = vpack.c.bf16 %v3974_v41, %v3974_v41 }
0x1623   :  { %5858 = vmatmul.mubr.msk.bf16.vlgmr.msra.gmra.mrb[128].mxu0 %vm158_vm1, %v3976_v16  ;;  %v3977_v24 = vpack.c.bf16 %v3969_v53, %v3969_v53  ;;  %v3979_v8 = vpack.c.bf16 %v3971_v31, %v3971_v31 }
0x1624   :  { %5868 = vmatpush3.bf16.xpose.msra.mxu0 %v4006_v13  ;;  %v3961_v33 = vpop.f32.mrb[128].mxu1  ;;  %5869 = vmatprep.mubr.msk.bf16.mxu0 %vm6325_vm0, %v6324_v0  ;;  %v3981_v3 = vpack.c.bf16 %v3973_v39, %v3973_v39  ;;  %v3983_v44 = vpack.c.bf16 %v3975_v45, %v3975_v45 }
0x1625   :  { %5879 = vmatprep.subr.bf16.mxu0 %v6324_v0  ;;  %v5853_v46 = vpop.f32.mrb[129].mxu1  ;;  %5864 = vmatmul.mubr.msk.bf16.vlgmr.msra.gmra.mrb[132].mxu1 %vm158_vm1, %v3977_v24  ;;  %v7155_v51 = vadd.f32 %v3961_v33, %v3914_v19 }
0x1626   :  { %v3964_v32 = vpop.f32.mrb[130].mxu1  ;;  %5874 = vmatpush3.bf16.xpose.msra.mxu1 %v4052_v59  ;;  %5875 = vmatprep.mubr.msk.bf16.mxu1 %vm6325_vm0, %v6324_v0 }
0x1627   :  { %v5854_v27 = vpop.f32.mrb[131].mxu1  ;;  %5885 = vmatprep.subr.bf16.mxu1 %v6324_v0  ;;  %v7157_v14 = vadd.f32 %v3964_v32, %v3914_v19  ;;  %v3986_v47 = vmul.f32 %v6474_v22, %v7155_v51 }
0x1629   :  { %v3987_v52 = vmul.f32 %v6474_v22, %v7157_v14  ;;  %v3994_v38 = vpack.c.bf16 %v3986_v47, %v3986_v47 }
0x162b   :  { %5870 = vmatmul.mubr.msk.bf16.vlgmr.msra.gmra.mrb[132].mxu0 %vm158_vm1, %v3978_v25  ;;  %v3995_v57 = vpack.c.bf16 %v3987_v52, %v3987_v52  ;;  %v4452_v54 = vsel %vm801_vm12, %v3994_v38, 0 }
0x162c   :  { %5880 = vmatpush3.bf16.xpose.msra.mxu0 %v4006_v13  ;;  %5881 = vmatprep.mubr.msk.bf16.mxu0 %vm6325_vm0, %v6324_v0 }
0x162d   :  { %5891 = vmatprep.subr.bf16.mxu0 %v6324_v0  ;;  %5876 = vmatmul.mubr.msk.bf16.vlgmr.msra.gmra.mrb[136].mxu1 %vm158_vm1, %v3979_v8  ;;  %v4498_v48 = vsel %vm801_vm12, %v3995_v57, 0 }
0x162e   :  { %5886 = vmatpush3.bf16.xpose.msra.mxu1 %v4052_v59  ;;  %5887 = vmatprep.mubr.msk.bf16.mxu1 %vm6325_vm0, %v6324_v0 }
0x162f   :  { %5897 = vmatprep.subr.bf16.mxu1 %v6324_v0 }
0x1633   :  { %5882 = vmatmul.mubr.msk.bf16.vlgmr.msra.gmra.mrb[136].mxu0 %vm158_vm1, %v3980_v28 }
0x1634   :  { %5892 = vmatpush3.bf16.xpose.msra.mxu0 %v4006_v13  ;;  %5893 = vmatprep.mubr.msk.bf16.mxu0 %vm6325_vm0, %v6324_v0 }
0x1635   :  { %5903 = vmatprep.subr.bf16.mxu0 %v6324_v0  ;;  %5888 = vmatmul.mubr.msk.bf16.vlgmr.msra.gmra.mrb[140].mxu1 %vm158_vm1, %v3981_v3 }
0x1636   :  { %5898 = vmatpush3.bf16.xpose.msra.mxu1 %v4052_v59  ;;  %5899 = vmatprep.mubr.msk.bf16.mxu1 %vm6325_vm0, %v6324_v0 }
0x1637   :  { %5909 = vmatprep.subr.bf16.mxu1 %v6324_v0 }
0x163b   :  { %5894 = vmatmul.mubr.msk.bf16.vlgmr.msra.gmra.mrb[140].mxu0 %vm158_vm1, %v3982_v12 }
0x163c   :  { %5905 = vmatprep.mubr.msk.bf16.mxu0 %vm6325_vm0, %v6324_v0  ;;  %5904 = vmatpush3.bf16.msra.mxu0 %v4452_v54 }
0x163d   :  { %5900 = vmatmul.mubr.msk.bf16.vlgmr.msra.gmra.mrb[144].mxu1 %vm158_vm1, %v3983_v44  ;;  %5915 = vmatprep.subr.bf16.mxu0 %v6324_v0 }
0x163e   :  { %5911 = vmatprep.mubr.msk.bf16.mxu1 %vm6325_vm0, %v6324_v0  ;;  %5910 = vmatpush3.bf16.msra.mxu1 %v4498_v48 }
0x163f   :  { %5921 = vmatprep.subr.bf16.mxu1 %v6324_v0 }
0x16f6   :  { %v4042_v17 = vpop.f32.mrb[128].mxu0 }
0x16f7   :  { %v5859_v56 = vpop.f32.mrb[129].mxu0  ;;  %v4352_v50 = vsel %vm701_vm13, %v4042_v17, -inf }
0x16f8   :  { %4353 = vmax.xlane.f32.xlu0 %v4352_v50  ;;  %v4045_v7 = vpop.f32.mrb[130].mxu0  ;;  %v4088_v9 = vpop.f32.mrb[132].mxu1 }
0x16f9   :  { %v5860_v22 = vpop.f32.mrb[131].mxu0  ;;  %v5865_v40 = vpop.f32.mrb[133].mxu1  ;;  %v4355_v60 = vsel %vm701_vm13, %v4088_v9, -inf }
0x16fa   :  { %4356 = vmax.xlane.f32.xlu1 %v4355_v60  ;;  %v4091_v6 = vpop.f32.mrb[134].mxu1 }
0x16fb   :  { %v5866_v10 = vpop.f32.mrb[135].mxu1 }
0x16fe   :  { %v4131_v35 = vpop.f32.mrb[132].mxu0 }
0x16ff   :  { %v5871_v13 = vpop.f32.mrb[133].mxu0  ;;  %v4358_v18 = vsel %vm701_vm13, %v4131_v35, -inf }
0x1700   :  { %4359 = vmax.xlane.f32.xlu0 %v4358_v18  ;;  %v4134_v59 = vpop.f32.mrb[134].mxu0  ;;  %v4174_v26 = vpop.f32.mrb[136].mxu1 }
0x1701   :  { %v5872_v5 = vpop.f32.mrb[135].mxu0  ;;  %v5877_v23 = vpop.f32.mrb[137].mxu1  ;;  %v4361_v61 = vsel %vm701_vm13, %v4174_v26, -inf }
0x1702   :  { %4362 = vmax.xlane.f32.xlu1 %v4361_v61  ;;  %v4177_v63 = vpop.f32.mrb[138].mxu1 }
0x1703   :  { %v5878_v36 = vpop.f32.mrb[139].mxu1 }
0x1706   :  { %v4217_v29 = vpop.f32.mrb[136].mxu0 }
0x1707   :  { %v5883_v4 = vpop.f32.mrb[137].mxu0  ;;  %v4364_v16 = vsel %vm701_vm13, %v4217_v29, -inf }
0x1708   :  { %4365 = vmax.xlane.f32.xlu0 %v4364_v16  ;;  %v4220_v53 = vpop.f32.mrb[138].mxu0  ;;  %v4260_v24 = vpop.f32.mrb[140].mxu1 }
0x1709   :  { %v5884_v33 = vpop.f32.mrb[139].mxu0  ;;  %v5889_v11 = vpop.f32.mrb[141].mxu1  ;;  %v4367_v46 = vsel %vm701_vm13, %v4260_v24, -inf }
0x170a   :  { %4368 = vmax.xlane.f32.xlu1 %v4367_v46  ;;  %v4263_v32 = vpop.f32.mrb[142].mxu1 }
0x170b   :  { %v5890_v27 = vpop.f32.mrb[143].mxu1 }
0x170e   :  { %v4303_v31 = vpop.f32.mrb[140].mxu0 }
0x170f   :  { %v5895_v25 = vpop.f32.mrb[141].mxu0  ;;  %v4370_v8 = vsel %vm701_vm13, %v4303_v31, -inf }
0x1710   :  { %4371 = vmax.xlane.f32.xlu0 %v4370_v8  ;;  %v4306_v30 = vpop.f32.mrb[142].mxu0  ;;  %v4346_v39 = vpop.f32.mrb[144].mxu1 }
0x1711   :  { %v5896_v28 = vpop.f32.mrb[143].mxu0  ;;  %v5901_v3 = vpop.f32.mrb[145].mxu1  ;;  %v4373_v41 = vsel %vm701_vm13, %v4346_v39, -inf }
0x1712   :  { %4374 = vmax.xlane.f32.xlu1 %v4373_v41  ;;  %v4349_v45 = vpop.f32.mrb[146].mxu1  ;;  %v3988_v28 = vmul.f32 %v6484_v37, %v7155_v51 }
0x1713   :  { %v5902_v12 = vpop.f32.mrb[147].mxu1  ;;  %v3989_v45 = vmul.f32 %v6484_v37, %v7157_v14 }
0x1785   :  { %v4354_v44 = vpop.xlane.xlu0 %4353 }
0x1786   :  { %v4376_v19 = vsub.f32 %v4042_v17, %v4354_v44  ;;  %v3996_v44 = vpack.c.bf16 %v3988_v28, %v3988_v28 }
0x1787   :  { %v4357_v52 = vpop.xlane.xlu1 %4356 }
0x1788   :  { %v4384_v47 = vmul.f32 1.442695, %v4376_v19  ;;  %v4377_v38 = vsub.f32 %v4088_v9, %v4357_v52 }
0x178a   :  { %6135 = vpow2.f32 %v4384_v47  ;;  %v4386_v57 = vmul.f32 1.442695, %v4377_v38  ;;  %v3997_v38 = vpack.c.bf16 %v3989_v45, %v3989_v45 }
0x178c   :  { %6137 = vpow2.f32 %v4386_v57 }
0x178d   :  { %v4360_v54 = vpop.xlane.xlu0 %4359 }
0x178e   :  { %v4378_v48 = vsub.f32 %v4131_v35, %v4360_v54  ;;  %v4544_v54 = vsel %vm801_vm12, %v3996_v44, 0 }
0x178f   :  { %v4363_v50 = vpop.xlane.xlu1 %4362 }
0x1790   :  { %v4388_v56 = vmul.f32 1.442695, %v4378_v48  ;;  %v4379_v7 = vsub.f32 %v4174_v26, %v4363_v50  ;;  %v3990_v48 = vmul.f32 %v6498_v43, %v7155_v51  ;;  %v4590_v50 = vsel %vm801_vm12, %v3997_v38, 0 }
0x1792   :  { %6139 = vpow2.f32 %v4388_v56  ;;  %v4390_v22 = vmul.f32 1.442695, %v4379_v7 }
0x1794   :  { %v6136_v40 = vpop.eup %6135  ;;  %6141 = vpow2.f32 %v4390_v22  ;;  %v3991_v22 = vmul.f32 %v6498_v43, %v7157_v14  ;;  %v3992_v43 = vmul.f32 %v6514_v49, %v7155_v51 }
0x1795   :  { %v4366_v60 = vpop.xlane.xlu0 %4365  ;;  %v4400_v6 = vsel %vm701_vm13, %v6136_v40, 0.0 }
0x1796   :  { %v4380_v10 = vsub.f32 %v4217_v29, %v4366_v60  ;;  %4401 = vadd.xlane.f32.xlu0 %v4400_v6  ;;  %v6138_v17 = vpop.eup %6137  ;;  %v3998_v60 = vpack.c.bf16 %v3990_v48, %v3990_v48  ;;  %v4000_v51 = vpack.c.bf16 %v3992_v43, %v3992_v43 }
0x1797   :  { %v4369_v9 = vpop.xlane.xlu1 %4368  ;;  %v4403_v18 = vsel %vm701_vm13, %v6138_v17, 0.0 }
0x1798   :  { %v4392_v13 = vmul.f32 1.442695, %v4380_v10  ;;  %v4381_v59 = vsub.f32 %v4260_v24, %v4369_v9  ;;  %4404 = vadd.xlane.f32.xlu1 %v4403_v18  ;;  %v4636_v18 = vsel %vm801_vm12, %v3998_v60, 0 }
0x179a   :  { %6143 = vpow2.f32 %v4392_v13  ;;  %v4394_v35 = vmul.f32 1.442695, %v4381_v59  ;;  %v3999_v13 = vpack.c.bf16 %v3991_v22, %v3991_v22 }
0x179c   :  { %v6140_v5 = vpop.eup %6139  ;;  %6145 = vpow2.f32 %v4394_v35 }
0x179d   :  { %v4372_v26 = vpop.xlane.xlu0 %4371  ;;  %v4406_v23 = vsel %vm701_vm13, %v6140_v5, 0.0 }
0x179e   :  { %v4382_v61 = vsub.f32 %v4303_v31, %v4372_v26  ;;  %4407 = vadd.xlane.f32.xlu0 %v4406_v23  ;;  %v6142_v63 = vpop.eup %6141  ;;  %v3993_v23 = vmul.f32 %v6514_v49, %v7157_v14 }
0x179f   :  { %v4375_v29 = vpop.xlane.xlu1 %4374  ;;  %v4409_v4 = vsel %vm701_vm13, %v6142_v63, 0.0 }
0x17a0   :  { %v4396_v36 = vmul.f32 1.442695, %v4382_v61  ;;  %v4383_v16 = vsub.f32 %v4346_v39, %v4375_v29  ;;  %4410 = vadd.xlane.f32.xlu1 %v4409_v4  ;;  %v4001_v4 = vpack.c.bf16 %v3993_v23, %v3993_v23 }
0x17a2   :  { %6147 = vpow2.f32 %v4396_v36  ;;  %v4398_v53 = vmul.f32 1.442695, %v4383_v16  ;;  %v4728_v16 = vsel %vm801_vm12, %v4000_v51, 0 }
0x17a4   :  { %v7179_v24 = vpop.eup %6143  ;;  %6149 = vpow2.f32 %v4398_v53  ;;  %v4774_v53 = vsel %vm801_vm12, %v4001_v4, 0 }
0x17a5   :  { %v4412_v33 = vsel %vm701_vm13, %v7179_v24, 0.0 }
0x17a6   :  { %4413 = vadd.xlane.f32.xlu0 %v4412_v33  ;;  %v7183_v11 = vpop.eup %6145 }
0x17a7   :  { %v4415_v46 = vsel %vm701_vm13, %v7183_v11, 0.0 }
0x17a8   :  { %4416 = vadd.xlane.f32.xlu1 %v4415_v46 }
0x17ac   :  { %v7187_v32 = vpop.eup %6147 }
0x17ad   :  { %v4418_v27 = vsel %vm701_vm13, %v7187_v32, 0.0 }
0x17ae   :  { %4419 = vadd.xlane.f32.xlu0 %v4418_v27  ;;  %v7191_v31 = vpop.eup %6149 }
0x17af   :  { %v4421_v25 = vsel %vm701_vm13, %v7191_v31, 0.0 }
0x17b0   :  { %4422 = vadd.xlane.f32.xlu1 %v4421_v25  ;;  %v6020_v25 = vld [vmem:[#allocation7 + $0xf8] sm:$0xff]  }
0x1823   :  { %v4402_v8 = vpop.xlane.xlu0 %4401 }
0x1824   :  { %6151 = vrcp.f32 %v4402_v8 }
0x1825   :  { %v4405_v30 = vpop.xlane.xlu1 %4404 }
0x1826   :  { %6153 = vrcp.f32 %v4405_v30 }
0x182b   :  { %v4408_v39 = vpop.xlane.xlu0 %4407 }
0x182c   :  { %6155 = vrcp.f32 %v4408_v39 }
0x182d   :  { %v4411_v41 = vpop.xlane.xlu1 %4410 }
0x182e   :  { %v6152_v3 = vpop.eup %6151  ;;  %6157 = vrcp.f32 %v4411_v41 }
0x182f   :  { %v4432_v12 = vmul.f32 %v6152_v3, %v6136_v40 }
0x1830   :  { %v6154_v19 = vpop.eup %6153 }
0x1831   :  { %v4440_v47 = vpack.c.bf16 %v4432_v12, %v4432_v12  ;;  %v4433_v52 = vmul.f32 %v6154_v19, %v6138_v17 }
0x1833   :  { %v4414_v57 = vpop.xlane.xlu0 %4413  ;;  %5906 = vmatmul.mubr.msk.bf16.vlgmr.msra.gmra.mrb[144].mxu0 %vm701_vm13, %v4440_v47  ;;  %v4441_v56 = vpack.c.bf16 %v4433_v52, %v4433_v52 }
0x1834   :  { %6159 = vrcp.f32 %v4414_v57  ;;  %5916 = vmatpush3.bf16.msra.mxu0 %v4544_v54  ;;  %5917 = vmatprep.mubr.msk.bf16.mxu0 %vm6325_vm0, %v6324_v0 }
0x1835   :  { %5927 = vmatprep.subr.bf16.mxu0 %v6324_v0  ;;  %5912 = vmatmul.mubr.msk.bf16.vlgmr.msra.gmra.mrb[148].mxu1 %vm701_vm13, %v4441_v56  ;;  %v4417_v7 = vpop.xlane.xlu1 %4416 }
0x1836   :  { %v6156_v37 = vpop.eup %6155  ;;  %5922 = vmatpush3.bf16.msra.mxu1 %v4590_v50  ;;  %6161 = vrcp.f32 %v4417_v7  ;;  %5923 = vmatprep.mubr.msk.bf16.mxu1 %vm6325_vm0, %v6324_v0 }
0x1837   :  { %v4434_v40 = vmul.f32 %v6156_v37, %v6140_v5  ;;  %5933 = vmatprep.subr.bf16.mxu1 %v6324_v0  ;;  %v4682_v5 = vsel %vm801_vm12, %v3999_v13, 0 }
0x1838   :  { %v6158_v6 = vpop.eup %6157 }
0x1839   :  { %v4442_v10 = vpack.c.bf16 %v4434_v40, %v4434_v40  ;;  %v4435_v17 = vmul.f32 %v6158_v6, %v6142_v63 }
0x183b   :  { %v4420_v9 = vpop.xlane.xlu0 %4419  ;;  %5918 = vmatmul.mubr.msk.bf16.vlgmr.msra.gmra.mrb[148].mxu0 %vm701_vm13, %v4442_v10  ;;  %v4443_v59 = vpack.c.bf16 %v4435_v17, %v4435_v17 }
0x183c   :  { %6163 = vrcp.f32 %v4420_v9  ;;  %5928 = vmatpush3.bf16.msra.mxu0 %v4636_v18  ;;  %5929 = vmatprep.mubr.msk.bf16.mxu0 %vm6325_vm0, %v6324_v0 }
0x183d   :  { %5939 = vmatprep.subr.bf16.mxu0 %v6324_v0  ;;  %5924 = vmatmul.mubr.msk.bf16.vlgmr.msra.gmra.mrb[152].mxu1 %vm701_vm13, %v4443_v59  ;;  %v4423_v26 = vpop.xlane.xlu1 %4422 }
0x183e   :  { %v6160_v35 = vpop.eup %6159  ;;  %5934 = vmatpush3.bf16.msra.mxu1 %v4682_v5  ;;  %6165 = vrcp.f32 %v4423_v26  ;;  %5935 = vmatprep.mubr.msk.bf16.mxu1 %vm6325_vm0, %v6324_v0 }
0x183f   :  { %v4436_v61 = vmul.f32 %v6160_v35, %v7179_v24  ;;  %5945 = vmatprep.subr.bf16.mxu1 %v6324_v0 }
0x1840   :  { %v6162_v63 = vpop.eup %6161 }
0x1841   :  { %v4444_v36 = vpack.c.bf16 %v4436_v61, %v4436_v61  ;;  %v4437_v29 = vmul.f32 %v6162_v63, %v7183_v11 }
0x1843   :  { %5930 = vmatmul.mubr.msk.bf16.vlgmr.msra.gmra.mrb[152].mxu0 %vm701_vm13, %v4444_v36  ;;  %v4445_v49 = vpack.c.bf16 %v4437_v29, %v4437_v29 }
0x1844   :  { %5940 = vmatpush3.bf16.msra.mxu0 %v4728_v16  ;;  %5941 = vmatprep.mubr.msk.bf16.mxu0 %vm6325_vm0, %v6324_v0 }
0x1845   :  { %5951 = vmatprep.subr.bf16.mxu0 %v6324_v0  ;;  %5936 = vmatmul.mubr.msk.bf16.vlgmr.msra.gmra.mrb[156].mxu1 %vm701_vm13, %v4445_v49 }
0x1846   :  { %v6164_v14 = vpop.eup %6163  ;;  %5946 = vmatpush3.bf16.msra.mxu1 %v4774_v53  ;;  %5947 = vmatprep.mubr.msk.bf16.mxu1 %vm6325_vm0, %v6324_v0 }
0x1847   :  { %v4438_v24 = vmul.f32 %v6164_v14, %v7187_v32  ;;  %5959 = vmatprep.subr.bf16.mxu1 %v6324_v0  ;;  %v6019_v32 = vld [vmem:[#allocation7 + $0xf0] sm:$0xff]  }
0x1848   :  { %v6166_v33 = vpop.eup %6165 }
0x1849   :  { %v4446_v11 = vpack.c.bf16 %v4438_v24, %v4438_v24  ;;  %v4439_v46 = vmul.f32 %v6166_v33, %v7191_v31  ;;  %v4834_v33 = vrot.slane %v7151_v20, %v6462_v15 }
0x184b   :  { %5942 = vmatmul.mubr.msk.bf16.vlgmr.msra.gmra.mrb[156].mxu0 %vm701_vm13, %v4446_v11  ;;  %v4447_v27 = vpack.c.bf16 %v4439_v46, %v4439_v46 }
0x184c   :  { %5955 = vmatprep.mubr.msk.bf16.mxu0 %vm6325_vm0, %v6324_v0  ;;  %5952 = vmatpush3.bf16.msra.mxu0 %v6019_v32 }
0x184d   :  { %5948 = vmatmul.mubr.msk.bf16.vlgmr.msra.gmra.mrb[160].mxu1 %vm701_vm13, %v4447_v27  ;;  %5953 = vmatprep.subr.bf16.mxu0 %v6324_v0 }
0x184e   :  { %5963 = vmatprep.mubr.msk.bf16.mxu1 %vm6325_vm0, %v6324_v0 }
0x1850   :  { %5954 = vmatpush3.bf16.msra.mxu0 %v6020_v25 }
0x1851   :  { %5967 = vmatprep.subr.bf16.mxu0 %v6324_v0 }
0x1906   :  { %v4488_v31 = vpop.f32.mrb[144].mxu0 }
0x1907   :  { %v5907_v8 = vpop.f32.mrb[145].mxu0  ;;  %v4816_v44 = vsel %vm158_vm1, %v4488_v31, 0.0 }
0x1908   :  { %v4491_v30 = vpop.f32.mrb[146].mxu0  ;;  %v4534_v39 = vpop.f32.mrb[148].mxu1 }
0x1909   :  { %v5908_v28 = vpop.f32.mrb[147].mxu0  ;;  %v5913_v3 = vpop.f32.mrb[149].mxu1  ;;  %v4823_v48 = vsel %vm158_vm1, %v4534_v39, 0.0 }
0x190a   :  { %v4537_v41 = vpop.f32.mrb[150].mxu1 }
0x190b   :  { %v5914_v45 = vpop.f32.mrb[151].mxu1 }
0x190e   :  { %v4580_v12 = vpop.f32.mrb[148].mxu0 }
0x190f   :  { %v4817_v19 = vsel %vm158_vm1, %v4580_v12, 0.0  ;;  %v5919_v47 = vpop.f32.mrb[149].mxu0 }
0x1910   :  { %v4818_v52 = vadd.f32 %v4817_v19, %v4816_v44  ;;  %v4583_v38 = vpop.f32.mrb[150].mxu0  ;;  %v4626_v57 = vpop.f32.mrb[152].mxu1 }
0x1911   :  { %v5920_v54 = vpop.f32.mrb[151].mxu0  ;;  %v4824_v56 = vsel %vm158_vm1, %v4626_v57, 0.0  ;;  %v5925_v37 = vpop.f32.mrb[153].mxu1  ;;  %v6021_v38 = vld [vmem:[#allocation8 + $0x10] sm:$0xff]  }
0x1912   :  { %v4825_v50 = vadd.f32 %v4824_v56, %v4823_v48  ;;  %v4629_v7 = vpop.f32.mrb[154].mxu1  ;;  %5960 = vmatpush3.bf16.msra.mxu1 %v6021_v38 }
0x1913   :  { %v5926_v22 = vpop.f32.mrb[155].mxu1  ;;  %5961 = vmatprep.subr.bf16.mxu1 %v6324_v0 }
0x1916   :  { %v4672_v40 = vpop.f32.mrb[152].mxu0 }
0x1917   :  { %v4819_v60 = vsel %vm158_vm1, %v4672_v40, 0.0  ;;  %v5931_v6 = vpop.f32.mrb[153].mxu0 }
0x1918   :  { %v4820_v10 = vadd.f32 %v4819_v60, %v4818_v52  ;;  %v4675_v17 = vpop.f32.mrb[154].mxu0  ;;  %v4718_v13 = vpop.f32.mrb[156].mxu1  ;;  %v4922_v60 = vrot.slane %v7151_v20, %v6540_v58 }
0x1919   :  { %v5932_v9 = vpop.f32.mrb[155].mxu0  ;;  %v4826_v18 = vsel %vm158_vm1, %v4718_v13, 0.0  ;;  %v5937_v43 = vpop.f32.mrb[157].mxu1 }
0x191a   :  { %v4827_v59 = vadd.f32 %v4826_v18, %v4825_v50  ;;  %v4721_v35 = vpop.f32.mrb[158].mxu1  ;;  %v4928_v43 = vrot.slane %v7151_v20, %v6650_v62  ;;  %v5003_v62 = vrot.slane %v7151_v20, %v6676_v42 }
0x191b   :  { %v5938_v5 = vpop.f32.mrb[159].mxu1 }
0x191e   :  { %v4764_v26 = vpop.f32.mrb[156].mxu0 }
0x191f   :  { %v4821_v23 = vsel %vm158_vm1, %v4764_v26, 0.0  ;;  %v5943_v61 = vpop.f32.mrb[157].mxu0 }
0x1920   :  { %v4822_v51 = vadd.f32 %v4821_v23, %v4820_v10  ;;  %v4767_v63 = vpop.f32.mrb[158].mxu0  ;;  %v4810_v36 = vpop.f32.mrb[160].mxu1 }
0x1921   :  { %v5944_v29 = vpop.f32.mrb[159].mxu0  ;;  %v4828_v4 = vsel %vm158_vm1, %v4810_v36, 0.0  ;;  %v5949_v16 = vpop.f32.mrb[161].mxu1 }
0x1922   :  { %v4829_v49 = vadd.f32 %v4828_v4, %v4827_v59  ;;  %v4813_v14 = vpop.f32.mrb[162].mxu1 }
0x1923   :  { %v5950_v53 = vpop.f32.mrb[163].mxu1 }
0x1924   :  { %v4830_v24 = vpack.c.bf16 %v4829_v49, %v4822_v51 }
0x1926   :  { %5956 = vmatmul.mubr.msk.bf16.vlgmr.msra.gmra.mrb[160].mxu0 %vm158_vm1, %v4830_v24 }
0x1927   :  { %5971 = vmatprep.mubr.msk.bf16.mxu0 %vm6325_vm0, %v6324_v0 }
0x19f9   :  { %v4884_v11 = vpop.f32.mrb[160].mxu0 }
0x19fa   :  { %v4885_v46 = vadd.f32 %v4884_v11, %v4834_v33  ;;  %v5957_v27 = vpop.f32.mrb[161].mxu0 }
0x19fb   :  { %v4887_v32 = vpop.f32.mrb[162].mxu0 }
0x19fc   :  { %v4888_v25 = vadd.f32 %v4887_v32, %v4834_v33  ;;  %v5958_v31 = vpop.f32.mrb[163].mxu0  ;;  %v4891_v8 = vadd.f32 %v4885_v46, %v7090_v2 }
0x19fe   :  { %v4893_v30 = vsel %vm158_vm1, %v4891_v8, 0.0  ;;  %v4892_v39 = vadd.f32 %v4888_v25, %v7092_v34  ;;  %v6022_v34 = vld [vmem:[#allocation8 + $0x18] sm:$0xff]  }
0x19ff   :  { %4894 = vadd.xlane.f32.xlu0 %v4893_v30  ;;  %5962 = vmatpush3.bf16.msra.mxu1 %v6022_v34 }
0x1a00   :  { %v4896_v28 = vsel %vm158_vm1, %v4892_v39, 0.0 }
0x1a01   :  { %4897 = vadd.xlane.f32.xlu1 %v4896_v28 }
0x1a8c   :  { %v4895_v3 = vpop.xlane.xlu0 %4894 }
0x1a8d   :  { %v4899_v41 = vmul.f32 0.03125, %v4895_v3 }
0x1a8e   :  { %v4898_v45 = vpop.xlane.xlu1 %4897 }
0x1a8f   :  { %v4901_v15 = vsub.f32 %v4891_v8, %v4899_v41  ;;  %v4900_v12 = vmul.f32 0.03125, %v4898_v45 }
0x1a91   :  { %v4902_v44 = vsub.f32 %v4892_v39, %v4900_v12  ;;  %v4903_v19 = vmul.f32 %v4901_v15, %v4901_v15 }
0x1a93   :  { %v4905_v47 = vsel %vm158_vm1, %v4903_v19, 0.0  ;;  %v4904_v52 = vmul.f32 %v4902_v44, %v4902_v44 }
0x1a94   :  { %4906 = vadd.xlane.f32.xlu0 %v4905_v47 }
0x1a95   :  { %v4908_v2 = vsel %vm158_vm1, %v4904_v52, 0.0 }
0x1a96   :  { %4909 = vadd.xlane.f32.xlu1 %v4908_v2  ;;  %v5089_v2 = vrot.slane %v7151_v20, %v6705_v21 }
0x1aa7   :  { %5006 = vrot.lane.b32.xlu1 %v6022_v34, %s6320_s18 }
0x1aaa   :  { %5004 = vrot.lane.b32.xlu0 %v6021_v38, %s6320_s18  ;;  %s5105_s18 = sshll.u32 %s6326_s4, 4  ;;  %s5106_s18 = int_to_ptr.vmem [resolvable:$true] %s5105_s18 }
0x1aab   :  { %s6285_s3 = scalar_lea.vmem %s5106_s18, 256  ;;  %p6290_p13 = scmp.lt.s32.totalorder %s5106_s18, %s5106_s18 }
0x1aac   :  { %p6286_p12 = scmp.ne.s32.totalorder %s5106_s18, %s6285_s3  ;;  %p6291_p0 = scmp.lt.s32.totalorder %s6285_s3, %s6285_s3 }
0x1aae   :  { %p6292_p1 = por %p6291_p0, %p6290_p13 }
0x1ab0   :  { %p6293_p2 = pnand %p6292_p1, %p6286_p12 }
0x1b21   :  { %v4907_v57 = vpop.xlane.xlu0 %4906 }
0x1b22   :  { %v4911_v54 = vmul.f32 0.03125, %v4907_v57  ;;  %v5095_v57 = vrot.slane %v7151_v20, %v6696_v55 }
0x1b23   :  { %v4910_v48 = vpop.xlane.xlu1 %4909 }
0x1b24   :  { %v4913_v56 = vadd.f32 1e-05, %v4911_v54  ;;  %v4912_v37 = vmul.f32 0.03125, %v4910_v48 }
0x1b25   :  { %v5005_v7 = vpop.permute.xlu0 %5004 }
0x1b26   :  { %6167 = vrsqrt.f32 %v4913_v56  ;;  %v4914_v50 = vadd.f32 1e-05, %v4912_v37  ;;  %v5012_v22 = vsel %vm2521_vm14, %v5005_v7, 0 }
0x1b27   :  { %5968 = vmatpush3.bf16.xpose.msra.mxu0 %v5012_v22  ;;  %v5007_v40 = vpop.permute.xlu1 %5006 }
0x1b28   :  { %6169 = vrsqrt.f32 %v4914_v50  ;;  %5969 = vmatprep.subr.bf16.mxu0 %v6324_v0  ;;  %v5015_v10 = vsel %vm2521_vm14, %v5007_v40, 0  ;;  %v4940_v0 = vrot.slane %v7151_v20, %v6671_v1 }
0x1b2f   :  { %5970 = vmatpush3.bf16.xpose.msra.mxu0 %v5015_v10 }
0x1b30   :  { %v6168_v6 = vpop.eup %6167 }
0x1b31   :  { %v4917_v17 = vmul.f32 %v6168_v6, %v4901_v15 }
0x1b32   :  { %v6170_v13 = vpop.eup %6169 }
0x1b33   :  { %v4923_v9 = vmul.f32 %v4922_v60, %v4917_v17  ;;  %v4918_v18 = vmul.f32 %v6170_v13, %v4902_v44 }
0x1b35   :  { %v4924_v59 = vmul.f32 %v4922_v60, %v4918_v18  ;;  %v4929_v35 = vadd.f32 %v4928_v43, %v4923_v9 }
0x1b37   :  { %v4930_v5 = vadd.f32 %v4928_v43, %v4924_v59 }
0x1b39   :  { %v4936_v26 = vpack.c.bf16 %v4930_v5, %v4929_v35 }
0x1b3b   :  { %5964 = vmatmul.mubr.msk.bf16.vlgmr.msra.gmra.mrb[164].mxu1 %vm158_vm1, %v4936_v26 }
0x1c0e   :  { %v4990_v58 = vpop.f32.mrb[164].mxu1 }
0x1c0f   :  { %v4991_v23 = vadd.f32 %v4990_v58, %v4940_v0  ;;  %v5965_v61 = vpop.f32.mrb[165].mxu1 }
0x1c10   :  { %v4993_v51 = vpop.f32.mrb[166].mxu1 }
0x1c11   :  { %v4994_v63 = vadd.f32 %v4993_v51, %v4940_v0  ;;  %v5966_v36 = vpop.f32.mrb[167].mxu1  ;;  %v4997_v29 = vmax.f32 %v4991_v23, 0.0 }
0x1c13   :  { %v4998_v4 = vmax.f32 %v4994_v63, 0.0 }
0x1c15   :  { %v4999_v16 = vpack.c.bf16 %v4998_v4, %v4997_v29 }
0x1c17   :  { %5972 = vmatmul.mubr.msk.bf16.vlgmr.msra.gmra.mrb[164].mxu0 %vm2521_vm14, %v4999_v16 }
0x1cea   :  { %v5051_v49 = vpop.f32.mrb[164].mxu0 }
0x1ceb   :  { %v5052_v14 = vadd.f32 %v5051_v49, %v5003_v62  ;;  %v5973_v53 = vpop.f32.mrb[165].mxu0 }
0x1cec   :  { %v5054_v24 = vpop.f32.mrb[166].mxu0 }
0x1ced   :  { %v5055_v33 = vadd.f32 %v5054_v24, %v5003_v62  ;;  %v5974_v1 = vpop.f32.mrb[167].mxu0  ;;  %v5058_v11 = vadd.f32 %v5052_v14, %v4929_v35 }
0x1cef   :  { %v5060_v46 = vsel %vm158_vm1, %v5058_v11, 0.0  ;;  %v5059_v27 = vadd.f32 %v5055_v33, %v4930_v5 }
0x1cf0   :  { %5061 = vadd.xlane.f32.xlu1 %v5060_v46 }
0x1cf1   :  { %v5063_v32 = vsel %vm158_vm1, %v5059_v27, 0.0 }
0x1cf2   :  { %5064 = vadd.xlane.f32.xlu0 %v5063_v32 }
0x1d7d   :  { %v5062_v25 = vpop.xlane.xlu1 %5061 }
0x1d7e   :  { %v5066_v31 = vmul.f32 0.03125, %v5062_v25 }
0x1d7f   :  { %v5065_v8 = vpop.xlane.xlu0 %5064 }
0x1d80   :  { %v5068_v30 = vsub.f32 %v5058_v11, %v5066_v31  ;;  %v5067_v39 = vmul.f32 0.03125, %v5065_v8 }
0x1d82   :  { %v5069_v42 = vsub.f32 %v5059_v27, %v5067_v39  ;;  %v5070_v28 = vmul.f32 %v5068_v30, %v5068_v30 }
0x1d84   :  { %v5072_v3 = vsel %vm158_vm1, %v5070_v28, 0.0  ;;  %v5071_v41 = vmul.f32 %v5069_v42, %v5069_v42 }
0x1d85   :  { %5073 = vadd.xlane.f32.xlu0 %v5072_v3 }
0x1d86   :  { %v5075_v45 = vsel %vm158_vm1, %v5071_v41, 0.0 }
0x1d87   :  { %5076 = vadd.xlane.f32.xlu1 %v5075_v45 }
0x1e12   :  { %v5074_v15 = vpop.xlane.xlu0 %5073 }
0x1e13   :  { %v5078_v12 = vmul.f32 0.03125, %v5074_v15 }
0x1e14   :  { %v5077_v44 = vpop.xlane.xlu1 %5076 }
0x1e15   :  { %v5080_v19 = vadd.f32 1e-05, %v5078_v12  ;;  %v5079_v47 = vmul.f32 0.03125, %v5077_v44 }
0x1e17   :  { %6171 = vrsqrt.f32 %v5080_v19  ;;  %v5081_v52 = vadd.f32 1e-05, %v5079_v47 }
0x1e19   :  { %6173 = vrsqrt.f32 %v5081_v52 }
0x1e21   :  { %v6172_v38 = vpop.eup %6171 }
0x1e22   :  { %v5084_v34 = vmul.f32 %v6172_v38, %v5068_v30 }
0x1e23   :  { %v6174_v54 = vpop.eup %6173 }
0x1e24   :  { %v5085_v48 = vmul.f32 %v6174_v54, %v5069_v42  ;;  %v5090_v56 = vmul.f32 %v5089_v2, %v5084_v34 }
0x1e26   :  { %v5091_v37 = vmul.f32 %v5089_v2, %v5085_v48  ;;  %v5096_v50 = vadd.f32 %v5095_v57, %v5090_v56 }
0x1e28   :  { %v5097_v7 = vadd.f32 %v5095_v57, %v5091_v37  ;;  %5098 = vst.msk [vmem:[#allocation11] sm:$0xff] %vm158_vm1, %v5096_v50 }
0x1e2a   :  { %5099 = vst.msk [vmem:[#allocation11 + $0x8] sm:$0xff] %vm158_vm1, %v5097_v7 }
0x1e2b   :  { %6296 = shalt.err (!%p6293_p2)
}
0x1e2c   :  { %s6297_s9 = scalar_lea.hbm %s7314_s5, 256 }
0x1e2d   :  { %p6298_p3 = scmp.ne.s32.totalorder %s7314_s5, %s6297_s9  ;;  %p6301_p4 = scmp.lt.u32.totalorder %s6297_s9, %s7314_s5 }
0x1e2f   :  { %p6303_p5 = pnand %p6301_p4, %p6298_p3 }
0x1e31   :  { %6306 = shalt.err (!%p6303_p5)
}
0x1e32   :  { %5111 = dma.vmem_to_hbm [thread:$0]  %s5106_s18, 256, %s7314_s5, [#allocation4], %s6316_s28, %s6316_s28, %s6317_s29  }
0x1e33   :  { %6313 = dma.done.wait [#allocation4], 256  }
0x1e34   :  { %6314 = vsyncadd [#allocation4], 4294967040 }
0x1e35   :  { %5115 = vsyncpa [#allocation3], 1 }
0x1e36   :  { %5116 = vsyncpa [#allocation6], 1 }
0x1e37   :  { %5117 = vsyncpa [#allocation9], 1 }
0x1e38   :  { %5118 = vsyncpa [#allocation4], 1 }

</bundles_post_ra>
